<compile_context>
chip_gen: v5e
topology: v5e:2x2
jax: 0.10.0
libtpu: 0.0.40
codegen_flags: <defaults>
</compile_context>

<pallas_src>
import math

import jax
import jax.numpy as jnp
from jax import lax
from jax.experimental import pallas as pl
from jax.experimental.pallas import tpu as pltpu


def _leaky(x, alpha):
    return jnp.where(x >= 0, x, alpha * x)


def _round_up(v, m):
    return ((v + m - 1) // m) * m


def _tiled_bytes(shape, itemsize):
    """Real VMEM footprint of an array: last dim padded to 128 lanes,
    second-to-last padded to the sublane granule (8 for f32, 16 for bf16)."""
    sub = 8 if itemsize >= 4 else 8 * (4 // itemsize)
    if len(shape) == 1:
        return _round_up(shape[0], 128) * itemsize * 8
    lead = 1
    for s in shape[:-2]:
        lead *= int(s)
    return lead * _round_up(int(shape[-2]), sub) * _round_up(int(shape[-1]), 128) * itemsize


def _vmem_estimate(tb, tn, feat, d_last, d_max, flat_params, stream_isz, mxu_isz):
    total = 0
    total += 2 * _tiled_bytes((tb, feat, tn), stream_isz)      # x tile, double-buffered
    total += 2 * _tiled_bytes((tb, 1, 1), 4)                   # out block
    total += 2 * _tiled_bytes((tb, d_last, 1), 4)              # max/sum accumulators
    total += 2 * sum(_tiled_bytes(p.shape, p.dtype.itemsize) for p in flat_params)
    # activations (generous): a few f32 h tensors, bf16 matmul copies,
    # broadcast weights, f32 masked-x copy
    total += 3 * _tiled_bytes((tb, d_max, tn), 4)
    total += 2 * _tiled_bytes((tb, d_max, tn), mxu_isz)
    total += 2 * _tiled_bytes((tb, d_max, d_max), mxu_isz)
    total += 2 * _tiled_bytes((tb, feat, tn), 4)
    return total


def build_kernel(n_point, n_fc, alpha, mask, node_feat_size, num_hits, tn, compute_dtype):
    """Kernel closure over static layer counts / config (no captured arrays)."""
    needs_hit_mask = (num_hits % tn) != 0
    inv_n = 1.0 / float(num_hits)

    def kernel(*refs):
        x_ref = refs[0]
        out_ref = refs[-3]
        acc_max_ref = refs[-2]
        acc_sum_ref = refs[-1]
        params = refs[1:-3]
        p_refs = params[: 2 * n_point]            # (w0T, b0, w1T, b1, ...)
        f_refs = params[2 * n_point:]             # (wmaxT, wmeanT, b0, wT, b, ...)

        k = pl.program_id(1)
        nk = pl.num_programs(1)

        x = x_ref[...]                            # (tb, F, tn) stream dtype
        xf = x.astype(jnp.float32)                # mask/shift math in f32 (v5e-safe VPU)
        tb = xf.shape[0]

        if mask:
            # original: x[:,:,2]+=0.5; m=x[:,:,3:4]>=0; x=(x*m)[:,:,:3]; x[:,:,2]-=0.5
            # folded: ch0,1 -> x*m ; ch2 -> x*m + 0.5*(m-1)
            m = (xf[:, 3:4, :] >= 0.0).astype(jnp.float32)        # (tb, 1, tn)
            ch = lax.broadcasted_iota(jnp.int32, (1, 3, 1), 1)
            shift = jnp.where(ch == 2, 0.5 * (m - 1.0), 0.0)      # (tb, 3, tn)
            xm = xf[:, 0:3, :] * m + shift
            kin = 3
        else:
            kin = node_feat_size
            xm = xf[:, 0:kin, :]

        # ---- point layer 0 (fused with masking) : batched MXU matmul ----
        w0T = p_refs[0][...]                      # (D1, kin) compute dtype
        b0 = p_refs[1][...]                       # (D1, 1)  f32
        d1 = w0T.shape[0]
        wb = jnp.broadcast_to(w0T, (tb, d1, kin))
        h = jnp.einsum('boi,bin->bon', wb, xm.astype(compute_dtype),
                       preferred_element_type=jnp.float32)        # (tb, D1, tn)
        h = _leaky(h + b0[None], alpha)

        # ---- remaining per-point layers on the MXU (bf16 operands, f32 acc) ----
        for l in range(1, n_point):
            wT = p_refs[2 * l][...]               # (Dout, Din) compute dtype
            b = p_refs[2 * l + 1][...]            # (Dout, 1)   f32
            do, di = wT.shape
            wb = jnp.broadcast_to(wT, (tb, do, di))
            h = jnp.einsum('boi,bin->bon', wb, h.astype(compute_dtype),
                           preferred_element_type=jnp.float32)
            h = _leaky(h + b[None], alpha)

        # ---- pooling over this hit tile (running max / sum accumulators) ----
        if needs_hit_mask:
            lane = lax.broadcasted_iota(jnp.int32, (1, 1, tn), 2)
            valid = (k * tn + lane) < num_hits
            h_max = jnp.where(valid, h, -jnp.inf)
            h_sum = jnp.where(valid, h, 0.0)
        else:
            h_max = h
            h_sum = h
        tile_max = jnp.max(h_max, axis=2, keepdims=True)          # (tb, D, 1)
        tile_sum = jnp.sum(h_sum, axis=2, keepdims=True)          # (tb, D, 1)

        @pl.when(k == 0)
        def _():
            acc_max_ref[...] = jnp.full_like(acc_max_ref, -jnp.inf)
            acc_sum_ref[...] = jnp.zeros_like(acc_sum_ref)

        acc_max_ref[...] = jnp.maximum(acc_max_ref[...], tile_max)
        acc_sum_ref[...] = acc_sum_ref[...] + tile_sum

        # ---- finalize: FC head + sigmoid on the last hit tile ----
        @pl.when(k == nk - 1)
        def _():
            gmax = acc_max_ref[...]                               # (tb, D, 1)
            gmean = acc_sum_ref[...] * inv_n

            # first FC layer split into max-/mean-pool halves (no concatenate)
            wmaxT = f_refs[0][...]                                # (F1, D) f32
            wmeanT = f_refs[1][...]                               # (F1, D) f32
            bfc0 = f_refs[2][...]                                 # (F1, 1) f32
            dpool = wmaxT.shape[1]
            g = bfc0[None]                                        # (1, F1, 1)
            for i in range(dpool):
                g = g + gmax[:, i:i + 1, :] * wmaxT[None, :, i:i + 1]
                g = g + gmean[:, i:i + 1, :] * wmeanT[None, :, i:i + 1]
            if n_fc > 1:
                g = _leaky(g, alpha)

            for l in range(1, n_fc):
                wT = f_refs[3 + 2 * (l - 1)][...]                 # (Fout, Fin) f32
                b = f_refs[4 + 2 * (l - 1)][...]                  # (Fout, 1)   f32
                fin = wT.shape[1]
                gn = b[None]
                for i in range(fin):
                    gn = gn + g[:, i:i + 1, :] * wT[None, :, i:i + 1]
                g = gn
                if l < n_fc - 1:
                    g = _leaky(g, alpha)

            g = jax.nn.sigmoid(g)                                 # (tb, 1, 1)
            out_ref[...] = g.astype(out_ref.dtype)

    return kernel


def pointnet_mix_disc(x, point_params, fc_params, *, leaky_relu_alpha, mask,
                      compute_dtype=jnp.bfloat16):
    """x: (batch, num_hits, node_feat_size[+1 if mask]) float32 -> (batch, 1)."""
    B, N, F = x.shape
    node_feat_size = int(point_params[0][0].shape[0])
    d_last = int(point_params[-1][0].shape[1])
    d_max = max(int(w.shape[1]) for w, _ in point_params)

    # lane-dense layout: hits on the last (lane) axis; bf16 halves the HBM stream.
    x_t = jnp.transpose(x, (0, 2, 1)).astype(compute_dtype)      # (B, F, N)

    # Flatten params in kernel order (pre-transposed so no in-kernel transposes).
    flat = []
    for w, b in point_params:
        flat.append(jnp.asarray(w).T.astype(compute_dtype))      # (out, in) MXU operand
        flat.append(jnp.asarray(b).reshape(-1, 1).astype(jnp.float32))
    w0fc, b0fc = fc_params[0]
    flat.append(jnp.asarray(w0fc)[:d_last].T.astype(jnp.float32))   # max-pool half
    flat.append(jnp.asarray(w0fc)[d_last:].T.astype(jnp.float32))   # mean-pool half
    flat.append(jnp.asarray(b0fc).reshape(-1, 1).astype(jnp.float32))
    for w, b in fc_params[1:]:
        flat.append(jnp.asarray(w).T.astype(jnp.float32))
        flat.append(jnp.asarray(b).reshape(-1, 1).astype(jnp.float32))

    # ---- tile selection from padded VMEM footprints ----
    stream_isz = jnp.dtype(compute_dtype).itemsize
    BUDGET = 20 << 20                                            # leave headroom in 32 MiB

    tn = N if N <= 512 else 512
    if tn < N:
        tn = max(128, (tn // 128) * 128)                         # lane-aligned hit tiles

    target_steps = 2 if B < 64 else 4                            # >=2 steps -> both v7x TCs busy
    tb = max(1, -(-B // target_steps))
    if tb > 8:
        tb = min(256, _round_up(tb, 8))
    tb = min(tb, 256)

    while (_vmem_estimate(tb, tn, F, d_last, d_max, flat, stream_isz, stream_isz) > BUDGET
           and (tb > 8 or tn > 128)):
        if tb > 8:
            tb = max(8, _round_up(tb // 2, 8))
        else:
            tn = max(128, _round_up(tn // 2, 128))

    grid = (pl.cdiv(B, tb), pl.cdiv(N, tn))

    in_specs = [pl.BlockSpec((tb, F, tn), lambda i, k: (i, 0, k))]
    # weights: full-array blocks, constant index map -> fetched once, resident
    in_specs += [pl.BlockSpec(p.shape, lambda i, k: (0, 0)) for p in flat]
    out_specs = pl.BlockSpec((tb, 1, 1), lambda i, k: (i, 0, 0))

    kernel = build_kernel(len(point_params), len(fc_params), leaky_relu_alpha,
                          mask, node_feat_size, N, tn, compute_dtype)

    out = pl.pallas_call(
        kernel,
        out_shape=jax.ShapeDtypeStruct((B, 1, 1), jnp.float32),
        grid=grid,
        in_specs=in_specs,
        out_specs=out_specs,
        scratch_shapes=[pltpu.VMEM((tb, d_last, 1), jnp.float32),   # running max
                        pltpu.VMEM((tb, d_last, 1), jnp.float32)],  # running sum
        compiler_params=pltpu.CompilerParams(
            dimension_semantics=("parallel", "arbitrary"),
            vmem_limit_bytes=32 * 1024 * 1024,
        ),
    )(x_t, *flat)
    return out.reshape(B, 1)


def init_linear(key, fan_in, fan_out):
    """PyTorch nn.Linear default init (uniform +-1/sqrt(fan_in)), weight stored (in, out)."""
    kw, kb = jax.random.split(key)
    bound = 1.0 / math.sqrt(fan_in)
    w = jax.random.uniform(kw, (fan_in, fan_out), jnp.float32, -bound, bound)
    b = jax.random.uniform(kb, (1, fan_out), jnp.float32, -bound, bound)
    return w, b


def reference_forward(x, point_params, fc_params, *, leaky_relu_alpha, mask):
    x = x.astype(jnp.float32)
    if mask:
        m = (x[:, :, 3:4] >= 0).astype(jnp.float32)
        x01 = x[:, :, 0:2] * m
        x2 = (x[:, :, 2:3] + 0.5) * m - 0.5
        x = jnp.concatenate([x01, x2], axis=-1)
    B, N, F = x.shape
    h = x.reshape(B * N, F)
    for w, b in point_params:
        h = h @ w + b
        h = jnp.where(h >= 0, h, leaky_relu_alpha * h)
    D = h.shape[-1]
    h3 = h.reshape(B, N, D)
    g = jnp.concatenate([jnp.max(h3, axis=1), jnp.mean(h3, axis=1)], axis=1)
    for i, (w, b) in enumerate(fc_params):
        g = g @ w + b
        if i < len(fc_params) - 1:
            g = jnp.where(g >= 0, g, leaky_relu_alpha * g)
    return jax.nn.sigmoid(g)


if __name__ == "__main__":
    # Config mirroring ModelClass.__init__
    node_feat_size = 3
    pointnetd_pointfc = [32, 32]          # -> [3, 32, 32] after insert
    pointnetd_fc = [32]                   # -> [64, 32, 1] after insert/append
    leaky_relu_alpha = 0.2
    num_hits = 8
    mask = True
    batch_size = 2

    point_dims = [node_feat_size] + list(pointnetd_pointfc)
    fc_dims = [point_dims[-1] * 2] + list(pointnetd_fc) + [1]

    n_layers = (len(point_dims) - 1) + (len(fc_dims) - 1)
    key = jax.random.PRNGKey(0)
    keys = jax.random.split(key, n_layers + 1)

    point_params = []
    k_idx = 0
    for i in range(len(point_dims) - 1):
        point_params.append(init_linear(keys[k_idx], point_dims[i], point_dims[i + 1]))
        k_idx += 1
    fc_params = []
    for i in range(len(fc_dims) - 1):
        fc_params.append(init_linear(keys[k_idx], fc_dims[i], fc_dims[i + 1]))
        k_idx += 1

    # input: 3 coordinates + 1 mask channel (mask channel >= 0 means "real" hit)
    x = jax.random.normal(
        keys[-1],
        (batch_size, num_hits, node_feat_size + (1 if mask else 0)),
        jnp.float32,
    )

    ref = reference_forward(
        x, point_params, fc_params, leaky_relu_alpha=leaky_relu_alpha, mask=mask
    )

    # Structural / math check with full f32 compute.
    out_f32 = pointnet_mix_disc(
        x, point_params, fc_params, leaky_relu_alpha=leaky_relu_alpha, mask=mask,
        compute_dtype=jnp.float32,
    )
    out_f32 = jax.block_until_ready(out_f32)
    assert out_f32.shape == (batch_size, 1)
    assert jnp.allclose(out_f32, ref, atol=1e-3, rtol=1e-3), (out_f32, ref)

    # Performance configuration: bf16 x stream + bf16 MXU operands, f32 accumulation.
    out_bf16 = pointnet_mix_disc(
        x, point_params, fc_params, leaky_relu_alpha=leaky_relu_alpha, mask=mask,
        compute_dtype=jnp.bfloat16,
    )
    out_bf16 = jax.block_until_ready(out_bf16)
    assert out_bf16.shape == (batch_size, 1)
    assert jnp.allclose(out_bf16, ref, atol=3e-2, rtol=3e-2), (out_bf16, ref)

    print("KERNEL_OK")
</pallas_src>

<mosaic_0001>
module attributes {stable_mosaic.version = 11 : i64} {
  func.func @kernel(%arg0: i32, %arg1: i32, %arg2: memref<1x4x8xf32, #tpu.memory_space<vmem>>, %arg3: memref<32x3xf32, #tpu.memory_space<vmem>>, %arg4: memref<32x1xf32, #tpu.memory_space<vmem>>, %arg5: memref<32x32xf32, #tpu.memory_space<vmem>>, %arg6: memref<32x1xf32, #tpu.memory_space<vmem>>, %arg7: memref<32x32xf32, #tpu.memory_space<vmem>>, %arg8: memref<32x32xf32, #tpu.memory_space<vmem>>, %arg9: memref<32x1xf32, #tpu.memory_space<vmem>>, %arg10: memref<1x32xf32, #tpu.memory_space<vmem>>, %arg11: memref<1x1xf32, #tpu.memory_space<vmem>>, %arg12: memref<1x1x1xf32, #tpu.memory_space<vmem>>, %arg13: memref<1x32x1xf32, #tpu.memory_space<vmem>>, %arg14: memref<1x32x1xf32, #tpu.memory_space<vmem>>) attributes {dimension_semantics = [#tpu.dimension_semantics<parallel>, #tpu.dimension_semantics<arbitrary>], iteration_bounds = array<i64: 2, 1>, scalar_prefetch = 0 : i64, scratch_operands = 2 : i64, tpu.core_type = #tpu.core_type<tc>, window_params = [{transform_indices = @transform_0, window_bounds = array<i64: 1, 4, 8>}, {pipeline_mode = #tpu.pipeline_mode<synchronous>, transform_indices = @transform_1, window_bounds = array<i64: 32, 3>}, {pipeline_mode = #tpu.pipeline_mode<synchronous>, transform_indices = @transform_2, window_bounds = array<i64: 32, 1>}, {pipeline_mode = #tpu.pipeline_mode<synchronous>, transform_indices = @transform_3, window_bounds = array<i64: 32, 32>}, {pipeline_mode = #tpu.pipeline_mode<synchronous>, transform_indices = @transform_4, window_bounds = array<i64: 32, 1>}, {pipeline_mode = #tpu.pipeline_mode<synchronous>, transform_indices = @transform_5, window_bounds = array<i64: 32, 32>}, {pipeline_mode = #tpu.pipeline_mode<synchronous>, transform_indices = @transform_6, window_bounds = array<i64: 32, 32>}, {pipeline_mode = #tpu.pipeline_mode<synchronous>, transform_indices = @transform_7, window_bounds = array<i64: 32, 1>}, {pipeline_mode = #tpu.pipeline_mode<synchronous>, transform_indices = @transform_8, window_bounds = array<i64: 1, 32>}, {pipeline_mode = #tpu.pipeline_mode<synchronous>, transform_indices = @transform_9, window_bounds = array<i64: 1, 1>}, {transform_indices = @transform_10, window_bounds = array<i64: 1, 1, 1>}]} {
    %c0 = arith.constant 0 : index
    %c0_0 = arith.constant 0 : index
    %c0_1 = arith.constant 0 : index
    %0 = vector.load %arg2[%c0, %c0_0, %c0_1] : memref<1x4x8xf32, #tpu.memory_space<vmem>>, vector<1x4x8xf32>
    %1 = vector.extract_strided_slice %0 {offsets = [0, 3, 0], sizes = [1, 1, 8], strides = [1, 1, 1]} : vector<1x4x8xf32> to vector<1x1x8xf32>
    %cst = arith.constant 0.000000e+00 : f32
    %2 = vector.broadcast %cst : f32 to vector<1x1x8xf32>
    %3 = arith.cmpf oge, %1, %2 : vector<1x1x8xf32>
    %4 = arith.extui %3 : vector<1x1x8xi1> to vector<1x1x8xi32>
    %5 = arith.sitofp %4 : vector<1x1x8xi32> to vector<1x1x8xf32>
    %6 = tpu.iota {dimensions = array<i32: 1>} : vector<1x3x1xi32>
    %c2_i32 = arith.constant 2 : i32
    %7 = vector.broadcast %c2_i32 : i32 to vector<1x3x1xi32>
    %8 = arith.cmpi eq, %6, %7 : vector<1x3x1xi32>
    %cst_2 = arith.constant 1.000000e+00 : f32
    %9 = vector.broadcast %cst_2 : f32 to vector<1x1x8xf32>
    %10 = arith.subf %5, %9 : vector<1x1x8xf32>
    %cst_3 = arith.constant 5.000000e-01 : f32
    %11 = vector.broadcast %cst_3 : f32 to vector<1x1x8xf32>
    %12 = arith.mulf %11, %10 : vector<1x1x8xf32>
    %cst_4 = arith.constant 0.000000e+00 : f32
    %13 = vector.shape_cast %8 : vector<1x3x1xi1> to vector<1x3x1xi1>
    %14 = vector.broadcast %13 : vector<1x3x1xi1> to vector<1x3x8xi1>
    %15 = vector.shape_cast %12 : vector<1x1x8xf32> to vector<1x1x8xf32>
    %16 = vector.broadcast %15 : vector<1x1x8xf32> to vector<1x3x8xf32>
    %17 = vector.broadcast %cst_4 : f32 to vector<1x3x8xf32>
    %18 = arith.select %14, %16, %17 : vector<1x3x8xi1>, vector<1x3x8xf32>
    %19 = vector.extract_strided_slice %0 {offsets = [0, 0, 0], sizes = [1, 3, 8], strides = [1, 1, 1]} : vector<1x4x8xf32> to vector<1x3x8xf32>
    %20 = vector.broadcast %5 : vector<1x1x8xf32> to vector<1x3x8xf32>
    %21 = arith.mulf %19, %20 : vector<1x3x8xf32>
    %22 = arith.addf %21, %18 : vector<1x3x8xf32>
    %c0_5 = arith.constant 0 : index
    %c0_6 = arith.constant 0 : index
    %23 = vector.load %arg3[%c0_5, %c0_6] : memref<32x3xf32, #tpu.memory_space<vmem>>, vector<32x3xf32>
    %c0_7 = arith.constant 0 : index
    %c0_8 = arith.constant 0 : index
    %24 = vector.load %arg4[%c0_7, %c0_8] : memref<32x1xf32, #tpu.memory_space<vmem>>, vector<32x1xf32>
    %25 = vector.shape_cast %23 : vector<32x3xf32> to vector<1x32x3xf32>
    "tpu.trace_start"() <{level = 10 : i32, message = "boi,bin->bon"}> : () -> ()
    %cst_9 = arith.constant dense<0.000000e+00> : vector<1x32x8xf32>
    %26 = tpu.matmul %25, %22, %cst_9 {dimension_numbers = #tpu.dot_dimension_numbers<[2], [1], [1], [2], [0, 0, 0, 1, 1, 2], [0], [0]>} : vector<1x32x3xf32>, vector<1x3x8xf32>, vector<1x32x8xf32> -> vector<1x32x8xf32>
    "tpu.trace_stop"() : () -> ()
    %27 = vector.shape_cast %24 : vector<32x1xf32> to vector<1x32x1xf32>
    %28 = vector.broadcast %27 : vector<1x32x1xf32> to vector<1x32x8xf32>
    %29 = arith.addf %26, %28 : vector<1x32x8xf32>
    %cst_10 = arith.constant 0.000000e+00 : f32
    %30 = vector.broadcast %cst_10 : f32 to vector<1x32x8xf32>
    %31 = arith.cmpf oge, %29, %30 : vector<1x32x8xf32>
    %cst_11 = arith.constant 2.000000e-01 : f32
    %32 = vector.broadcast %cst_11 : f32 to vector<1x32x8xf32>
    %33 = arith.mulf %32, %29 : vector<1x32x8xf32>
    %34 = arith.select %31, %29, %33 : vector<1x32x8xi1>, vector<1x32x8xf32>
    %c0_12 = arith.constant 0 : index
    %c0_13 = arith.constant 0 : index
    %35 = vector.load %arg5[%c0_12, %c0_13] : memref<32x32xf32, #tpu.memory_space<vmem>>, vector<32x32xf32>
    %c0_14 = arith.constant 0 : index
    %c0_15 = arith.constant 0 : index
    %36 = vector.load %arg6[%c0_14, %c0_15] : memref<32x1xf32, #tpu.memory_space<vmem>>, vector<32x1xf32>
    %37 = vector.shape_cast %35 : vector<32x32xf32> to vector<1x32x32xf32>
    "tpu.trace_start"() <{level = 10 : i32, message = "boi,bin->bon"}> : () -> ()
    %cst_16 = arith.constant dense<0.000000e+00> : vector<1x32x8xf32>
    %38 = tpu.matmul %37, %34, %cst_16 {dimension_numbers = #tpu.dot_dimension_numbers<[2], [1], [1], [2], [0, 0, 0, 1, 1, 2], [0], [0]>} : vector<1x32x32xf32>, vector<1x32x8xf32>, vector<1x32x8xf32> -> vector<1x32x8xf32>
    "tpu.trace_stop"() : () -> ()
    %39 = vector.shape_cast %36 : vector<32x1xf32> to vector<1x32x1xf32>
    %40 = vector.broadcast %39 : vector<1x32x1xf32> to vector<1x32x8xf32>
    %41 = arith.addf %38, %40 : vector<1x32x8xf32>
    %cst_17 = arith.constant 0.000000e+00 : f32
    %42 = vector.broadcast %cst_17 : f32 to vector<1x32x8xf32>
    %43 = arith.cmpf oge, %41, %42 : vector<1x32x8xf32>
    %cst_18 = arith.constant 2.000000e-01 : f32
    %44 = vector.broadcast %cst_18 : f32 to vector<1x32x8xf32>
    %45 = arith.mulf %44, %41 : vector<1x32x8xf32>
    %46 = arith.select %43, %41, %45 : vector<1x32x8xi1>, vector<1x32x8xf32>
    %cst_19 = arith.constant dense<0xFF800000> : vector<1x32xf32>
    %47 = vector.multi_reduction <maximumf>, %46, %cst_19 [2] : vector<1x32x8xf32> to vector<1x32xf32>
    %48 = vector.shape_cast %47 : vector<1x32xf32> to vector<1x32x1xf32>
    %cst_20 = arith.constant dense<0.000000e+00> : vector<1x32xf32>
    %49 = vector.multi_reduction <add>, %46, %cst_20 [2] : vector<1x32x8xf32> to vector<1x32xf32>
    %50 = vector.shape_cast %49 : vector<1x32xf32> to vector<1x32x1xf32>
    %c0_i32 = arith.constant 0 : i32
    %51 = arith.cmpi eq, %arg1, %c0_i32 : i32
    %52 = arith.extui %51 : i1 to i32
    %c0_i32_21 = arith.constant 0 : i32
    %53 = arith.cmpi ne, %52, %c0_i32_21 : i32
    scf.if %53 {
      %cst_36 = arith.constant 0xFF800000 : f32
      %63 = vector.broadcast %cst_36 : f32 to vector<1x32x1xf32>
      %c0_37 = arith.constant 0 : index
      %c0_38 = arith.constant 0 : index
      %c0_39 = arith.constant 0 : index
      %64 = vector.load %arg13[%c0_37, %c0_38, %c0_39] : memref<1x32x1xf32, #tpu.memory_space<vmem>>, vector<1x32x1xf32>
      tpu.vector_store %arg13[%c0_37, %c0_38, %c0_39], %63 {strides = array<i32>} : memref<1x32x1xf32, #tpu.memory_space<vmem>>, vector<1x32x1xf32>,
      %cst_40 = arith.constant 0.000000e+00 : f32
      %65 = vector.broadcast %cst_40 : f32 to vector<1x32x1xf32>
      %c0_41 = arith.constant 0 : index
      %c0_42 = arith.constant 0 : index
      %c0_43 = arith.constant 0 : index
      %66 = vector.load %arg14[%c0_41, %c0_42, %c0_43] : memref<1x32x1xf32, #tpu.memory_space<vmem>>, vector<1x32x1xf32>
      tpu.vector_store %arg14[%c0_41, %c0_42, %c0_43], %65 {strides = array<i32>} : memref<1x32x1xf32, #tpu.memory_space<vmem>>, vector<1x32x1xf32>,
    } else {
    }
    %c0_22 = arith.constant 0 : index
    %c0_23 = arith.constant 0 : index
    %c0_24 = arith.constant 0 : index
    %54 = vector.load %arg13[%c0_22, %c0_23, %c0_24] : memref<1x32x1xf32, #tpu.memory_space<vmem>>, vector<1x32x1xf32>
    %55 = arith.maximumf %54, %48 : vector<1x32x1xf32>
    %c0_25 = arith.constant 0 : index
    %c0_26 = arith.constant 0 : index
    %c0_27 = arith.constant 0 : index
    %56 = vector.load %arg13[%c0_25, %c0_26, %c0_27] : memref<1x32x1xf32, #tpu.memory_space<vmem>>, vector<1x32x1xf32>
    tpu.vector_store %arg13[%c0_25, %c0_26, %c0_27], %55 {strides = array<i32>} : memref<1x32x1xf32, #tpu.memory_space<vmem>>, vector<1x32x1xf32>,
    %c0_28 = arith.constant 0 : index
    %c0_29 = arith.constant 0 : index
    %c0_30 = arith.constant 0 : index
    %57 = vector.load %arg14[%c0_28, %c0_29, %c0_30] : memref<1x32x1xf32, #tpu.memory_space<vmem>>, vector<1x32x1xf32>
    %58 = arith.addf %57, %50 : vector<1x32x1xf32>
    %c0_31 = arith.constant 0 : index
    %c0_32 = arith.constant 0 : index
    %c0_33 = arith.constant 0 : index
    %59 = vector.load %arg14[%c0_31, %c0_32, %c0_33] : memref<1x32x1xf32, #tpu.memory_space<vmem>>, vector<1x32x1xf32>
    tpu.vector_store %arg14[%c0_31, %c0_32, %c0_33], %58 {strides = array<i32>} : memref<1x32x1xf32, #tpu.memory_space<vmem>>, vector<1x32x1xf32>,
    %c0_i32_34 = arith.constant 0 : i32
    %60 = arith.cmpi eq, %arg1, %c0_i32_34 : i32
    %61 = arith.extui %60 : i1 to i32
    %c0_i32_35 = arith.constant 0 : i32
    %62 = arith.cmpi ne, %61, %c0_i32_35 : i32
    scf.if %62 {
      %c0_36 = arith.constant 0 : index
      %c0_37 = arith.constant 0 : index
      %c0_38 = arith.constant 0 : index
      %63 = vector.load %arg13[%c0_36, %c0_37, %c0_38] : memref<1x32x1xf32, #tpu.memory_space<vmem>>, vector<1x32x1xf32>
      %c0_39 = arith.constant 0 : index
      %c0_40 = arith.constant 0 : index
      %c0_41 = arith.constant 0 : index
      %64 = vector.load %arg14[%c0_39, %c0_40, %c0_41] : memref<1x32x1xf32, #tpu.memory_space<vmem>>, vector<1x32x1xf32>
      %cst_42 = arith.constant 1.250000e-01 : f32
      %65 = vector.broadcast %cst_42 : f32 to vector<1x32x1xf32>
      %66 = arith.mulf %64, %65 : vector<1x32x1xf32>
      %c0_43 = arith.constant 0 : index
      %c0_44 = arith.constant 0 : index
      %67 = vector.load %arg7[%c0_43, %c0_44] : memref<32x32xf32, #tpu.memory_space<vmem>>, vector<32x32xf32>
      %c0_45 = arith.constant 0 : index
      %c0_46 = arith.constant 0 : index
      %68 = vector.load %arg8[%c0_45, %c0_46] : memref<32x32xf32, #tpu.memory_space<vmem>>, vector<32x32xf32>
      %c0_47 = arith.constant 0 : index
      %c0_48 = arith.constant 0 : index
      %69 = vector.load %arg9[%c0_47, %c0_48] : memref<32x1xf32, #tpu.memory_space<vmem>>, vector<32x1xf32>
      %70 = vector.shape_cast %69 : vector<32x1xf32> to vector<1x32x1xf32>
      %71 = vector.extract_strided_slice %63 {offsets = [0, 0, 0], sizes = [1, 1, 1], strides = [1, 1, 1]} : vector<1x32x1xf32> to vector<1x1x1xf32>
      %72 = vector.extract_strided_slice %67 {offsets = [0, 0], sizes = [32, 1], strides = [1, 1]} : vector<32x32xf32> to vector<32x1xf32>
      %73 = vector.shape_cast %72 : vector<32x1xf32> to vector<1x32x1xf32>
      %74 = vector.broadcast %71 : vector<1x1x1xf32> to vector<1x32x1xf32>
      %75 = arith.mulf %74, %73 : vector<1x32x1xf32>
      %76 = arith.addf %70, %75 : vector<1x32x1xf32>
      %77 = vector.extract_strided_slice %66 {offsets = [0, 0, 0], sizes = [1, 1, 1], strides = [1, 1, 1]} : vector<1x32x1xf32> to vector<1x1x1xf32>
      %78 = vector.extract_strided_slice %68 {offsets = [0, 0], sizes = [32, 1], strides = [1, 1]} : vector<32x32xf32> to vector<32x1xf32>
      %79 = vector.shape_cast %78 : vector<32x1xf32> to vector<1x32x1xf32>
      %80 = vector.broadcast %77 : vector<1x1x1xf32> to vector<1x32x1xf32>
      %81 = arith.mulf %80, %79 : vector<1x32x1xf32>
      %82 = arith.addf %76, %81 : vector<1x32x1xf32>
      %83 = vector.extract_strided_slice %63 {offsets = [0, 1, 0], sizes = [1, 1, 1], strides = [1, 1, 1]} : vector<1x32x1xf32> to vector<1x1x1xf32>
      %84 = vector.extract_strided_slice %67 {offsets = [0, 1], sizes = [32, 1], strides = [1, 1]} : vector<32x32xf32> to vector<32x1xf32>
      %85 = vector.shape_cast %84 : vector<32x1xf32> to vector<1x32x1xf32>
      %86 = vector.broadcast %83 : vector<1x1x1xf32> to vector<1x32x1xf32>
      %87 = arith.mulf %86, %85 : vector<1x32x1xf32>
      %88 = arith.addf %82, %87 : vector<1x32x1xf32>
      %89 = vector.extract_strided_slice %66 {offsets = [0, 1, 0], sizes = [1, 1, 1], strides = [1, 1, 1]} : vector<1x32x1xf32> to vector<1x1x1xf32>
      %90 = vector.extract_strided_slice %68 {offsets = [0, 1], sizes = [32, 1], strides = [1, 1]} : vector<32x32xf32> to vector<32x1xf32>
      %91 = vector.shape_cast %90 : vector<32x1xf32> to vector<1x32x1xf32>
      %92 = vector.broadcast %89 : vector<1x1x1xf32> to vector<1x32x1xf32>
      %93 = arith.mulf %92, %91 : vector<1x32x1xf32>
      %94 = arith.addf %88, %93 : vector<1x32x1xf32>
      %95 = vector.extract_strided_slice %63 {offsets = [0, 2, 0], sizes = [1, 1, 1], strides = [1, 1, 1]} : vector<1x32x1xf32> to vector<1x1x1xf32>
      %96 = vector.extract_strided_slice %67 {offsets = [0, 2], sizes = [32, 1], strides = [1, 1]} : vector<32x32xf32> to vector<32x1xf32>
      %97 = vector.shape_cast %96 : vector<32x1xf32> to vector<1x32x1xf32>
      %98 = vector.broadcast %95 : vector<1x1x1xf32> to vector<1x32x1xf32>
      %99 = arith.mulf %98, %97 : vector<1x32x1xf32>
      %100 = arith.addf %94, %99 : vector<1x32x1xf32>
      %101 = vector.extract_strided_slice %66 {offsets = [0, 2, 0], sizes = [1, 1, 1], strides = [1, 1, 1]} : vector<1x32x1xf32> to vector<1x1x1xf32>
      %102 = vector.extract_strided_slice %68 {offsets = [0, 2], sizes = [32, 1], strides = [1, 1]} : vector<32x32xf32> to vector<32x1xf32>
      %103 = vector.shape_cast %102 : vector<32x1xf32> to vector<1x32x1xf32>
      %104 = vector.broadcast %101 : vector<1x1x1xf32> to vector<1x32x1xf32>
      %105 = arith.mulf %104, %103 : vector<1x32x1xf32>
      %106 = arith.addf %100, %105 : vector<1x32x1xf32>
      %107 = vector.extract_strided_slice %63 {offsets = [0, 3, 0], sizes = [1, 1, 1], strides = [1, 1, 1]} : vector<1x32x1xf32> to vector<1x1x1xf32>
      %108 = vector.extract_strided_slice %67 {offsets = [0, 3], sizes = [32, 1], strides = [1, 1]} : vector<32x32xf32> to vector<32x1xf32>
      %109 = vector.shape_cast %108 : vector<32x1xf32> to vector<1x32x1xf32>
      %110 = vector.broadcast %107 : vector<1x1x1xf32> to vector<1x32x1xf32>
      %111 = arith.mulf %110, %109 : vector<1x32x1xf32>
      %112 = arith.addf %106, %111 : vector<1x32x1xf32>
      %113 = vector.extract_strided_slice %66 {offsets = [0, 3, 0], sizes = [1, 1, 1], strides = [1, 1, 1]} : vector<1x32x1xf32> to vector<1x1x1xf32>
      %114 = vector.extract_strided_slice %68 {offsets = [0, 3], sizes = [32, 1], strides = [1, 1]} : vector<32x32xf32> to vector<32x1xf32>
      %115 = vector.shape_cast %114 : vector<32x1xf32> to vector<1x32x1xf32>
      %116 = vector.broadcast %113 : vector<1x1x1xf32> to vector<1x32x1xf32>
      %117 = arith.mulf %116, %115 : vector<1x32x1xf32>
      %118 = arith.addf %112, %117 : vector<1x32x1xf32>
      %119 = vector.extract_strided_slice %63 {offsets = [0, 4, 0], sizes = [1, 1, 1], strides = [1, 1, 1]} : vector<1x32x1xf32> to vector<1x1x1xf32>
      %120 = vector.extract_strided_slice %67 {offsets = [0, 4], sizes = [32, 1], strides = [1, 1]} : vector<32x32xf32> to vector<32x1xf32>
      %121 = vector.shape_cast %120 : vector<32x1xf32> to vector<1x32x1xf32>
      %122 = vector.broadcast %119 : vector<1x1x1xf32> to vector<1x32x1xf32>
      %123 = arith.mulf %122, %121 : vector<1x32x1xf32>
      %124 = arith.addf %118, %123 : vector<1x32x1xf32>
      %125 = vector.extract_strided_slice %66 {offsets = [0, 4, 0], sizes = [1, 1, 1], strides = [1, 1, 1]} : vector<1x32x1xf32> to vector<1x1x1xf32>
      %126 = vector.extract_strided_slice %68 {offsets = [0, 4], sizes = [32, 1], strides = [1, 1]} : vector<32x32xf32> to vector<32x1xf32>
      %127 = vector.shape_cast %126 : vector<32x1xf32> to vector<1x32x1xf32>
      %128 = vector.broadcast %125 : vector<1x1x1xf32> to vector<1x32x1xf32>
      %129 = arith.mulf %128, %127 : vector<1x32x1xf32>
      %130 = arith.addf %124, %129 : vector<1x32x1xf32>
      %131 = vector.extract_strided_slice %63 {offsets = [0, 5, 0], sizes = [1, 1, 1], strides = [1, 1, 1]} : vector<1x32x1xf32> to vector<1x1x1xf32>
      %132 = vector.extract_strided_slice %67 {offsets = [0, 5], sizes = [32, 1], strides = [1, 1]} : vector<32x32xf32> to vector<32x1xf32>
      %133 = vector.shape_cast %132 : vector<32x1xf32> to vector<1x32x1xf32>
      %134 = vector.broadcast %131 : vector<1x1x1xf32> to vector<1x32x1xf32>
      %135 = arith.mulf %134, %133 : vector<1x32x1xf32>
      %136 = arith.addf %130, %135 : vector<1x32x1xf32>
      %137 = vector.extract_strided_slice %66 {offsets = [0, 5, 0], sizes = [1, 1, 1], strides = [1, 1, 1]} : vector<1x32x1xf32> to vector<1x1x1xf32>
      %138 = vector.extract_strided_slice %68 {offsets = [0, 5], sizes = [32, 1], strides = [1, 1]} : vector<32x32xf32> to vector<32x1xf32>
      %139 = vector.shape_cast %138 : vector<32x1xf32> to vector<1x32x1xf32>
      %140 = vector.broadcast %137 : vector<1x1x1xf32> to vector<1x32x1xf32>
      %141 = arith.mulf %140, %139 : vector<1x32x1xf32>
      %142 = arith.addf %136, %141 : vector<1x32x1xf32>
      %143 = vector.extract_strided_slice %63 {offsets = [0, 6, 0], sizes = [1, 1, 1], strides = [1, 1, 1]} : vector<1x32x1xf32> to vector<1x1x1xf32>
      %144 = vector.extract_strided_slice %67 {offsets = [0, 6], sizes = [32, 1], strides = [1, 1]} : vector<32x32xf32> to vector<32x1xf32>
      %145 = vector.shape_cast %144 : vector<32x1xf32> to vector<1x32x1xf32>
      %146 = vector.broadcast %143 : vector<1x1x1xf32> to vector<1x32x1xf32>
      %147 = arith.mulf %146, %145 : vector<1x32x1xf32>
      %148 = arith.addf %142, %147 : vector<1x32x1xf32>
      %149 = vector.extract_strided_slice %66 {offsets = [0, 6, 0], sizes = [1, 1, 1], strides = [1, 1, 1]} : vector<1x32x1xf32> to vector<1x1x1xf32>
      %150 = vector.extract_strided_slice %68 {offsets = [0, 6], sizes = [32, 1], strides = [1, 1]} : vector<32x32xf32> to vector<32x1xf32>
      %151 = vector.shape_cast %150 : vector<32x1xf32> to vector<1x32x1xf32>
      %152 = vector.broadcast %149 : vector<1x1x1xf32> to vector<1x32x1xf32>
      %153 = arith.mulf %152, %151 : vector<1x32x1xf32>
      %154 = arith.addf %148, %153 : vector<1x32x1xf32>
      %155 = vector.extract_strided_slice %63 {offsets = [0, 7, 0], sizes = [1, 1, 1], strides = [1, 1, 1]} : vector<1x32x1xf32> to vector<1x1x1xf32>
      %156 = vector.extract_strided_slice %67 {offsets = [0, 7], sizes = [32, 1], strides = [1, 1]} : vector<32x32xf32> to vector<32x1xf32>
      %157 = vector.shape_cast %156 : vector<32x1xf32> to vector<1x32x1xf32>
      %158 = vector.broadcast %155 : vector<1x1x1xf32> to vector<1x32x1xf32>
      %159 = arith.mulf %158, %157 : vector<1x32x1xf32>
      %160 = arith.addf %154, %159 : vector<1x32x1xf32>
      %161 = vector.extract_strided_slice %66 {offsets = [0, 7, 0], sizes = [1, 1, 1], strides = [1, 1, 1]} : vector<1x32x1xf32> to vector<1x1x1xf32>
      %162 = vector.extract_strided_slice %68 {offsets = [0, 7], sizes = [32, 1], strides = [1, 1]} : vector<32x32xf32> to vector<32x1xf32>
      %163 = vector.shape_cast %162 : vector<32x1xf32> to vector<1x32x1xf32>
      %164 = vector.broadcast %161 : vector<1x1x1xf32> to vector<1x32x1xf32>
      %165 = arith.mulf %164, %163 : vector<1x32x1xf32>
      %166 = arith.addf %160, %165 : vector<1x32x1xf32>
      %167 = vector.extract_strided_slice %63 {offsets = [0, 8, 0], sizes = [1, 1, 1], strides = [1, 1, 1]} : vector<1x32x1xf32> to vector<1x1x1xf32>
      %168 = vector.extract_strided_slice %67 {offsets = [0, 8], sizes = [32, 1], strides = [1, 1]} : vector<32x32xf32> to vector<32x1xf32>
      %169 = vector.shape_cast %168 : vector<32x1xf32> to vector<1x32x1xf32>
      %170 = vector.broadcast %167 : vector<1x1x1xf32> to vector<1x32x1xf32>
      %171 = arith.mulf %170, %169 : vector<1x32x1xf32>
      %172 = arith.addf %166, %171 : vector<1x32x1xf32>
      %173 = vector.extract_strided_slice %66 {offsets = [0, 8, 0], sizes = [1, 1, 1], strides = [1, 1, 1]} : vector<1x32x1xf32> to vector<1x1x1xf32>
      %174 = vector.extract_strided_slice %68 {offsets = [0, 8], sizes = [32, 1], strides = [1, 1]} : vector<32x32xf32> to vector<32x1xf32>
      %175 = vector.shape_cast %174 : vector<32x1xf32> to vector<1x32x1xf32>
      %176 = vector.broadcast %173 : vector<1x1x1xf32> to vector<1x32x1xf32>
      %177 = arith.mulf %176, %175 : vector<1x32x1xf32>
      %178 = arith.addf %172, %177 : vector<1x32x1xf32>
      %179 = vector.extract_strided_slice %63 {offsets = [0, 9, 0], sizes = [1, 1, 1], strides = [1, 1, 1]} : vector<1x32x1xf32> to vector<1x1x1xf32>
      %180 = vector.extract_strided_slice %67 {offsets = [0, 9], sizes = [32, 1], strides = [1, 1]} : vector<32x32xf32> to vector<32x1xf32>
      %181 = vector.shape_cast %180 : vector<32x1xf32> to vector<1x32x1xf32>
      %182 = vector.broadcast %179 : vector<1x1x1xf32> to vector<1x32x1xf32>
      %183 = arith.mulf %182, %181 : vector<1x32x1xf32>
      %184 = arith.addf %178, %183 : vector<1x32x1xf32>
      %185 = vector.extract_strided_slice %66 {offsets = [0, 9, 0], sizes = [1, 1, 1], strides = [1, 1, 1]} : vector<1x32x1xf32> to vector<1x1x1xf32>
      %186 = vector.extract_strided_slice %68 {offsets = [0, 9], sizes = [32, 1], strides = [1, 1]} : vector<32x32xf32> to vector<32x1xf32>
      %187 = vector.shape_cast %186 : vector<32x1xf32> to vector<1x32x1xf32>
      %188 = vector.broadcast %185 : vector<1x1x1xf32> to vector<1x32x1xf32>
      %189 = arith.mulf %188, %187 : vector<1x32x1xf32>
      %190 = arith.addf %184, %189 : vector<1x32x1xf32>
      %191 = vector.extract_strided_slice %63 {offsets = [0, 10, 0], sizes = [1, 1, 1], strides = [1, 1, 1]} : vector<1x32x1xf32> to vector<1x1x1xf32>
      %192 = vector.extract_strided_slice %67 {offsets = [0, 10], sizes = [32, 1], strides = [1, 1]} : vector<32x32xf32> to vector<32x1xf32>
      %193 = vector.shape_cast %192 : vector<32x1xf32> to vector<1x32x1xf32>
      %194 = vector.broadcast %191 : vector<1x1x1xf32> to vector<1x32x1xf32>
      %195 = arith.mulf %194, %193 : vector<1x32x1xf32>
      %196 = arith.addf %190, %195 : vector<1x32x1xf32>
      %197 = vector.extract_strided_slice %66 {offsets = [0, 10, 0], sizes = [1, 1, 1], strides = [1, 1, 1]} : vector<1x32x1xf32> to vector<1x1x1xf32>
      %198 = vector.extract_strided_slice %68 {offsets = [0, 10], sizes = [32, 1], strides = [1, 1]} : vector<32x32xf32> to vector<32x1xf32>
      %199 = vector.shape_cast %198 : vector<32x1xf32> to vector<1x32x1xf32>
      %200 = vector.broadcast %197 : vector<1x1x1xf32> to vector<1x32x1xf32>
      %201 = arith.mulf %200, %199 : vector<1x32x1xf32>
      %202 = arith.addf %196, %201 : vector<1x32x1xf32>
      %203 = vector.extract_strided_slice %63 {offsets = [0, 11, 0], sizes = [1, 1, 1], strides = [1, 1, 1]} : vector<1x32x1xf32> to vector<1x1x1xf32>
      %204 = vector.extract_strided_slice %67 {offsets = [0, 11], sizes = [32, 1], strides = [1, 1]} : vector<32x32xf32> to vector<32x1xf32>
      %205 = vector.shape_cast %204 : vector<32x1xf32> to vector<1x32x1xf32>
      %206 = vector.broadcast %203 : vector<1x1x1xf32> to vector<1x32x1xf32>
      %207 = arith.mulf %206, %205 : vector<1x32x1xf32>
      %208 = arith.addf %202, %207 : vector<1x32x1xf32>
      %209 = vector.extract_strided_slice %66 {offsets = [0, 11, 0], sizes = [1, 1, 1], strides = [1, 1, 1]} : vector<1x32x1xf32> to vector<1x1x1xf32>
      %210 = vector.extract_strided_slice %68 {offsets = [0, 11], sizes = [32, 1], strides = [1, 1]} : vector<32x32xf32> to vector<32x1xf32>
      %211 = vector.shape_cast %210 : vector<32x1xf32> to vector<1x32x1xf32>
      %212 = vector.broadcast %209 : vector<1x1x1xf32> to vector<1x32x1xf32>
      %213 = arith.mulf %212, %211 : vector<1x32x1xf32>
      %214 = arith.addf %208, %213 : vector<1x32x1xf32>
      %215 = vector.extract_strided_slice %63 {offsets = [0, 12, 0], sizes = [1, 1, 1], strides = [1, 1, 1]} : vector<1x32x1xf32> to vector<1x1x1xf32>
      %216 = vector.extract_strided_slice %67 {offsets = [0, 12], sizes = [32, 1], strides = [1, 1]} : vector<32x32xf32> to vector<32x1xf32>
      %217 = vector.shape_cast %216 : vector<32x1xf32> to vector<1x32x1xf32>
      %218 = vector.broadcast %215 : vector<1x1x1xf32> to vector<1x32x1xf32>
      %219 = arith.mulf %218, %217 : vector<1x32x1xf32>
      %220 = arith.addf %214, %219 : vector<1x32x1xf32>
      %221 = vector.extract_strided_slice %66 {offsets = [0, 12, 0], sizes = [1, 1, 1], strides = [1, 1, 1]} : vector<1x32x1xf32> to vector<1x1x1xf32>
      %222 = vector.extract_strided_slice %68 {offsets = [0, 12], sizes = [32, 1], strides = [1, 1]} : vector<32x32xf32> to vector<32x1xf32>
      %223 = vector.shape_cast %222 : vector<32x1xf32> to vector<1x32x1xf32>
      %224 = vector.broadcast %221 : vector<1x1x1xf32> to vector<1x32x1xf32>
      %225 = arith.mulf %224, %223 : vector<1x32x1xf32>
      %226 = arith.addf %220, %225 : vector<1x32x1xf32>
      %227 = vector.extract_strided_slice %63 {offsets = [0, 13, 0], sizes = [1, 1, 1], strides = [1, 1, 1]} : vector<1x32x1xf32> to vector<1x1x1xf32>
      %228 = vector.extract_strided_slice %67 {offsets = [0, 13], sizes = [32, 1], strides = [1, 1]} : vector<32x32xf32> to vector<32x1xf32>
      %229 = vector.shape_cast %228 : vector<32x1xf32> to vector<1x32x1xf32>
      %230 = vector.broadcast %227 : vector<1x1x1xf32> to vector<1x32x1xf32>
      %231 = arith.mulf %230, %229 : vector<1x32x1xf32>
      %232 = arith.addf %226, %231 : vector<1x32x1xf32>
      %233 = vector.extract_strided_slice %66 {offsets = [0, 13, 0], sizes = [1, 1, 1], strides = [1, 1, 1]} : vector<1x32x1xf32> to vector<1x1x1xf32>
      %234 = vector.extract_strided_slice %68 {offsets = [0, 13], sizes = [32, 1], strides = [1, 1]} : vector<32x32xf32> to vector<32x1xf32>
      %235 = vector.shape_cast %234 : vector<32x1xf32> to vector<1x32x1xf32>
      %236 = vector.broadcast %233 : vector<1x1x1xf32> to vector<1x32x1xf32>
      %237 = arith.mulf %236, %235 : vector<1x32x1xf32>
      %238 = arith.addf %232, %237 : vector<1x32x1xf32>
      %239 = vector.extract_strided_slice %63 {offsets = [0, 14, 0], sizes = [1, 1, 1], strides = [1, 1, 1]} : vector<1x32x1xf32> to vector<1x1x1xf32>
      %240 = vector.extract_strided_slice %67 {offsets = [0, 14], sizes = [32, 1], strides = [1, 1]} : vector<32x32xf32> to vector<32x1xf32>
      %241 = vector.shape_cast %240 : vector<32x1xf32> to vector<1x32x1xf32>
      %242 = vector.broadcast %239 : vector<1x1x1xf32> to vector<1x32x1xf32>
      %243 = arith.mulf %242, %241 : vector<1x32x1xf32>
      %244 = arith.addf %238, %243 : vector<1x32x1xf32>
      %245 = vector.extract_strided_slice %66 {offsets = [0, 14, 0], sizes = [1, 1, 1], strides = [1, 1, 1]} : vector<1x32x1xf32> to vector<1x1x1xf32>
      %246 = vector.extract_strided_slice %68 {offsets = [0, 14], sizes = [32, 1], strides = [1, 1]} : vector<32x32xf32> to vector<32x1xf32>
      %247 = vector.shape_cast %246 : vector<32x1xf32> to vector<1x32x1xf32>
      %248 = vector.broadcast %245 : vector<1x1x1xf32> to vector<1x32x1xf32>
      %249 = arith.mulf %248, %247 : vector<1x32x1xf32>
      %250 = arith.addf %244, %249 : vector<1x32x1xf32>
      %251 = vector.extract_strided_slice %63 {offsets = [0, 15, 0], sizes = [1, 1, 1], strides = [1, 1, 1]} : vector<1x32x1xf32> to vector<1x1x1xf32>
      %252 = vector.extract_strided_slice %67 {offsets = [0, 15], sizes = [32, 1], strides = [1, 1]} : vector<32x32xf32> to vector<32x1xf32>
      %253 = vector.shape_cast %252 : vector<32x1xf32> to vector<1x32x1xf32>
      %254 = vector.broadcast %251 : vector<1x1x1xf32> to vector<1x32x1xf32>
      %255 = arith.mulf %254, %253 : vector<1x32x1xf32>
      %256 = arith.addf %250, %255 : vector<1x32x1xf32>
      %257 = vector.extract_strided_slice %66 {offsets = [0, 15, 0], sizes = [1, 1, 1], strides = [1, 1, 1]} : vector<1x32x1xf32> to vector<1x1x1xf32>
      %258 = vector.extract_strided_slice %68 {offsets = [0, 15], sizes = [32, 1], strides = [1, 1]} : vector<32x32xf32> to vector<32x1xf32>
      %259 = vector.shape_cast %258 : vector<32x1xf32> to vector<1x32x1xf32>
      %260 = vector.broadcast %257 : vector<1x1x1xf32> to vector<1x32x1xf32>
      %261 = arith.mulf %260, %259 : vector<1x32x1xf32>
      %262 = arith.addf %256, %261 : vector<1x32x1xf32>
      %263 = vector.extract_strided_slice %63 {offsets = [0, 16, 0], sizes = [1, 1, 1], strides = [1, 1, 1]} : vector<1x32x1xf32> to vector<1x1x1xf32>
      %264 = vector.extract_strided_slice %67 {offsets = [0, 16], sizes = [32, 1], strides = [1, 1]} : vector<32x32xf32> to vector<32x1xf32>
      %265 = vector.shape_cast %264 : vector<32x1xf32> to vector<1x32x1xf32>
      %266 = vector.broadcast %263 : vector<1x1x1xf32> to vector<1x32x1xf32>
      %267 = arith.mulf %266, %265 : vector<1x32x1xf32>
      %268 = arith.addf %262, %267 : vector<1x32x1xf32>
      %269 = vector.extract_strided_slice %66 {offsets = [0, 16, 0], sizes = [1, 1, 1], strides = [1, 1, 1]} : vector<1x32x1xf32> to vector<1x1x1xf32>
      %270 = vector.extract_strided_slice %68 {offsets = [0, 16], sizes = [32, 1], strides = [1, 1]} : vector<32x32xf32> to vector<32x1xf32>
      %271 = vector.shape_cast %270 : vector<32x1xf32> to vector<1x32x1xf32>
      %272 = vector.broadcast %269 : vector<1x1x1xf32> to vector<1x32x1xf32>
      %273 = arith.mulf %272, %271 : vector<1x32x1xf32>
      %274 = arith.addf %268, %273 : vector<1x32x1xf32>
      %275 = vector.extract_strided_slice %63 {offsets = [0, 17, 0], sizes = [1, 1, 1], strides = [1, 1, 1]} : vector<1x32x1xf32> to vector<1x1x1xf32>
      %276 = vector.extract_strided_slice %67 {offsets = [0, 17], sizes = [32, 1], strides = [1, 1]} : vector<32x32xf32> to vector<32x1xf32>
      %277 = vector.shape_cast %276 : vector<32x1xf32> to vector<1x32x1xf32>
      %278 = vector.broadcast %275 : vector<1x1x1xf32> to vector<1x32x1xf32>
      %279 = arith.mulf %278, %277 : vector<1x32x1xf32>
      %280 = arith.addf %274, %279 : vector<1x32x1xf32>
      %281 = vector.extract_strided_slice %66 {offsets = [0, 17, 0], sizes = [1, 1, 1], strides = [1, 1, 1]} : vector<1x32x1xf32> to vector<1x1x1xf32>
      %282 = vector.extract_strided_slice %68 {offsets = [0, 17], sizes = [32, 1], strides = [1, 1]} : vector<32x32xf32> to vector<32x1xf32>
      %283 = vector.shape_cast %282 : vector<32x1xf32> to vector<1x32x1xf32>
      %284 = vector.broadcast %281 : vector<1x1x1xf32> to vector<1x32x1xf32>
      %285 = arith.mulf %284, %283 : vector<1x32x1xf32>
      %286 = arith.addf %280, %285 : vector<1x32x1xf32>
      %287 = vector.extract_strided_slice %63 {offsets = [0, 18, 0], sizes = [1, 1, 1], strides = [1, 1, 1]} : vector<1x32x1xf32> to vector<1x1x1xf32>
      %288 = vector.extract_strided_slice %67 {offsets = [0, 18], sizes = [32, 1], strides = [1, 1]} : vector<32x32xf32> to vector<32x1xf32>
      %289 = vector.shape_cast %288 : vector<32x1xf32> to vector<1x32x1xf32>
      %290 = vector.broadcast %287 : vector<1x1x1xf32> to vector<1x32x1xf32>
      %291 = arith.mulf %290, %289 : vector<1x32x1xf32>
      %292 = arith.addf %286, %291 : vector<1x32x1xf32>
      %293 = vector.extract_strided_slice %66 {offsets = [0, 18, 0], sizes = [1, 1, 1], strides = [1, 1, 1]} : vector<1x32x1xf32> to vector<1x1x1xf32>
      %294 = vector.extract_strided_slice %68 {offsets = [0, 18], sizes = [32, 1], strides = [1, 1]} : vector<32x32xf32> to vector<32x1xf32>
      %295 = vector.shape_cast %294 : vector<32x1xf32> to vector<1x32x1xf32>
      %296 = vector.broadcast %293 : vector<1x1x1xf32> to vector<1x32x1xf32>
      %297 = arith.mulf %296, %295 : vector<1x32x1xf32>
      %298 = arith.addf %292, %297 : vector<1x32x1xf32>
      %299 = vector.extract_strided_slice %63 {offsets = [0, 19, 0], sizes = [1, 1, 1], strides = [1, 1, 1]} : vector<1x32x1xf32> to vector<1x1x1xf32>
      %300 = vector.extract_strided_slice %67 {offsets = [0, 19], sizes = [32, 1], strides = [1, 1]} : vector<32x32xf32> to vector<32x1xf32>
      %301 = vector.shape_cast %300 : vector<32x1xf32> to vector<1x32x1xf32>
      %302 = vector.broadcast %299 : vector<1x1x1xf32> to vector<1x32x1xf32>
      %303 = arith.mulf %302, %301 : vector<1x32x1xf32>
      %304 = arith.addf %298, %303 : vector<1x32x1xf32>
      %305 = vector.extract_strided_slice %66 {offsets = [0, 19, 0], sizes = [1, 1, 1], strides = [1, 1, 1]} : vector<1x32x1xf32> to vector<1x1x1xf32>
      %306 = vector.extract_strided_slice %68 {offsets = [0, 19], sizes = [32, 1], strides = [1, 1]} : vector<32x32xf32> to vector<32x1xf32>
      %307 = vector.shape_cast %306 : vector<32x1xf32> to vector<1x32x1xf32>
      %308 = vector.broadcast %305 : vector<1x1x1xf32> to vector<1x32x1xf32>
      %309 = arith.mulf %308, %307 : vector<1x32x1xf32>
      %310 = arith.addf %304, %309 : vector<1x32x1xf32>
      %311 = vector.extract_strided_slice %63 {offsets = [0, 20, 0], sizes = [1, 1, 1], strides = [1, 1, 1]} : vector<1x32x1xf32> to vector<1x1x1xf32>
      %312 = vector.extract_strided_slice %67 {offsets = [0, 20], sizes = [32, 1], strides = [1, 1]} : vector<32x32xf32> to vector<32x1xf32>
      %313 = vector.shape_cast %312 : vector<32x1xf32> to vector<1x32x1xf32>
      %314 = vector.broadcast %311 : vector<1x1x1xf32> to vector<1x32x1xf32>
      %315 = arith.mulf %314, %313 : vector<1x32x1xf32>
      %316 = arith.addf %310, %315 : vector<1x32x1xf32>
      %317 = vector.extract_strided_slice %66 {offsets = [0, 20, 0], sizes = [1, 1, 1], strides = [1, 1, 1]} : vector<1x32x1xf32> to vector<1x1x1xf32>
      %318 = vector.extract_strided_slice %68 {offsets = [0, 20], sizes = [32, 1], strides = [1, 1]} : vector<32x32xf32> to vector<32x1xf32>
      %319 = vector.shape_cast %318 : vector<32x1xf32> to vector<1x32x1xf32>
      %320 = vector.broadcast %317 : vector<1x1x1xf32> to vector<1x32x1xf32>
      %321 = arith.mulf %320, %319 : vector<1x32x1xf32>
      %322 = arith.addf %316, %321 : vector<1x32x1xf32>
      %323 = vector.extract_strided_slice %63 {offsets = [0, 21, 0], sizes = [1, 1, 1], strides = [1, 1, 1]} : vector<1x32x1xf32> to vector<1x1x1xf32>
      %324 = vector.extract_strided_slice %67 {offsets = [0, 21], sizes = [32, 1], strides = [1, 1]} : vector<32x32xf32> to vector<32x1xf32>
      %325 = vector.shape_cast %324 : vector<32x1xf32> to vector<1x32x1xf32>
      %326 = vector.broadcast %323 : vector<1x1x1xf32> to vector<1x32x1xf32>
      %327 = arith.mulf %326, %325 : vector<1x32x1xf32>
      %328 = arith.addf %322, %327 : vector<1x32x1xf32>
      %329 = vector.extract_strided_slice %66 {offsets = [0, 21, 0], sizes = [1, 1, 1], strides = [1, 1, 1]} : vector<1x32x1xf32> to vector<1x1x1xf32>
      %330 = vector.extract_strided_slice %68 {offsets = [0, 21], sizes = [32, 1], strides = [1, 1]} : vector<32x32xf32> to vector<32x1xf32>
      %331 = vector.shape_cast %330 : vector<32x1xf32> to vector<1x32x1xf32>
      %332 = vector.broadcast %329 : vector<1x1x1xf32> to vector<1x32x1xf32>
      %333 = arith.mulf %332, %331 : vector<1x32x1xf32>
      %334 = arith.addf %328, %333 : vector<1x32x1xf32>
      %335 = vector.extract_strided_slice %63 {offsets = [0, 22, 0], sizes = [1, 1, 1], strides = [1, 1, 1]} : vector<1x32x1xf32> to vector<1x1x1xf32>
      %336 = vector.extract_strided_slice %67 {offsets = [0, 22], sizes = [32, 1], strides = [1, 1]} : vector<32x32xf32> to vector<32x1xf32>
      %337 = vector.shape_cast %336 : vector<32x1xf32> to vector<1x32x1xf32>
      %338 = vector.broadcast %335 : vector<1x1x1xf32> to vector<1x32x1xf32>
      %339 = arith.mulf %338, %337 : vector<1x32x1xf32>
      %340 = arith.addf %334, %339 : vector<1x32x1xf32>
      %341 = vector.extract_strided_slice %66 {offsets = [0, 22, 0], sizes = [1, 1, 1], strides = [1, 1, 1]} : vector<1x32x1xf32> to vector<1x1x1xf32>
      %342 = vector.extract_strided_slice %68 {offsets = [0, 22], sizes = [32, 1], strides = [1, 1]} : vector<32x32xf32> to vector<32x1xf32>
      %343 = vector.shape_cast %342 : vector<32x1xf32> to vector<1x32x1xf32>
      %344 = vector.broadcast %341 : vector<1x1x1xf32> to vector<1x32x1xf32>
      %345 = arith.mulf %344, %343 : vector<1x32x1xf32>
      %346 = arith.addf %340, %345 : vector<1x32x1xf32>
      %347 = vector.extract_strided_slice %63 {offsets = [0, 23, 0], sizes = [1, 1, 1], strides = [1, 1, 1]} : vector<1x32x1xf32> to vector<1x1x1xf32>
      %348 = vector.extract_strided_slice %67 {offsets = [0, 23], sizes = [32, 1], strides = [1, 1]} : vector<32x32xf32> to vector<32x1xf32>
      %349 = vector.shape_cast %348 : vector<32x1xf32> to vector<1x32x1xf32>
      %350 = vector.broadcast %347 : vector<1x1x1xf32> to vector<1x32x1xf32>
      %351 = arith.mulf %350, %349 : vector<1x32x1xf32>
      %352 = arith.addf %346, %351 : vector<1x32x1xf32>
      %353 = vector.extract_strided_slice %66 {offsets = [0, 23, 0], sizes = [1, 1, 1], strides = [1, 1, 1]} : vector<1x32x1xf32> to vector<1x1x1xf32>
      %354 = vector.extract_strided_slice %68 {offsets = [0, 23], sizes = [32, 1], strides = [1, 1]} : vector<32x32xf32> to vector<32x1xf32>
      %355 = vector.shape_cast %354 : vector<32x1xf32> to vector<1x32x1xf32>
      %356 = vector.broadcast %353 : vector<1x1x1xf32> to vector<1x32x1xf32>
      %357 = arith.mulf %356, %355 : vector<1x32x1xf32>
      %358 = arith.addf %352, %357 : vector<1x32x1xf32>
      %359 = vector.extract_strided_slice %63 {offsets = [0, 24, 0], sizes = [1, 1, 1], strides = [1, 1, 1]} : vector<1x32x1xf32> to vector<1x1x1xf32>
      %360 = vector.extract_strided_slice %67 {offsets = [0, 24], sizes = [32, 1], strides = [1, 1]} : vector<32x32xf32> to vector<32x1xf32>
      %361 = vector.shape_cast %360 : vector<32x1xf32> to vector<1x32x1xf32>
      %362 = vector.broadcast %359 : vector<1x1x1xf32> to vector<1x32x1xf32>
      %363 = arith.mulf %362, %361 : vector<1x32x1xf32>
      %364 = arith.addf %358, %363 : vector<1x32x1xf32>
      %365 = vector.extract_strided_slice %66 {offsets = [0, 24, 0], sizes = [1, 1, 1], strides = [1, 1, 1]} : vector<1x32x1xf32> to vector<1x1x1xf32>
      %366 = vector.extract_strided_slice %68 {offsets = [0, 24], sizes = [32, 1], strides = [1, 1]} : vector<32x32xf32> to vector<32x1xf32>
      %367 = vector.shape_cast %366 : vector<32x1xf32> to vector<1x32x1xf32>
      %368 = vector.broadcast %365 : vector<1x1x1xf32> to vector<1x32x1xf32>
      %369 = arith.mulf %368, %367 : vector<1x32x1xf32>
      %370 = arith.addf %364, %369 : vector<1x32x1xf32>
      %371 = vector.extract_strided_slice %63 {offsets = [0, 25, 0], sizes = [1, 1, 1], strides = [1, 1, 1]} : vector<1x32x1xf32> to vector<1x1x1xf32>
      %372 = vector.extract_strided_slice %67 {offsets = [0, 25], sizes = [32, 1], strides = [1, 1]} : vector<32x32xf32> to vector<32x1xf32>
      %373 = vector.shape_cast %372 : vector<32x1xf32> to vector<1x32x1xf32>
      %374 = vector.broadcast %371 : vector<1x1x1xf32> to vector<1x32x1xf32>
      %375 = arith.mulf %374, %373 : vector<1x32x1xf32>
      %376 = arith.addf %370, %375 : vector<1x32x1xf32>
      %377 = vector.extract_strided_slice %66 {offsets = [0, 25, 0], sizes = [1, 1, 1], strides = [1, 1, 1]} : vector<1x32x1xf32> to vector<1x1x1xf32>
      %378 = vector.extract_strided_slice %68 {offsets = [0, 25], sizes = [32, 1], strides = [1, 1]} : vector<32x32xf32> to vector<32x1xf32>
      %379 = vector.shape_cast %378 : vector<32x1xf32> to vector<1x32x1xf32>
      %380 = vector.broadcast %377 : vector<1x1x1xf32> to vector<1x32x1xf32>
      %381 = arith.mulf %380, %379 : vector<1x32x1xf32>
      %382 = arith.addf %376, %381 : vector<1x32x1xf32>
      %383 = vector.extract_strided_slice %63 {offsets = [0, 26, 0], sizes = [1, 1, 1], strides = [1, 1, 1]} : vector<1x32x1xf32> to vector<1x1x1xf32>
      %384 = vector.extract_strided_slice %67 {offsets = [0, 26], sizes = [32, 1], strides = [1, 1]} : vector<32x32xf32> to vector<32x1xf32>
      %385 = vector.shape_cast %384 : vector<32x1xf32> to vector<1x32x1xf32>
      %386 = vector.broadcast %383 : vector<1x1x1xf32> to vector<1x32x1xf32>
      %387 = arith.mulf %386, %385 : vector<1x32x1xf32>
      %388 = arith.addf %382, %387 : vector<1x32x1xf32>
      %389 = vector.extract_strided_slice %66 {offsets = [0, 26, 0], sizes = [1, 1, 1], strides = [1, 1, 1]} : vector<1x32x1xf32> to vector<1x1x1xf32>
      %390 = vector.extract_strided_slice %68 {offsets = [0, 26], sizes = [32, 1], strides = [1, 1]} : vector<32x32xf32> to vector<32x1xf32>
      %391 = vector.shape_cast %390 : vector<32x1xf32> to vector<1x32x1xf32>
      %392 = vector.broadcast %389 : vector<1x1x1xf32> to vector<1x32x1xf32>
      %393 = arith.mulf %392, %391 : vector<1x32x1xf32>
      %394 = arith.addf %388, %393 : vector<1x32x1xf32>
      %395 = vector.extract_strided_slice %63 {offsets = [0, 27, 0], sizes = [1, 1, 1], strides = [1, 1, 1]} : vector<1x32x1xf32> to vector<1x1x1xf32>
      %396 = vector.extract_strided_slice %67 {offsets = [0, 27], sizes = [32, 1], strides = [1, 1]} : vector<32x32xf32> to vector<32x1xf32>
      %397 = vector.shape_cast %396 : vector<32x1xf32> to vector<1x32x1xf32>
      %398 = vector.broadcast %395 : vector<1x1x1xf32> to vector<1x32x1xf32>
      %399 = arith.mulf %398, %397 : vector<1x32x1xf32>
      %400 = arith.addf %394, %399 : vector<1x32x1xf32>
      %401 = vector.extract_strided_slice %66 {offsets = [0, 27, 0], sizes = [1, 1, 1], strides = [1, 1, 1]} : vector<1x32x1xf32> to vector<1x1x1xf32>
      %402 = vector.extract_strided_slice %68 {offsets = [0, 27], sizes = [32, 1], strides = [1, 1]} : vector<32x32xf32> to vector<32x1xf32>
      %403 = vector.shape_cast %402 : vector<32x1xf32> to vector<1x32x1xf32>
      %404 = vector.broadcast %401 : vector<1x1x1xf32> to vector<1x32x1xf32>
      %405 = arith.mulf %404, %403 : vector<1x32x1xf32>
      %406 = arith.addf %400, %405 : vector<1x32x1xf32>
      %407 = vector.extract_strided_slice %63 {offsets = [0, 28, 0], sizes = [1, 1, 1], strides = [1, 1, 1]} : vector<1x32x1xf32> to vector<1x1x1xf32>
      %408 = vector.extract_strided_slice %67 {offsets = [0, 28], sizes = [32, 1], strides = [1, 1]} : vector<32x32xf32> to vector<32x1xf32>
      %409 = vector.shape_cast %408 : vector<32x1xf32> to vector<1x32x1xf32>
      %410 = vector.broadcast %407 : vector<1x1x1xf32> to vector<1x32x1xf32>
      %411 = arith.mulf %410, %409 : vector<1x32x1xf32>
      %412 = arith.addf %406, %411 : vector<1x32x1xf32>
      %413 = vector.extract_strided_slice %66 {offsets = [0, 28, 0], sizes = [1, 1, 1], strides = [1, 1, 1]} : vector<1x32x1xf32> to vector<1x1x1xf32>
      %414 = vector.extract_strided_slice %68 {offsets = [0, 28], sizes = [32, 1], strides = [1, 1]} : vector<32x32xf32> to vector<32x1xf32>
      %415 = vector.shape_cast %414 : vector<32x1xf32> to vector<1x32x1xf32>
      %416 = vector.broadcast %413 : vector<1x1x1xf32> to vector<1x32x1xf32>
      %417 = arith.mulf %416, %415 : vector<1x32x1xf32>
      %418 = arith.addf %412, %417 : vector<1x32x1xf32>
      %419 = vector.extract_strided_slice %63 {offsets = [0, 29, 0], sizes = [1, 1, 1], strides = [1, 1, 1]} : vector<1x32x1xf32> to vector<1x1x1xf32>
      %420 = vector.extract_strided_slice %67 {offsets = [0, 29], sizes = [32, 1], strides = [1, 1]} : vector<32x32xf32> to vector<32x1xf32>
      %421 = vector.shape_cast %420 : vector<32x1xf32> to vector<1x32x1xf32>
      %422 = vector.broadcast %419 : vector<1x1x1xf32> to vector<1x32x1xf32>
      %423 = arith.mulf %422, %421 : vector<1x32x1xf32>
      %424 = arith.addf %418, %423 : vector<1x32x1xf32>
      %425 = vector.extract_strided_slice %66 {offsets = [0, 29, 0], sizes = [1, 1, 1], strides = [1, 1, 1]} : vector<1x32x1xf32> to vector<1x1x1xf32>
      %426 = vector.extract_strided_slice %68 {offsets = [0, 29], sizes = [32, 1], strides = [1, 1]} : vector<32x32xf32> to vector<32x1xf32>
      %427 = vector.shape_cast %426 : vector<32x1xf32> to vector<1x32x1xf32>
      %428 = vector.broadcast %425 : vector<1x1x1xf32> to vector<1x32x1xf32>
      %429 = arith.mulf %428, %427 : vector<1x32x1xf32>
      %430 = arith.addf %424, %429 : vector<1x32x1xf32>
      %431 = vector.extract_strided_slice %63 {offsets = [0, 30, 0], sizes = [1, 1, 1], strides = [1, 1, 1]} : vector<1x32x1xf32> to vector<1x1x1xf32>
      %432 = vector.extract_strided_slice %67 {offsets = [0, 30], sizes = [32, 1], strides = [1, 1]} : vector<32x32xf32> to vector<32x1xf32>
      %433 = vector.shape_cast %432 : vector<32x1xf32> to vector<1x32x1xf32>
      %434 = vector.broadcast %431 : vector<1x1x1xf32> to vector<1x32x1xf32>
      %435 = arith.mulf %434, %433 : vector<1x32x1xf32>
      %436 = arith.addf %430, %435 : vector<1x32x1xf32>
      %437 = vector.extract_strided_slice %66 {offsets = [0, 30, 0], sizes = [1, 1, 1], strides = [1, 1, 1]} : vector<1x32x1xf32> to vector<1x1x1xf32>
      %438 = vector.extract_strided_slice %68 {offsets = [0, 30], sizes = [32, 1], strides = [1, 1]} : vector<32x32xf32> to vector<32x1xf32>
      %439 = vector.shape_cast %438 : vector<32x1xf32> to vector<1x32x1xf32>
      %440 = vector.broadcast %437 : vector<1x1x1xf32> to vector<1x32x1xf32>
      %441 = arith.mulf %440, %439 : vector<1x32x1xf32>
      %442 = arith.addf %436, %441 : vector<1x32x1xf32>
      %443 = vector.extract_strided_slice %63 {offsets = [0, 31, 0], sizes = [1, 1, 1], strides = [1, 1, 1]} : vector<1x32x1xf32> to vector<1x1x1xf32>
      %444 = vector.extract_strided_slice %67 {offsets = [0, 31], sizes = [32, 1], strides = [1, 1]} : vector<32x32xf32> to vector<32x1xf32>
      %445 = vector.shape_cast %444 : vector<32x1xf32> to vector<1x32x1xf32>
      %446 = vector.broadcast %443 : vector<1x1x1xf32> to vector<1x32x1xf32>
      %447 = arith.mulf %446, %445 : vector<1x32x1xf32>
      %448 = arith.addf %442, %447 : vector<1x32x1xf32>
      %449 = vector.extract_strided_slice %66 {offsets = [0, 31, 0], sizes = [1, 1, 1], strides = [1, 1, 1]} : vector<1x32x1xf32> to vector<1x1x1xf32>
      %450 = vector.extract_strided_slice %68 {offsets = [0, 31], sizes = [32, 1], strides = [1, 1]} : vector<32x32xf32> to vector<32x1xf32>
      %451 = vector.shape_cast %450 : vector<32x1xf32> to vector<1x32x1xf32>
      %452 = vector.broadcast %449 : vector<1x1x1xf32> to vector<1x32x1xf32>
      %453 = arith.mulf %452, %451 : vector<1x32x1xf32>
      %454 = arith.addf %448, %453 : vector<1x32x1xf32>
      %cst_49 = arith.constant 0.000000e+00 : f32
      %455 = vector.broadcast %cst_49 : f32 to vector<1x32x1xf32>
      %456 = arith.cmpf oge, %454, %455 : vector<1x32x1xf32>
      %cst_50 = arith.constant 2.000000e-01 : f32
      %457 = vector.broadcast %cst_50 : f32 to vector<1x32x1xf32>
      %458 = arith.mulf %457, %454 : vector<1x32x1xf32>
      %459 = arith.select %456, %454, %458 : vector<1x32x1xi1>, vector<1x32x1xf32>
      %c0_51 = arith.constant 0 : index
      %c0_52 = arith.constant 0 : index
      %460 = vector.load %arg10[%c0_51, %c0_52] : memref<1x32xf32, #tpu.memory_space<vmem>>, vector<1x32xf32>
      %c0_53 = arith.constant 0 : index
      %c0_54 = arith.constant 0 : index
      %461 = vector.load %arg11[%c0_53, %c0_54] : memref<1x1xf32, #tpu.memory_space<vmem>>, vector<1x1xf32>
      %462 = vector.shape_cast %461 : vector<1x1xf32> to vector<1x1x1xf32>
      %463 = vector.extract_strided_slice %459 {offsets = [0, 0, 0], sizes = [1, 1, 1], strides = [1, 1, 1]} : vector<1x32x1xf32> to vector<1x1x1xf32>
      %464 = vector.extract_strided_slice %460 {offsets = [0, 0], sizes = [1, 1], strides = [1, 1]} : vector<1x32xf32> to vector<1x1xf32>
      %465 = vector.shape_cast %464 : vector<1x1xf32> to vector<1x1x1xf32>
      %466 = arith.mulf %463, %465 : vector<1x1x1xf32>
      %467 = arith.addf %462, %466 : vector<1x1x1xf32>
      %468 = vector.extract_strided_slice %459 {offsets = [0, 1, 0], sizes = [1, 1, 1], strides = [1, 1, 1]} : vector<1x32x1xf32> to vector<1x1x1xf32>
      %469 = vector.extract_strided_slice %460 {offsets = [0, 1], sizes = [1, 1], strides = [1, 1]} : vector<1x32xf32> to vector<1x1xf32>
      %470 = vector.shape_cast %469 : vector<1x1xf32> to vector<1x1x1xf32>
      %471 = arith.mulf %468, %470 : vector<1x1x1xf32>
      %472 = arith.addf %467, %471 : vector<1x1x1xf32>
      %473 = vector.extract_strided_slice %459 {offsets = [0, 2, 0], sizes = [1, 1, 1], strides = [1, 1, 1]} : vector<1x32x1xf32> to vector<1x1x1xf32>
      %474 = vector.extract_strided_slice %460 {offsets = [0, 2], sizes = [1, 1], strides = [1, 1]} : vector<1x32xf32> to vector<1x1xf32>
      %475 = vector.shape_cast %474 : vector<1x1xf32> to vector<1x1x1xf32>
      %476 = arith.mulf %473, %475 : vector<1x1x1xf32>
      %477 = arith.addf %472, %476 : vector<1x1x1xf32>
      %478 = vector.extract_strided_slice %459 {offsets = [0, 3, 0], sizes = [1, 1, 1], strides = [1, 1, 1]} : vector<1x32x1xf32> to vector<1x1x1xf32>
      %479 = vector.extract_strided_slice %460 {offsets = [0, 3], sizes = [1, 1], strides = [1, 1]} : vector<1x32xf32> to vector<1x1xf32>
      %480 = vector.shape_cast %479 : vector<1x1xf32> to vector<1x1x1xf32>
      %481 = arith.mulf %478, %480 : vector<1x1x1xf32>
      %482 = arith.addf %477, %481 : vector<1x1x1xf32>
      %483 = vector.extract_strided_slice %459 {offsets = [0, 4, 0], sizes = [1, 1, 1], strides = [1, 1, 1]} : vector<1x32x1xf32> to vector<1x1x1xf32>
      %484 = vector.extract_strided_slice %460 {offsets = [0, 4], sizes = [1, 1], strides = [1, 1]} : vector<1x32xf32> to vector<1x1xf32>
      %485 = vector.shape_cast %484 : vector<1x1xf32> to vector<1x1x1xf32>
      %486 = arith.mulf %483, %485 : vector<1x1x1xf32>
      %487 = arith.addf %482, %486 : vector<1x1x1xf32>
      %488 = vector.extract_strided_slice %459 {offsets = [0, 5, 0], sizes = [1, 1, 1], strides = [1, 1, 1]} : vector<1x32x1xf32> to vector<1x1x1xf32>
      %489 = vector.extract_strided_slice %460 {offsets = [0, 5], sizes = [1, 1], strides = [1, 1]} : vector<1x32xf32> to vector<1x1xf32>
      %490 = vector.shape_cast %489 : vector<1x1xf32> to vector<1x1x1xf32>
      %491 = arith.mulf %488, %490 : vector<1x1x1xf32>
      %492 = arith.addf %487, %491 : vector<1x1x1xf32>
      %493 = vector.extract_strided_slice %459 {offsets = [0, 6, 0], sizes = [1, 1, 1], strides = [1, 1, 1]} : vector<1x32x1xf32> to vector<1x1x1xf32>
      %494 = vector.extract_strided_slice %460 {offsets = [0, 6], sizes = [1, 1], strides = [1, 1]} : vector<1x32xf32> to vector<1x1xf32>
      %495 = vector.shape_cast %494 : vector<1x1xf32> to vector<1x1x1xf32>
      %496 = arith.mulf %493, %495 : vector<1x1x1xf32>
      %497 = arith.addf %492, %496 : vector<1x1x1xf32>
      %498 = vector.extract_strided_slice %459 {offsets = [0, 7, 0], sizes = [1, 1, 1], strides = [1, 1, 1]} : vector<1x32x1xf32> to vector<1x1x1xf32>
      %499 = vector.extract_strided_slice %460 {offsets = [0, 7], sizes = [1, 1], strides = [1, 1]} : vector<1x32xf32> to vector<1x1xf32>
      %500 = vector.shape_cast %499 : vector<1x1xf32> to vector<1x1x1xf32>
      %501 = arith.mulf %498, %500 : vector<1x1x1xf32>
      %502 = arith.addf %497, %501 : vector<1x1x1xf32>
      %503 = vector.extract_strided_slice %459 {offsets = [0, 8, 0], sizes = [1, 1, 1], strides = [1, 1, 1]} : vector<1x32x1xf32> to vector<1x1x1xf32>
      %504 = vector.extract_strided_slice %460 {offsets = [0, 8], sizes = [1, 1], strides = [1, 1]} : vector<1x32xf32> to vector<1x1xf32>
      %505 = vector.shape_cast %504 : vector<1x1xf32> to vector<1x1x1xf32>
      %506 = arith.mulf %503, %505 : vector<1x1x1xf32>
      %507 = arith.addf %502, %506 : vector<1x1x1xf32>
      %508 = vector.extract_strided_slice %459 {offsets = [0, 9, 0], sizes = [1, 1, 1], strides = [1, 1, 1]} : vector<1x32x1xf32> to vector<1x1x1xf32>
      %509 = vector.extract_strided_slice %460 {offsets = [0, 9], sizes = [1, 1], strides = [1, 1]} : vector<1x32xf32> to vector<1x1xf32>
      %510 = vector.shape_cast %509 : vector<1x1xf32> to vector<1x1x1xf32>
      %511 = arith.mulf %508, %510 : vector<1x1x1xf32>
      %512 = arith.addf %507, %511 : vector<1x1x1xf32>
      %513 = vector.extract_strided_slice %459 {offsets = [0, 10, 0], sizes = [1, 1, 1], strides = [1, 1, 1]} : vector<1x32x1xf32> to vector<1x1x1xf32>
      %514 = vector.extract_strided_slice %460 {offsets = [0, 10], sizes = [1, 1], strides = [1, 1]} : vector<1x32xf32> to vector<1x1xf32>
      %515 = vector.shape_cast %514 : vector<1x1xf32> to vector<1x1x1xf32>
      %516 = arith.mulf %513, %515 : vector<1x1x1xf32>
      %517 = arith.addf %512, %516 : vector<1x1x1xf32>
      %518 = vector.extract_strided_slice %459 {offsets = [0, 11, 0], sizes = [1, 1, 1], strides = [1, 1, 1]} : vector<1x32x1xf32> to vector<1x1x1xf32>
      %519 = vector.extract_strided_slice %460 {offsets = [0, 11], sizes = [1, 1], strides = [1, 1]} : vector<1x32xf32> to vector<1x1xf32>
      %520 = vector.shape_cast %519 : vector<1x1xf32> to vector<1x1x1xf32>
      %521 = arith.mulf %518, %520 : vector<1x1x1xf32>
      %522 = arith.addf %517, %521 : vector<1x1x1xf32>
      %523 = vector.extract_strided_slice %459 {offsets = [0, 12, 0], sizes = [1, 1, 1], strides = [1, 1, 1]} : vector<1x32x1xf32> to vector<1x1x1xf32>
      %524 = vector.extract_strided_slice %460 {offsets = [0, 12], sizes = [1, 1], strides = [1, 1]} : vector<1x32xf32> to vector<1x1xf32>
      %525 = vector.shape_cast %524 : vector<1x1xf32> to vector<1x1x1xf32>
      %526 = arith.mulf %523, %525 : vector<1x1x1xf32>
      %527 = arith.addf %522, %526 : vector<1x1x1xf32>
      %528 = vector.extract_strided_slice %459 {offsets = [0, 13, 0], sizes = [1, 1, 1], strides = [1, 1, 1]} : vector<1x32x1xf32> to vector<1x1x1xf32>
      %529 = vector.extract_strided_slice %460 {offsets = [0, 13], sizes = [1, 1], strides = [1, 1]} : vector<1x32xf32> to vector<1x1xf32>
      %530 = vector.shape_cast %529 : vector<1x1xf32> to vector<1x1x1xf32>
      %531 = arith.mulf %528, %530 : vector<1x1x1xf32>
      %532 = arith.addf %527, %531 : vector<1x1x1xf32>
      %533 = vector.extract_strided_slice %459 {offsets = [0, 14, 0], sizes = [1, 1, 1], strides = [1, 1, 1]} : vector<1x32x1xf32> to vector<1x1x1xf32>
      %534 = vector.extract_strided_slice %460 {offsets = [0, 14], sizes = [1, 1], strides = [1, 1]} : vector<1x32xf32> to vector<1x1xf32>
      %535 = vector.shape_cast %534 : vector<1x1xf32> to vector<1x1x1xf32>
      %536 = arith.mulf %533, %535 : vector<1x1x1xf32>
      %537 = arith.addf %532, %536 : vector<1x1x1xf32>
      %538 = vector.extract_strided_slice %459 {offsets = [0, 15, 0], sizes = [1, 1, 1], strides = [1, 1, 1]} : vector<1x32x1xf32> to vector<1x1x1xf32>
      %539 = vector.extract_strided_slice %460 {offsets = [0, 15], sizes = [1, 1], strides = [1, 1]} : vector<1x32xf32> to vector<1x1xf32>
      %540 = vector.shape_cast %539 : vector<1x1xf32> to vector<1x1x1xf32>
      %541 = arith.mulf %538, %540 : vector<1x1x1xf32>
      %542 = arith.addf %537, %541 : vector<1x1x1xf32>
      %543 = vector.extract_strided_slice %459 {offsets = [0, 16, 0], sizes = [1, 1, 1], strides = [1, 1, 1]} : vector<1x32x1xf32> to vector<1x1x1xf32>
      %544 = vector.extract_strided_slice %460 {offsets = [0, 16], sizes = [1, 1], strides = [1, 1]} : vector<1x32xf32> to vector<1x1xf32>
      %545 = vector.shape_cast %544 : vector<1x1xf32> to vector<1x1x1xf32>
      %546 = arith.mulf %543, %545 : vector<1x1x1xf32>
      %547 = arith.addf %542, %546 : vector<1x1x1xf32>
      %548 = vector.extract_strided_slice %459 {offsets = [0, 17, 0], sizes = [1, 1, 1], strides = [1, 1, 1]} : vector<1x32x1xf32> to vector<1x1x1xf32>
      %549 = vector.extract_strided_slice %460 {offsets = [0, 17], sizes = [1, 1], strides = [1, 1]} : vector<1x32xf32> to vector<1x1xf32>
      %550 = vector.shape_cast %549 : vector<1x1xf32> to vector<1x1x1xf32>
      %551 = arith.mulf %548, %550 : vector<1x1x1xf32>
      %552 = arith.addf %547, %551 : vector<1x1x1xf32>
      %553 = vector.extract_strided_slice %459 {offsets = [0, 18, 0], sizes = [1, 1, 1], strides = [1, 1, 1]} : vector<1x32x1xf32> to vector<1x1x1xf32>
      %554 = vector.extract_strided_slice %460 {offsets = [0, 18], sizes = [1, 1], strides = [1, 1]} : vector<1x32xf32> to vector<1x1xf32>
      %555 = vector.shape_cast %554 : vector<1x1xf32> to vector<1x1x1xf32>
      %556 = arith.mulf %553, %555 : vector<1x1x1xf32>
      %557 = arith.addf %552, %556 : vector<1x1x1xf32>
      %558 = vector.extract_strided_slice %459 {offsets = [0, 19, 0], sizes = [1, 1, 1], strides = [1, 1, 1]} : vector<1x32x1xf32> to vector<1x1x1xf32>
      %559 = vector.extract_strided_slice %460 {offsets = [0, 19], sizes = [1, 1], strides = [1, 1]} : vector<1x32xf32> to vector<1x1xf32>
      %560 = vector.shape_cast %559 : vector<1x1xf32> to vector<1x1x1xf32>
      %561 = arith.mulf %558, %560 : vector<1x1x1xf32>
      %562 = arith.addf %557, %561 : vector<1x1x1xf32>
      %563 = vector.extract_strided_slice %459 {offsets = [0, 20, 0], sizes = [1, 1, 1], strides = [1, 1, 1]} : vector<1x32x1xf32> to vector<1x1x1xf32>
      %564 = vector.extract_strided_slice %460 {offsets = [0, 20], sizes = [1, 1], strides = [1, 1]} : vector<1x32xf32> to vector<1x1xf32>
      %565 = vector.shape_cast %564 : vector<1x1xf32> to vector<1x1x1xf32>
      %566 = arith.mulf %563, %565 : vector<1x1x1xf32>
      %567 = arith.addf %562, %566 : vector<1x1x1xf32>
      %568 = vector.extract_strided_slice %459 {offsets = [0, 21, 0], sizes = [1, 1, 1], strides = [1, 1, 1]} : vector<1x32x1xf32> to vector<1x1x1xf32>
      %569 = vector.extract_strided_slice %460 {offsets = [0, 21], sizes = [1, 1], strides = [1, 1]} : vector<1x32xf32> to vector<1x1xf32>
      %570 = vector.shape_cast %569 : vector<1x1xf32> to vector<1x1x1xf32>
      %571 = arith.mulf %568, %570 : vector<1x1x1xf32>
      %572 = arith.addf %567, %571 : vector<1x1x1xf32>
      %573 = vector.extract_strided_slice %459 {offsets = [0, 22, 0], sizes = [1, 1, 1], strides = [1, 1, 1]} : vector<1x32x1xf32> to vector<1x1x1xf32>
      %574 = vector.extract_strided_slice %460 {offsets = [0, 22], sizes = [1, 1], strides = [1, 1]} : vector<1x32xf32> to vector<1x1xf32>
      %575 = vector.shape_cast %574 : vector<1x1xf32> to vector<1x1x1xf32>
      %576 = arith.mulf %573, %575 : vector<1x1x1xf32>
      %577 = arith.addf %572, %576 : vector<1x1x1xf32>
      %578 = vector.extract_strided_slice %459 {offsets = [0, 23, 0], sizes = [1, 1, 1], strides = [1, 1, 1]} : vector<1x32x1xf32> to vector<1x1x1xf32>
      %579 = vector.extract_strided_slice %460 {offsets = [0, 23], sizes = [1, 1], strides = [1, 1]} : vector<1x32xf32> to vector<1x1xf32>
      %580 = vector.shape_cast %579 : vector<1x1xf32> to vector<1x1x1xf32>
      %581 = arith.mulf %578, %580 : vector<1x1x1xf32>
      %582 = arith.addf %577, %581 : vector<1x1x1xf32>
      %583 = vector.extract_strided_slice %459 {offsets = [0, 24, 0], sizes = [1, 1, 1], strides = [1, 1, 1]} : vector<1x32x1xf32> to vector<1x1x1xf32>
      %584 = vector.extract_strided_slice %460 {offsets = [0, 24], sizes = [1, 1], strides = [1, 1]} : vector<1x32xf32> to vector<1x1xf32>
      %585 = vector.shape_cast %584 : vector<1x1xf32> to vector<1x1x1xf32>
      %586 = arith.mulf %583, %585 : vector<1x1x1xf32>
      %587 = arith.addf %582, %586 : vector<1x1x1xf32>
      %588 = vector.extract_strided_slice %459 {offsets = [0, 25, 0], sizes = [1, 1, 1], strides = [1, 1, 1]} : vector<1x32x1xf32> to vector<1x1x1xf32>
      %589 = vector.extract_strided_slice %460 {offsets = [0, 25], sizes = [1, 1], strides = [1, 1]} : vector<1x32xf32> to vector<1x1xf32>
      %590 = vector.shape_cast %589 : vector<1x1xf32> to vector<1x1x1xf32>
      %591 = arith.mulf %588, %590 : vector<1x1x1xf32>
      %592 = arith.addf %587, %591 : vector<1x1x1xf32>
      %593 = vector.extract_strided_slice %459 {offsets = [0, 26, 0], sizes = [1, 1, 1], strides = [1, 1, 1]} : vector<1x32x1xf32> to vector<1x1x1xf32>
      %594 = vector.extract_strided_slice %460 {offsets = [0, 26], sizes = [1, 1], strides = [1, 1]} : vector<1x32xf32> to vector<1x1xf32>
      %595 = vector.shape_cast %594 : vector<1x1xf32> to vector<1x1x1xf32>
      %596 = arith.mulf %593, %595 : vector<1x1x1xf32>
      %597 = arith.addf %592, %596 : vector<1x1x1xf32>
      %598 = vector.extract_strided_slice %459 {offsets = [0, 27, 0], sizes = [1, 1, 1], strides = [1, 1, 1]} : vector<1x32x1xf32> to vector<1x1x1xf32>
      %599 = vector.extract_strided_slice %460 {offsets = [0, 27], sizes = [1, 1], strides = [1, 1]} : vector<1x32xf32> to vector<1x1xf32>
      %600 = vector.shape_cast %599 : vector<1x1xf32> to vector<1x1x1xf32>
      %601 = arith.mulf %598, %600 : vector<1x1x1xf32>
      %602 = arith.addf %597, %601 : vector<1x1x1xf32>
      %603 = vector.extract_strided_slice %459 {offsets = [0, 28, 0], sizes = [1, 1, 1], strides = [1, 1, 1]} : vector<1x32x1xf32> to vector<1x1x1xf32>
      %604 = vector.extract_strided_slice %460 {offsets = [0, 28], sizes = [1, 1], strides = [1, 1]} : vector<1x32xf32> to vector<1x1xf32>
      %605 = vector.shape_cast %604 : vector<1x1xf32> to vector<1x1x1xf32>
      %606 = arith.mulf %603, %605 : vector<1x1x1xf32>
      %607 = arith.addf %602, %606 : vector<1x1x1xf32>
      %608 = vector.extract_strided_slice %459 {offsets = [0, 29, 0], sizes = [1, 1, 1], strides = [1, 1, 1]} : vector<1x32x1xf32> to vector<1x1x1xf32>
      %609 = vector.extract_strided_slice %460 {offsets = [0, 29], sizes = [1, 1], strides = [1, 1]} : vector<1x32xf32> to vector<1x1xf32>
      %610 = vector.shape_cast %609 : vector<1x1xf32> to vector<1x1x1xf32>
      %611 = arith.mulf %608, %610 : vector<1x1x1xf32>
      %612 = arith.addf %607, %611 : vector<1x1x1xf32>
      %613 = vector.extract_strided_slice %459 {offsets = [0, 30, 0], sizes = [1, 1, 1], strides = [1, 1, 1]} : vector<1x32x1xf32> to vector<1x1x1xf32>
      %614 = vector.extract_strided_slice %460 {offsets = [0, 30], sizes = [1, 1], strides = [1, 1]} : vector<1x32xf32> to vector<1x1xf32>
      %615 = vector.shape_cast %614 : vector<1x1xf32> to vector<1x1x1xf32>
      %616 = arith.mulf %613, %615 : vector<1x1x1xf32>
      %617 = arith.addf %612, %616 : vector<1x1x1xf32>
      %618 = vector.extract_strided_slice %459 {offsets = [0, 31, 0], sizes = [1, 1, 1], strides = [1, 1, 1]} : vector<1x32x1xf32> to vector<1x1x1xf32>
      %619 = vector.extract_strided_slice %460 {offsets = [0, 31], sizes = [1, 1], strides = [1, 1]} : vector<1x32xf32> to vector<1x1xf32>
      %620 = vector.shape_cast %619 : vector<1x1xf32> to vector<1x1x1xf32>
      %621 = arith.mulf %618, %620 : vector<1x1x1xf32>
      %622 = arith.addf %617, %621 : vector<1x1x1xf32>
      %623 = arith.negf %622 : vector<1x1x1xf32>
      %624 = math.exp %623 : vector<1x1x1xf32>
      %cst_55 = arith.constant 1.000000e+00 : f32
      %625 = vector.broadcast %cst_55 : f32 to vector<1x1x1xf32>
      %626 = arith.addf %625, %624 : vector<1x1x1xf32>
      %627 = arith.divf %625, %626 : vector<1x1x1xf32>
      %c0_56 = arith.constant 0 : index
      %c0_57 = arith.constant 0 : index
      %c0_58 = arith.constant 0 : index
      %628 = vector.load %arg12[%c0_56, %c0_57, %c0_58] : memref<1x1x1xf32, #tpu.memory_space<vmem>>, vector<1x1x1xf32>
      tpu.vector_store %arg12[%c0_56, %c0_57, %c0_58], %627 {strides = array<i32>} : memref<1x1x1xf32, #tpu.memory_space<vmem>>, vector<1x1x1xf32>,
    } else {
    }
    return
  }
  func.func @transform_0(%arg0: i32, %arg1: i32) -> (i32, i32, i32) {
    %c0_i32 = arith.constant 0 : i32
    %c0_i32_0 = arith.constant 0 : i32
    return %arg0, %c0_i32, %arg1 : i32, i32, i32
  }
  func.func @transform_1(%arg0: i32, %arg1: i32) -> (i32, i32) {
    %c0_i32 = arith.constant 0 : i32
    %c0_i32_0 = arith.constant 0 : i32
    %c0_i32_1 = arith.constant 0 : i32
    return %c0_i32, %c0_i32_0 : i32, i32
  }
  func.func @transform_2(%arg0: i32, %arg1: i32) -> (i32, i32) {
    %c0_i32 = arith.constant 0 : i32
    %c0_i32_0 = arith.constant 0 : i32
    %c0_i32_1 = arith.constant 0 : i32
    return %c0_i32, %c0_i32_0 : i32, i32
  }
  func.func @transform_3(%arg0: i32, %arg1: i32) -> (i32, i32) {
    %c0_i32 = arith.constant 0 : i32
    %c0_i32_0 = arith.constant 0 : i32
    %c0_i32_1 = arith.constant 0 : i32
    return %c0_i32, %c0_i32_0 : i32, i32
  }
  func.func @transform_4(%arg0: i32, %arg1: i32) -> (i32, i32) {
    %c0_i32 = arith.constant 0 : i32
    %c0_i32_0 = arith.constant 0 : i32
    %c0_i32_1 = arith.constant 0 : i32
    return %c0_i32, %c0_i32_0 : i32, i32
  }
  func.func @transform_5(%arg0: i32, %arg1: i32) -> (i32, i32) {
    %c0_i32 = arith.constant 0 : i32
    %c0_i32_0 = arith.constant 0 : i32
    %c0_i32_1 = arith.constant 0 : i32
    return %c0_i32, %c0_i32_0 : i32, i32
  }
  func.func @transform_6(%arg0: i32, %arg1: i32) -> (i32, i32) {
    %c0_i32 = arith.constant 0 : i32
    %c0_i32_0 = arith.constant 0 : i32
    %c0_i32_1 = arith.constant 0 : i32
    return %c0_i32, %c0_i32_0 : i32, i32
  }
  func.func @transform_7(%arg0: i32, %arg1: i32) -> (i32, i32) {
    %c0_i32 = arith.constant 0 : i32
    %c0_i32_0 = arith.constant 0 : i32
    %c0_i32_1 = arith.constant 0 : i32
    return %c0_i32, %c0_i32_0 : i32, i32
  }
  func.func @transform_8(%arg0: i32, %arg1: i32) -> (i32, i32) {
    %c0_i32 = arith.constant 0 : i32
    %c0_i32_0 = arith.constant 0 : i32
    %c0_i32_1 = arith.constant 0 : i32
    return %c0_i32, %c0_i32_0 : i32, i32
  }
  func.func @transform_9(%arg0: i32, %arg1: i32) -> (i32, i32) {
    %c0_i32 = arith.constant 0 : i32
    %c0_i32_0 = arith.constant 0 : i32
    %c0_i32_1 = arith.constant 0 : i32
    return %c0_i32, %c0_i32_0 : i32, i32
  }
  func.func @transform_10(%arg0: i32, %arg1: i32) -> (i32, i32, i32) {
    %c0_i32 = arith.constant 0 : i32
    %c0_i32_0 = arith.constant 0 : i32
    %c0_i32_1 = arith.constant 0 : i32
    return %arg0, %c0_i32, %c0_i32_0 : i32, i32, i32
  }
}

</mosaic_0001>

<bundles_post_ra>
// kernel: tpu_custom_call.1
= control target key start
LH: loop header
LB: loop body
LE: loop exit
PB: predicated region body
PF: predicated region fallthrough
CT: control target
= control target key end

     0   :  { %s2591_s15 = smov 0   ;;  %s2593_s16 = smov 0   ;;  %s4226_s0 = inlined_call_operand.vmem [shape: f32[2,4,8], index: 0, kind: input, shape index: {}]   ;;  %s4227_s1 = inlined_call_operand.vmem [shape: f32[32,3], index: 1, kind: input, shape index: {}]   ;;  %s4228_s2 = inlined_call_operand.vmem [shape: f32[32,1], index: 2, kind: input, shape index: {}]   ;;  %s4229_s3 = inlined_call_operand.vmem [shape: f32[32,32], index: 3, kind: input, shape index: {}]   ;;  %s4230_s4 = inlined_call_operand.vmem [shape: f32[32,1], index: 4, kind: input, shape index: {}]   ;;  %s4231_s5 = inlined_call_operand.vmem [shape: f32[32,32], index: 5, kind: input, shape index: {}]   ;;  %s4232_s6 = inlined_call_operand.vmem [shape: f32[32,32], index: 6, kind: input, shape index: {}]   ;;  %s4233_s7 = inlined_call_operand.vmem [shape: f32[32,1], index: 7, kind: input, shape index: {}]   ;;  %s4234_s8 = inlined_call_operand.vmem [shape: f32[1,32], index: 8, kind: input, shape index: {}]   ;;  %s4235_s9 = inlined_call_operand.<no memory space> [shape: f32[1,1], index: 9, kind: input, shape index: {}]   ;;  %s4236_s10 = inlined_call_operand.vmem [shape: f32[2,1,1], index: 10, kind: output, shape index: {}]  }
   0x1   :  { %v15_v0 = vstv %s4235_s9  ;;  %s2595_s17 = smov 0  }
   0x2   :  { %16 = vst [vmem:[#allocation4] sm:$0x1] %v15_v0 }
   0x3 LB: > { %s34_s9 = sadd.s32 1, %s2493_s16  ;;  %p2376_p0 = scmp.ge.s32.totalorder %s2497_s17, 1  ;;  %s2497_s17 = sphi %s2595_s17, %s22_s17   ;;  %s2493_s16 = sphi %s2593_s16, %s4375_s16   ;;  %s2489_s15 = sphi %s2591_s15, %s4374_s15  }
   0x4   : > { %p36_p1 = scmp.ge.s32.totalorder %s34_s9, 2  ;;  %p330_p2 = scmp.lt.s32.totalorder %s2497_s17, 3 }
   0x6   : > { %s4377_s9 = smov (%p36_p1, %s34_s9), 0  ;;  %p331_p3 = pnand %p2376_p0, %p330_p2 }
   0x8   : > { %334 = sbr.rel (%p331_p3) target bundleno = 1057 (0x421), region = 60 }
   0xd   : > { %v400_v1 = vld [vmem:[%s4228_s2 + $0x10] sm:$0xff]  ;;  %v398_v2 = vld [vmem:[%s4228_s2] sm:$0xff]  ;;  %p368_p4 = scmp.lt.s32.totalorder %s2489_s15, 1  ;;  %v2499_v3 = vmov 0   ;;  %v382_v5 = vlaneseq  ;;  %v401_v7 = vld [vmem:[%s4228_s2 + $0x18] sm:$0xff]  ;;  %v4237_v9 = vmov 0.0  }
   0xe   : > { %2456 = vset.pattern.permute.xlu1 %v2499_v3  ;;  %2455 = vset.pattern.permute.xlu0 %v2499_v3  ;;  %v484_v4 = vld [vmem:[%s4230_s4] sm:$0xff]  ;;  %v399_v8 = vld [vmem:[%s4228_s2 + $0x8] sm:$0xff]  ;;  %vm435_vm2 = vcmask 1042432   ;;  %vm422_vm3 = vcmask 23552   ;;  %v487_v22 = vld [vmem:[%s4230_s4 + $0x18] sm:$0xff]  ;;  %s2502_s25 = smov 126  }
   0xf   : > { %414 = vperm.xlu1 %2456, %v400_v1   ;;  %404 = vperm.xlu0 %2455, %v398_v2   ;;  %s4379_s15 = smov (!%p368_p4, %s2489_s15), 1  ;;  %v383_v11 = vshrl.u32 %v382_v5, 7  ;;  %v485_v14 = vld [vmem:[%s4230_s4 + $0x8] sm:$0xff]  ;;  %v394_v20 = vld [vmem:[%s4227_s1] sm:$0xff]  ;;  %v486_v23 = vld [vmem:[%s4230_s4 + $0x10] sm:$0xff]  ;;  %s2503_s11 = smov 125  }
  0x10   : > { %2457 = vset.pattern.permute.xlu2 %v2499_v3  ;;  %s2377_s24 = sshll.u32 %s4379_s15, 2  ;;  %v395_v21 = vld [vmem:[%s4227_s1 + $0x8] sm:$0xff]  ;;  %v2649_v24 = vld [vmem:[%s4231_s5 + $0x10] sm:$0xff]  ;;  %v2661_v26 = vld [vmem:[%s4231_s5] sm:$0xff]  ;;  %s2504_s12 = smov 124   ;;  %vm508_vm8 = vcmask 261120  }
  0x11   : > { %490 = vperm.xlu2 %2457, %v484_v4   ;;  %s374_s27 = scalar_lea.vmem %s4226_s0, %s2377_s24  ;;  %vm384_vm1 = vcmp.eq.s32.totalorder %v383_v11, 2  ;;  %v396_v25 = vld [vmem:[%s4227_s1 + $0x10] sm:$0xff]  ;;  %v2666_v27 = vld [vmem:[%s4231_s5 + $0x8] sm:$0xff]  ;;  %v397_v29 = vld [vmem:[%s4227_s1 + $0x18] sm:$0xff]  ;;  %s2505_s13 = smov 123   ;;  %vm562_vm10 = vcmask 64512  }
  0x12   : > { %v378_v6 = vld [vmem:[%s374_s27] sm:$0xf]  ;;  %s2501_s27 = smov 127   ;;  %v2671_v28 = vld [vmem:[%s4232_s6 + $0x10] sm:$0xff]  ;;  %v2686_v30 = vld [vmem:[%s4231_s5 + $0x18] sm:$0xff]  ;;  %s2506_s14 = smov 122  }
  0x13   : > { %vm379_vm0 = vcmp.ge.f32.partialorder %v378_v6, 0.0  ;;  %v2691_v31 = vld [vmem:[%s4232_s6] sm:$0xff]  ;;  %v2703_v32 = vld [vmem:[%s4232_s6 + $0x8] sm:$0xff]  ;;  %v2708_v33 = vld [vmem:[%s4232_s6 + $0x18] sm:$0xff]  ;;  %s4254_s18 = smov 121   ;;  %s4239_s19 = smov 120  }
  0x14   : > { %v2378_v10 = vsel %vm379_vm0, 1.0, %v4237_v9  ;;  %v480_v5 = vld [vmem:[%s4229_s3] sm:$0xff]  ;;  %v481_v11 = vld [vmem:[%s4229_s3 + $0x8] sm:$0xff]  ;;  %s4250_s30 = smov 119   ;;  %s4251_s20 = smov 118   ;;  %vm591_vm14 = vcmask 7168  }
  0x15   : > { %v2379_v12 = vadd.f32 -1.0, %v2378_v10  ;;  %v391_v13 = vperm.slane %v2378_v10, 3  ;;  %s4249_s21 = smov 117   ;;  %s4248_s22 = smov 116  }
  0x16   : > { %s4247_s23 = smov 115   ;;  %s4243_s24 = smov 114  }
  0x17   : > { %419 = vperm.xlu1 %2456, %v401_v7   ;;  %409 = vperm.xlu0 %2455, %v399_v8   ;;  %v386_v15 = vmul.f32 0.5, %v2379_v12  ;;  %v392_v16 = vmul.f32 %v391_v13, %v378_v6  ;;  %v482_v6 = vld [vmem:[%s4229_s3 + $0x10] sm:$0xff]  ;;  %v483_v12 = vld [vmem:[%s4229_s3 + $0x18] sm:$0xff]  ;;  %s4240_s26 = smov 113   ;;  %s4241_s28 = smov 112  }
  0x18   : > { %s2524_s29 = smov 104  }
  0x19   : > { %495 = vperm.xlu2 %2457, %v485_v14   ;;  %v389_v17 = vperm.slane %v386_v15, 3 }
  0x1b   : > { %v390_v18 = vsel %vm384_vm1, %v389_v17, 0.0 }
  0x1c   : > { %v393_v19 = vadd.f32 %v392_v16, %v390_v18 }
  0x1e   : > { %2380 = vmatpush.msk.msra.mxu0 %vm435_vm2, %v393_v19  ;;  %2392 = vmatpush.msk.msra.mxu3 %vm435_vm2, %v393_v19 }
  0x1f   : > { %2381 = vmatmul.msk.f32.vlgmr.msra.gmra.mxu0 %vm422_vm3, %v394_v20  ;;  %2382 = vmatmul.msk.f32.vlgmr.msra.gmra.mxu3 %vm422_vm3, %v395_v21 }
  0x20   : > { %505 = vperm.xlu1 %2456, %v487_v22   ;;  %500 = vperm.xlu0 %2455, %v486_v23  }
  0x21   : > { %679 = vrot.lane.b32.xlu2 %v2649_v24, %s2501_s27 }
  0x27   : > { %2383 = vmatmul.msk.f32.gmra.mxu3 %vm422_vm3, %v396_v25 }
  0x28   : > { %675 = vrot.lane.b32.xlu0 %v2661_v26, %s2501_s27  ;;  %677 = vrot.lane.b32.xlu1 %v2666_v27, %s2501_s27 }
  0x29   : > { %704 = vrot.lane.b32.xlu2 %v2671_v28, %s2501_s27 }
  0x2f   : > { %2384 = vmatmul.msk.f32.gmra.mxu3 %vm422_vm3, %v397_v29 }
  0x30   : > { %681 = vrot.lane.b32.xlu0 %v2686_v30, %s2501_s27  ;;  %700 = vrot.lane.b32.xlu1 %v2691_v31, %s2501_s27 }
  0x31   : > { %723 = vrot.lane.b32.xlu2 %v2666_v27, %s2502_s25 }
  0x38   : > { %702 = vrot.lane.b32.xlu0 %v2703_v32, %s2501_s27  ;;  %706 = vrot.lane.b32.xlu1 %v2708_v33, %s2501_s27 }
  0x39   : > { %742 = vrot.lane.b32.xlu2 %v2691_v31, %s2502_s25 }
  0x40   : > { %721 = vrot.lane.b32.xlu0 %v2661_v26, %s2502_s25  ;;  %725 = vrot.lane.b32.xlu1 %v2649_v24, %s2502_s25 }
  0x41   : > { %748 = vrot.lane.b32.xlu2 %v2708_v33, %s2502_s25 }
  0x48   : > { %727 = vrot.lane.b32.xlu0 %v2686_v30, %s2502_s25  ;;  %744 = vrot.lane.b32.xlu1 %v2703_v32, %s2502_s25 }
  0x49   : > { %767 = vrot.lane.b32.xlu2 %v2649_v24, %s2503_s11 }
  0x50   : > { %746 = vrot.lane.b32.xlu0 %v2671_v28, %s2502_s25  ;;  %763 = vrot.lane.b32.xlu1 %v2661_v26, %s2503_s11 }
  0x51   : > { %786 = vrot.lane.b32.xlu2 %v2703_v32, %s2503_s11 }
  0x58   : > { %765 = vrot.lane.b32.xlu0 %v2666_v27, %s2503_s11  ;;  %769 = vrot.lane.b32.xlu1 %v2686_v30, %s2503_s11 }
  0x59   : > { %805 = vrot.lane.b32.xlu2 %v2661_v26, %s2504_s12 }
  0x60   : > { %784 = vrot.lane.b32.xlu0 %v2691_v31, %s2503_s11  ;;  %788 = vrot.lane.b32.xlu1 %v2671_v28, %s2503_s11 }
  0x61   : > { %811 = vrot.lane.b32.xlu2 %v2686_v30, %s2504_s12 }
  0x68   : > { %790 = vrot.lane.b32.xlu0 %v2708_v33, %s2503_s11  ;;  %807 = vrot.lane.b32.xlu1 %v2666_v27, %s2504_s12 }
  0x69   : > { %830 = vrot.lane.b32.xlu2 %v2671_v28, %s2504_s12 }
  0x6b   : > { %v2770_v36 = vpop.permute.xlu2 %490 }
  0x70   : > { %809 = vrot.lane.b32.xlu0 %v2649_v24, %s2504_s12  ;;  %826 = vrot.lane.b32.xlu1 %v2691_v31, %s2504_s12 }
  0x71   : > { %849 = vrot.lane.b32.xlu2 %v2666_v27, %s2505_s13 }
  0x73   : > { %v2778_v39 = vpop.permute.xlu2 %495 }
  0x78   : > { %828 = vrot.lane.b32.xlu0 %v2703_v32, %s2504_s12  ;;  %832 = vrot.lane.b32.xlu1 %v2708_v33, %s2504_s12 }
  0x79   : > { %868 = vrot.lane.b32.xlu2 %v2691_v31, %s2505_s13 }
  0x7b   : > { %v2790_v42 = vpop.permute.xlu2 %679 }
  0x80   : > { %847 = vrot.lane.b32.xlu0 %v2661_v26, %s2505_s13  ;;  %851 = vrot.lane.b32.xlu1 %v2649_v24, %s2505_s13 }
  0x81   : > { %v415_v34 = vpop.permute.xlu1 %414  ;;  %v405_v35 = vpop.permute.xlu0 %404  ;;  %874 = vrot.lane.b32.xlu2 %v2708_v33, %s2505_s13 }
  0x83   : > { %v2802_v45 = vpop.permute.xlu2 %704 }
  0x88   : > { %853 = vrot.lane.b32.xlu0 %v2686_v30, %s2505_s13  ;;  %870 = vrot.lane.b32.xlu1 %v2703_v32, %s2505_s13 }
  0x89   : > { %v410_v37 = vpop.permute.xlu0 %409  ;;  %893 = vrot.lane.b32.xlu2 %v2649_v24, %s2506_s14  ;;  %v420_v38 = vpop.permute.xlu1 %419 }
  0x8b   : > { %v2820_v50 = vpop.permute.xlu2 %723 }
  0x90   : > { %872 = vrot.lane.b32.xlu0 %v2671_v28, %s2505_s13  ;;  %889 = vrot.lane.b32.xlu1 %v2661_v26, %s2506_s14 }
  0x91   : > { %912 = vrot.lane.b32.xlu2 %v2703_v32, %s2506_s14 }
  0x92   : > { %v2786_v40 = vpop.permute.xlu0 %500  ;;  %v2788_v41 = vpop.permute.xlu1 %505 }
  0x93   : > { %v2834_v59 = vpop.permute.xlu2 %742 }
  0x94   : > { %4258 = vst [vmem:[#allocation6_spill] sm:$0xff] %v2834_v59 }
  0x98   : > { %891 = vrot.lane.b32.xlu0 %v2666_v27, %s2506_s14  ;;  %895 = vrot.lane.b32.xlu1 %v2686_v30, %s2506_s14 }
  0x99   : > { %931 = vrot.lane.b32.xlu2 %v2661_v26, %s4254_s18 }
  0x9a   : > { %v2798_v43 = vpop.permute.xlu0 %675  ;;  %v2800_v44 = vpop.permute.xlu1 %677 }
  0x9b   : > { %v2852_v10 = vpop.permute.xlu2 %748 }
  0x9c   : > { %v456_v54 = vpop.f32.mrf.mxu0 }
  0x9d   : > { %v457_v60 = vadd.f32 %v456_v54, %v405_v35 }
  0x9f   : > { %v472_v2 = vmul.f32 0.2, %v457_v60  ;;  %vm468_vm7 = vcmp.ge.f32.partialorder %v457_v60, 0.0 }
  0xa0   : > { %910 = vrot.lane.b32.xlu0 %v2691_v31, %s2506_s14  ;;  %914 = vrot.lane.b32.xlu1 %v2671_v28, %s2506_s14 }
  0xa1   : > { %937 = vrot.lane.b32.xlu2 %v2686_v30, %s4254_s18  ;;  %v476_v8 = vsel %vm468_vm7, %v457_v60, %v472_v2 }
  0xa2   : > { %v459_v46 = vpop.f32.mrf.mxu3  ;;  %v2810_v47 = vpop.permute.xlu0 %681 }
  0xa3   : > { %v2812_v48 = vpop.permute.xlu1 %700  ;;  %v460_v56 = vadd.f32 %v459_v46, %v410_v37  ;;  %v2874_v15 = vpop.permute.xlu2 %767 }
  0xa5   : > { %v473_v0 = vmul.f32 0.2, %v460_v56  ;;  %vm469_vm6 = vcmp.ge.f32.partialorder %v460_v56, 0.0 }
  0xa7   : > { %v477_v4 = vsel %vm469_vm6, %v460_v56, %v473_v0 }
  0xa8   : > { %916 = vrot.lane.b32.xlu0 %v2708_v33, %s2506_s14  ;;  %933 = vrot.lane.b32.xlu1 %v2666_v27, %s4254_s18 }
  0xa9   : > { %956 = vrot.lane.b32.xlu2 %v2671_v28, %s4254_s18 }
  0xaa   : > { %v462_v49 = vpop.f32.mrf.mxu3  ;;  %v2822_v51 = vpop.permute.xlu0 %702 }
  0xab   : > { %v2824_v52 = vpop.permute.xlu1 %706  ;;  %v463_v53 = vadd.f32 %v462_v49, %v415_v34  ;;  %v2890_v18 = vpop.permute.xlu2 %786 }
  0xad   : > { %v474_v62 = vmul.f32 0.2, %v463_v53  ;;  %vm470_vm5 = vcmp.ge.f32.partialorder %v463_v53, 0.0 }
  0xaf   : > { %v478_v1 = vsel %vm470_vm5, %v463_v53, %v474_v62  ;;  %vm2312_vm5 = vcmask 0  }
  0xb0   : > { %935 = vrot.lane.b32.xlu0 %v2649_v24, %s4254_s18  ;;  %952 = vrot.lane.b32.xlu1 %v2691_v31, %s4254_s18 }
  0xb1   : > { %975 = vrot.lane.b32.xlu2 %v2666_v27, %s4239_s19 }
  0xb2   : > { %v465_v55 = vpop.f32.mrf.mxu3  ;;  %v2832_v58 = vpop.permute.xlu0 %721 }
  0xb3   : > { %v466_v57 = vadd.f32 %v465_v55, %v420_v38  ;;  %4257 = vst [vmem:[#allocation5_spill] sm:$0xff] %v2832_v58  ;;  %v2840_v3 = vpop.permute.xlu1 %725  ;;  %v2904_v21 = vpop.permute.xlu2 %805 }
  0xb4   : > { %4261 = vst [vmem:[#allocation9_spill] sm:$0xff] %v2904_v21 }
  0xb5   : > { %vm471_vm4 = vcmp.ge.f32.partialorder %v466_v57, 0.0  ;;  %v475_v61 = vmul.f32 0.2, %v466_v57 }
  0xb7   : > { %v479_v63 = vsel %vm471_vm4, %v466_v57, %v475_v61 }
  0xb8   : > { %533 = vmatpush.msra.mxu1 %v479_v63  ;;  %2393 = vmatpush.msra.mxu2 %v479_v63 }
  0xb9   : > { %954 = vrot.lane.b32.xlu0 %v2703_v32, %s4254_s18  ;;  %958 = vrot.lane.b32.xlu1 %v2708_v33, %s4254_s18  ;;  %s4364_s18 = smov 116  }
  0xba   : > { %534 = vmatpush.msra.mxu1 %v478_v1  ;;  %2394 = vmatpush.msra.mxu2 %v478_v1  ;;  %v2850_v7 = vpop.permute.xlu0 %727 }
  0xbb   : > { %994 = vrot.lane.b32.xlu2 %v2691_v31, %s4239_s19  ;;  %v2868_v13 = vpop.permute.xlu1 %744  ;;  %v2916_v25 = vpop.permute.xlu2 %811 }
  0xbc   : > { %535 = vmatpush.msra.mxu1 %v477_v4  ;;  %2395 = vmatpush.msra.mxu2 %v477_v4  ;;  %4263 = vst [vmem:[#allocation11_spill] sm:$0xff] %v2916_v25  ;;  %v649_v25 = vld [vmem:[%s4233_s7 + $0x8] sm:$0xff] }
  0xbe   : > { %536 = vmatpush.msra.mxu1 %v476_v8  ;;  %2396 = vmatpush.msra.mxu2 %v476_v8 }
  0xbf   : > { %2385 = vmatmul.msk.f32.vlgmr.msra.gmra.mxu1 %vm508_vm8, %v480_v5  ;;  %2387 = vmatmul.msk.f32.vlgmr.msra.gmra.mxu2 %vm508_vm8, %v482_v6 }
  0xc1   : > { %973 = vrot.lane.b32.xlu0 %v2661_v26, %s4239_s19  ;;  %977 = vrot.lane.b32.xlu1 %v2649_v24, %s4239_s19 }
  0xc2   : > { %v2870_v14 = vpop.permute.xlu0 %746 }
  0xc3   : > { %1000 = vrot.lane.b32.xlu2 %v2708_v33, %s4239_s19  ;;  %v2882_v16 = vpop.permute.xlu1 %763  ;;  %v2928_v35 = vpop.permute.xlu2 %830 }
  0xc4   : > { %4259 = vst [vmem:[#allocation7_spill] sm:$0xff] %v2882_v16 }
  0xc7   : > { %2386 = vmatmul.msk.f32.gmra.mxu1 %vm508_vm8, %v481_v11  ;;  %2388 = vmatmul.msk.f32.gmra.mxu2 %vm508_vm8, %v483_v12 }
  0xc9   : > { %979 = vrot.lane.b32.xlu0 %v2686_v30, %s4239_s19  ;;  %996 = vrot.lane.b32.xlu1 %v2703_v32, %s4239_s19 }
  0xca   : > { %v2884_v17 = vpop.permute.xlu0 %765 }
  0xcb   : > { %1019 = vrot.lane.b32.xlu2 %v2649_v24, %s4250_s30  ;;  %v2894_v19 = vpop.permute.xlu1 %769  ;;  %v2944_v46 = vpop.permute.xlu2 %849 }
  0xd1   : > { %998 = vrot.lane.b32.xlu0 %v2671_v28, %s4239_s19  ;;  %1015 = vrot.lane.b32.xlu1 %v2661_v26, %s4250_s30  ;;  %s4244_s19 = smov 110  }
  0xd2   : > { %v2900_v20 = vpop.permute.xlu0 %784 }
  0xd3   : > { %1038 = vrot.lane.b32.xlu2 %v2703_v32, %s4250_s30  ;;  %4260 = vst [vmem:[#allocation8_spill] sm:$0xff] %v2900_v20  ;;  %v2910_v22 = vpop.permute.xlu1 %788  ;;  %v2958_v54 = vpop.permute.xlu2 %868 }
  0xd4   : > { %4267 = vst [vmem:[#allocation15_spill] sm:$0xff] %v2958_v54 }
  0xd9   : > { %1017 = vrot.lane.b32.xlu0 %v2666_v27, %s4250_s30  ;;  %1021 = vrot.lane.b32.xlu1 %v2686_v30, %s4250_s30 }
  0xda   : > { %v2914_v23 = vpop.permute.xlu0 %790 }
  0xdb   : > { %1057 = vrot.lane.b32.xlu2 %v2661_v26, %s4251_s20  ;;  %4262 = vst [vmem:[#allocation10_spill] sm:$0xff] %v2914_v23  ;;  %v2924_v29 = vpop.permute.xlu1 %807  ;;  %v2968_v57 = vpop.permute.xlu2 %874 }
  0xdc   : > { %4269 = vst [vmem:[#allocation17_spill] sm:$0xff] %v2968_v57 }
  0xe1   : > { %1036 = vrot.lane.b32.xlu0 %v2691_v31, %s4250_s30  ;;  %1040 = vrot.lane.b32.xlu1 %v2671_v28, %s4250_s30 }
  0xe2   : > { %v2926_v34 = vpop.permute.xlu0 %809 }
  0xe3   : > { %1063 = vrot.lane.b32.xlu2 %v2686_v30, %s4251_s20  ;;  %v2936_v37 = vpop.permute.xlu1 %826  ;;  %v2976_v62 = vpop.permute.xlu2 %893 }
  0xe4   : > { %4264 = vst [vmem:[#allocation12_spill] sm:$0xff] %v2936_v37 }
  0xe9   : > { %1042 = vrot.lane.b32.xlu0 %v2708_v33, %s4250_s30  ;;  %1059 = vrot.lane.b32.xlu1 %v2666_v27, %s4251_s20  ;;  %s2530_s30 = smov 98  }
  0xea   : > { %v2938_v38 = vpop.permute.xlu0 %828 }
  0xeb   : > { %1082 = vrot.lane.b32.xlu2 %v2671_v28, %s4251_s20  ;;  %v2948_v49 = vpop.permute.xlu1 %832  ;;  %v2982_v1 = vpop.permute.xlu2 %912 }
  0xec   : > { %4265 = vst [vmem:[#allocation13_spill] sm:$0xff] %v2948_v49 }
  0xf1   : > { %1061 = vrot.lane.b32.xlu0 %v2649_v24, %s4251_s20  ;;  %1078 = vrot.lane.b32.xlu1 %v2691_v31, %s4251_s20 }
  0xf2   : > { %v2954_v53 = vpop.permute.xlu0 %847 }
  0xf3   : > { %1101 = vrot.lane.b32.xlu2 %v2666_v27, %s4249_s21  ;;  %4266 = vst [vmem:[#allocation14_spill] sm:$0xff] %v2954_v53  ;;  %v2964_v55 = vpop.permute.xlu1 %851  ;;  %v2988_v5 = vpop.permute.xlu2 %931 }
  0xf4   : > { %4273 = vst [vmem:[#allocation21_spill] sm:$0xff] %v2988_v5 }
  0xf9   : > { %1080 = vrot.lane.b32.xlu0 %v2703_v32, %s4251_s20  ;;  %1084 = vrot.lane.b32.xlu1 %v2708_v33, %s4251_s20  ;;  %s4255_s20 = smov 99  }
  0xfa   : > { %v2966_v56 = vpop.permute.xlu0 %853 }
  0xfb   : > { %1120 = vrot.lane.b32.xlu2 %v2691_v31, %s4249_s21  ;;  %4268 = vst [vmem:[#allocation16_spill] sm:$0xff] %v2966_v56  ;;  %v2972_v60 = vpop.permute.xlu1 %870  ;;  %v2994_v11 = vpop.permute.xlu2 %937 }
  0xfc   : > { %4275 = vst [vmem:[#allocation23_spill] sm:$0xff] %v2994_v11 }
 0x101   : > { %1099 = vrot.lane.b32.xlu0 %v2661_v26, %s4249_s21  ;;  %1103 = vrot.lane.b32.xlu1 %v2649_v24, %s4249_s21 }
 0x102   : > { %v2974_v61 = vpop.permute.xlu0 %872 }
 0x103   : > { %1126 = vrot.lane.b32.xlu2 %v2708_v33, %s4249_s21  ;;  %v2978_v63 = vpop.permute.xlu1 %889  ;;  %v3001_v37 = vpop.permute.xlu2 %956 }
 0x104   : > { %4270 = vst [vmem:[#allocation18_spill] sm:$0xff] %v2978_v63 }
 0x109   : > { %1105 = vrot.lane.b32.xlu0 %v2686_v30, %s4249_s21  ;;  %1122 = vrot.lane.b32.xlu1 %v2703_v32, %s4249_s21 }
 0x10a   : > { %v2980_v0 = vpop.permute.xlu0 %891 }
 0x10b   : > { %v2984_v2 = vpop.permute.xlu1 %895  ;;  %v3011_v59 = vpop.permute.xlu2 %975 }
 0x10c   : > { %4271 = vst [vmem:[#allocation19_spill] sm:$0xff] %v2984_v2 }
 0x10d   : > { %4277 = vst [vmem:[#allocation25_spill] sm:$0xff] %v3011_v59 }
 0x111   : > { %1124 = vrot.lane.b32.xlu0 %v2671_v28, %s4249_s21  ;;  %s2529_s21 = smov 100  }
 0x112   : > { %v2986_v4 = vpop.permute.xlu0 %910 }
 0x113   : > { %4272 = vst [vmem:[#allocation20_spill] sm:$0xff] %v2986_v4  ;;  %v2990_v6 = vpop.permute.xlu1 %914 }
 0x11a   : > { %v2992_v8 = vpop.permute.xlu0 %916 }
 0x11b   : > { %4274 = vst [vmem:[#allocation22_spill] sm:$0xff] %v2992_v8  ;;  %v2996_v12 = vpop.permute.xlu1 %933 }
 0x122   : > { %v2999_v54 = vpop.permute.xlu0 %935 }
 0x12b   : > { %v3008_v57 = vpop.permute.xlu0 %954 }
 0x13c   : > { %v538_v9 = vpop.f32.mrf.mxu1 }
 0x13d   : > { %v539_v63 = vadd.f32 %v538_v9, %v2770_v36  ;;  %v3006_v9 = vpop.permute.xlu1 %952 }
 0x13e   : > { %4276 = vst [vmem:[#allocation24_spill] sm:$0xff] %v3006_v9 }
 0x13f   : > { %v554_v53 = vmul.f32 0.2, %v539_v63  ;;  %vm550_vm9 = vcmp.ge.f32.partialorder %v539_v63, 0.0 }
 0x141   : > { %v558_v4 = vsel %vm550_vm9, %v539_v63, %v554_v53 }
 0x142   : > { %v544_v5 = vpop.f32.mrf.mxu2  ;;  %v563_v21 = vsel %vm562_vm10, %v558_v4, -inf }
 0x143   : > { %v545_v20 = vadd.f32 %v544_v5, %v2786_v40  ;;  %564 = vmax.xlane.f32.xlu2 %v563_v21  ;;  %v575_v5 = vsel %vm562_vm10, %v558_v4, 0.0  ;;  %v3023_v4 = vpop.permute.xlu2 %994 }
 0x144   : > { %v541_v11 = vpop.f32.mrf.mxu1  ;;  %4280 = vst [vmem:[#allocation28_spill] sm:$0xff] %v3023_v4 }
 0x145   : > { %v556_v8 = vmul.f32 0.2, %v545_v20  ;;  %v542_v16 = vadd.f32 %v541_v11, %v2778_v39  ;;  %vm552_vm11 = vcmp.ge.f32.partialorder %v545_v20, 0.0 }
 0x147   : > { %v555_v36 = vmul.f32 0.2, %v542_v16  ;;  %v560_v2 = vsel %vm552_vm11, %v545_v20, %v556_v8  ;;  %vm551_vm12 = vcmp.ge.f32.partialorder %v542_v16, 0.0  ;;  %v3016_v8 = vpop.permute.xlu1 %958 }
 0x148   : > { %v569_v53 = vsel %vm562_vm10, %v560_v2, -inf  ;;  %4278 = vst [vmem:[#allocation26_spill] sm:$0xff] %v3016_v8  ;;  %v581_v9 = vsel %vm562_vm10, %v560_v2, 0.0 }
 0x149   : > { %570 = vmax.xlane.f32.xlu1 %v569_v53  ;;  %v559_v63 = vsel %vm551_vm12, %v542_v16, %v555_v36  ;;  %v3019_v16 = vpop.permute.xlu0 %973 }
 0x14a   : > { %v547_v40 = vpop.f32.mrf.mxu2  ;;  %v566_v21 = vsel %vm562_vm10, %v559_v63, -inf  ;;  %4279 = vst [vmem:[#allocation27_spill] sm:$0xff] %v3019_v16  ;;  %v578_v36 = vsel %vm562_vm10, %v559_v63, 0.0 }
 0x14b   : > { %v548_v39 = vadd.f32 %v547_v40, %v2788_v41  ;;  %567 = vmax.xlane.f32.xlu0 %v566_v21  ;;  %576 = vadd.xlane.f32.xlu2 %v575_v5  ;;  %v3030_v5 = vpop.permute.xlu2 %1000 }
 0x14c   : > { %4282 = vst [vmem:[#allocation30_spill] sm:$0xff] %v3030_v5 }
 0x14d   : > { %v557_v11 = vmul.f32 0.2, %v548_v39  ;;  %vm553_vm13 = vcmp.ge.f32.partialorder %v548_v39, 0.0 }
 0x14f   : > { %v561_v20 = vsel %vm553_vm13, %v548_v39, %v557_v11  ;;  %v3025_v41 = vpop.permute.xlu1 %977 }
 0x150   : > { %v572_v53 = vsel %vm562_vm10, %v561_v20, -inf  ;;  %v584_v40 = vsel %vm562_vm10, %v561_v20, 0.0 }
 0x151   : > { %582 = vadd.xlane.f32.xlu1 %v581_v9  ;;  %v3028_v21 = vpop.permute.xlu0 %979 }
 0x152   : > { %4281 = vst [vmem:[#allocation29_spill] sm:$0xff] %v3028_v21 }
 0x153   : > { %579 = vadd.xlane.f32.xlu0 %v578_v36  ;;  %573 = vmax.xlane.f32.xlu2 %v572_v53  ;;  %v3038_v63 = vpop.permute.xlu2 %1019 }
 0x157   : > { %v3032_v2 = vpop.permute.xlu1 %996 }
 0x158   : > { %4283 = vst [vmem:[#allocation31_spill] sm:$0xff] %v3032_v2 }
 0x159   : > { %v3034_v9 = vpop.permute.xlu0 %998 }
 0x15b   : > { %585 = vadd.xlane.f32.xlu2 %v584_v40  ;;  %v3048_v20 = vpop.permute.xlu2 %1038 }
 0x15c   : > { %4286 = vst [vmem:[#allocation34_spill] sm:$0xff] %v3048_v20 }
 0x15f   : > { %v3042_v39 = vpop.permute.xlu1 %1015 }
 0x160   : > { %4284 = vst [vmem:[#allocation32_spill] sm:$0xff] %v3042_v39 }
 0x161   : > { %v3046_v11 = vpop.permute.xlu0 %1017 }
 0x162   : > { %4285 = vst [vmem:[#allocation33_spill] sm:$0xff] %v3046_v11 }
 0x163   : > { %v3064_v40 = vpop.permute.xlu2 %1057 }
 0x164   : > { %4289 = vst [vmem:[#allocation37_spill] sm:$0xff] %v3064_v40 }
 0x167   : > { %1143 = vrot.lane.b32.xlu0 %v2666_v27, %s4248_s22  ;;  %v3056_v36 = vpop.permute.xlu1 %1021 }
 0x168   : > { %4287 = vst [vmem:[#allocation35_spill] sm:$0xff] %v3056_v36  ;;  %v4296_v36 = vmov 0.0  }
 0x169   : > { %v3058_v53 = vpop.permute.xlu0 %1036  ;;  %596 = vst.msk [vmem:[#allocation3] sm:$0xff] %vm591_vm14, %v4296_v36 }
 0x16a   : > { %1141 = vrot.lane.b32.xlu1 %v2661_v26, %s4248_s22  ;;  %4288 = vst [vmem:[#allocation36_spill] sm:$0xff] %v3058_v53 }
 0x16b   : > { %v3076_v4 = vpop.permute.xlu2 %1063  ;;  %597 = vst.msk [vmem:[#allocation3 + $0x8] sm:$0xff] %vm591_vm14, %v4296_v36 }
 0x16c   : > { %4292 = vst [vmem:[#allocation40_spill] sm:$0xff] %v3076_v4 }
 0x16d   : > { %598 = vst.msk [vmem:[#allocation3 + $0x10] sm:$0xff] %vm591_vm14, %v4296_v36 }
 0x16e   : > { %599 = vst.msk [vmem:[#allocation3 + $0x18] sm:$0xff] %vm591_vm14, %v4296_v36 }
 0x16f   : > { %1162 = vrot.lane.b32.xlu0 %v2691_v31, %s4248_s22  ;;  %v3068_v39 = vpop.permute.xlu1 %1040 }
 0x170   : > { %4290 = vst [vmem:[#allocation38_spill] sm:$0xff] %v3068_v39 }
 0x171   : > { %v3074_v53 = vpop.permute.xlu0 %1042 }
 0x172   : > { %1147 = vrot.lane.b32.xlu1 %v2686_v30, %s4248_s22  ;;  %4291 = vst [vmem:[#allocation39_spill] sm:$0xff] %v3074_v53  ;;  %v2515_v53 = vmov -inf  }
 0x173   : > { %1145 = vrot.lane.b32.xlu2 %v2649_v24, %s4248_s22  ;;  %592 = vst.msk [vmem:[#allocation2] sm:$0xff] %vm591_vm14, %v2515_v53  ;;  %v3091_v4 = vpop.permute.xlu2 %1082 }
 0x174   : > { %4295 = vst [vmem:[#allocation43_spill] sm:$0xff] %v3091_v4 }
 0x175   : > { %593 = vst.msk [vmem:[#allocation2 + $0x8] sm:$0xff] %vm591_vm14, %v2515_v53 }
 0x176   : > { %594 = vst.msk [vmem:[#allocation2 + $0x10] sm:$0xff] %vm591_vm14, %v2515_v53 }
 0x177   : > { %1168 = vrot.lane.b32.xlu0 %v2708_v33, %s4248_s22  ;;  %v3084_v40 = vpop.permute.xlu1 %1059  ;;  %595 = vst.msk [vmem:[#allocation2 + $0x18] sm:$0xff] %vm591_vm14, %v2515_v53 }
 0x178   : > { %4293 = vst [vmem:[#allocation41_spill] sm:$0xff] %v3084_v40 }
 0x179   : > { %v3086_v16 = vpop.permute.xlu0 %1061 }
 0x17a   : > { %1166 = vrot.lane.b32.xlu1 %v2671_v28, %s4248_s22  ;;  %4294 = vst [vmem:[#allocation42_spill] sm:$0xff] %v3086_v16 }
 0x17b   : > { %1164 = vrot.lane.b32.xlu2 %v2703_v32, %s4248_s22  ;;  %v3114_v21 = vpop.permute.xlu2 %1101  ;;  %s2528_s22 = smov 102  }
 0x17c   : > { %4299 = vst [vmem:[#allocation46_spill] sm:$0xff] %v3114_v21  ;;  %v601_v20 = vld [vmem:[#allocation2 + $0x8] sm:$0xff] }
 0x17f   : > { %1187 = vrot.lane.b32.xlu0 %v2649_v24, %s4247_s23  ;;  %v3106_v5 = vpop.permute.xlu1 %1078 }
 0x180   : > { %4297 = vst [vmem:[#allocation44_spill] sm:$0xff] %v3106_v5 }
 0x181   : > { %v3112_v53 = vpop.permute.xlu0 %1080 }
 0x182   : > { %1185 = vrot.lane.b32.xlu1 %v2666_v27, %s4247_s23  ;;  %4298 = vst [vmem:[#allocation45_spill] sm:$0xff] %v3112_v53  ;;  %v600_v53 = vld [vmem:[#allocation2] sm:$0xff] }
 0x183   : > { %1183 = vrot.lane.b32.xlu2 %v2661_v26, %s4247_s23  ;;  %v3130_v36 = vpop.permute.xlu2 %1120 }
 0x184   : > { %4302 = vst [vmem:[#allocation49_spill] sm:$0xff] %v3130_v36 }
 0x187   : > { %1206 = vrot.lane.b32.xlu0 %v2703_v32, %s4247_s23  ;;  %v3122_v5 = vpop.permute.xlu1 %1084 }
 0x188   : > { %4300 = vst [vmem:[#allocation47_spill] sm:$0xff] %v3122_v5 }
 0x189   : > { %v3124_v8 = vpop.permute.xlu0 %1099 }
 0x18a   : > { %1204 = vrot.lane.b32.xlu1 %v2691_v31, %s4247_s23  ;;  %4301 = vst [vmem:[#allocation48_spill] sm:$0xff] %v3124_v8 }
 0x18b   : > { %1189 = vrot.lane.b32.xlu2 %v2686_v30, %s4247_s23  ;;  %v3142_v5 = vpop.permute.xlu2 %1126 }
 0x18c   : > { %4305 = vst [vmem:[#allocation52_spill] sm:$0xff] %v3142_v5  ;;  %v602_v5 = vld [vmem:[#allocation2 + $0x10] sm:$0xff] }
 0x18f   : > { %1225 = vrot.lane.b32.xlu0 %v2661_v26, %s4243_s24  ;;  %v3134_v21 = vpop.permute.xlu1 %1103 }
 0x190   : > { %4303 = vst [vmem:[#allocation50_spill] sm:$0xff] %v3134_v21 }
 0x191   : > { %v3140_v8 = vpop.permute.xlu0 %1105 }
 0x192   : > { %1210 = vrot.lane.b32.xlu1 %v2708_v33, %s4247_s23  ;;  %4304 = vst [vmem:[#allocation51_spill] sm:$0xff] %v3140_v8 }
 0x193   : > { %1208 = vrot.lane.b32.xlu2 %v2671_v28, %s4247_s23  ;;  %s2527_s23 = smov 101  }
 0x197   : > { %1231 = vrot.lane.b32.xlu0 %v2686_v30, %s4243_s24  ;;  %v3150_v36 = vpop.permute.xlu1 %1122 }
 0x198   : > { %4306 = vst [vmem:[#allocation53_spill] sm:$0xff] %v3150_v36  ;;  %v613_v36 = vld [vmem:[#allocation3] sm:$0xff] }
 0x199   : > { %v3152_v40 = vpop.permute.xlu0 %1124 }
 0x19a   : > { %1229 = vrot.lane.b32.xlu1 %v2649_v24, %s4243_s24  ;;  %4307 = vst [vmem:[#allocation54_spill] sm:$0xff] %v3152_v40 }
 0x19b   : > { %1227 = vrot.lane.b32.xlu2 %v2666_v27, %s4243_s24 }
 0x19f   : > { %1250 = vrot.lane.b32.xlu0 %v2671_v28, %s4243_s24 }
 0x1a2   : > { %1248 = vrot.lane.b32.xlu1 %v2703_v32, %s4243_s24 }
 0x1a3   : > { %1246 = vrot.lane.b32.xlu2 %v2691_v31, %s4243_s24 }
 0x1a7   : > { %1269 = vrot.lane.b32.xlu0 %v2666_v27, %s4240_s26 }
 0x1aa   : > { %1267 = vrot.lane.b32.xlu1 %v2661_v26, %s4240_s26 }
 0x1ab   : > { %1252 = vrot.lane.b32.xlu2 %v2708_v33, %s4243_s24  ;;  %s4246_s24 = smov 109  }
 0x1af   : > { %1288 = vrot.lane.b32.xlu0 %v2691_v31, %s4240_s26 }
 0x1b2   : > { %1273 = vrot.lane.b32.xlu1 %v2686_v30, %s4240_s26 }
 0x1b3   : > { %1271 = vrot.lane.b32.xlu2 %v2649_v24, %s4240_s26 }
 0x1b6   : > { %v565_v21 = vpop.xlane.xlu2 %564 }
 0x1b7   : > { %v604_v56 = vmax.f32 %v600_v53, %v565_v21  ;;  %1294 = vrot.lane.b32.xlu0 %v2708_v33, %s4240_s26 }
 0x1b9   : > { %609 = vst.msk [vmem:[#allocation2] sm:$0xff] %vm591_vm14, %v604_v56  ;;  %v615_v56 = vld [vmem:[#allocation3 + $0x10] sm:$0xff] }
 0x1ba   : > { %1292 = vrot.lane.b32.xlu1 %v2671_v28, %s4240_s26 }
 0x1bb   : > { %1290 = vrot.lane.b32.xlu2 %v2703_v32, %s4240_s26  ;;  %s4242_s26 = smov 111  }
 0x1bc   : > { %v571_v8 = vpop.xlane.xlu1 %570 }
 0x1bd   : > { %v606_v4 = vmax.f32 %v602_v5, %v571_v8 }
 0x1be   : > { %v568_v49 = vpop.xlane.xlu0 %567  ;;  %v577_v40 = vpop.xlane.xlu2 %576 }
 0x1bf   : > { %611 = vst.msk [vmem:[#allocation2 + $0x10] sm:$0xff] %vm591_vm14, %v606_v4  ;;  %v605_v21 = vmax.f32 %v601_v20, %v568_v49  ;;  %v617_v53 = vadd.f32 %v613_v36, %v577_v40  ;;  %1313 = vrot.lane.b32.xlu0 %v2649_v24, %s4241_s28  ;;  %v614_v49 = vld [vmem:[#allocation3 + $0x8] sm:$0xff]  ;;  %v603_v4 = vld [vmem:[#allocation2 + $0x18] sm:$0xff] }
 0x1c0   : > { %v3168_v11 = vld [vmem:[#allocation2] sm:$0xff] }
 0x1c1   : > { %610 = vst.msk [vmem:[#allocation2 + $0x8] sm:$0xff] %vm591_vm14, %v605_v21  ;;  %v3173_v20 = vperm.slane %v3168_v11, 0 }
 0x1c2   : > { %621 = vst.msk [vmem:[#allocation3] sm:$0xff] %vm591_vm14, %v617_v53  ;;  %1311 = vrot.lane.b32.xlu1 %v2666_v27, %s4241_s28 }
 0x1c3   : > { %1309 = vrot.lane.b32.xlu2 %v2661_v26, %s4241_s28 }
 0x1c4   : > { %v583_v8 = vpop.xlane.xlu1 %582 }
 0x1c5   : > { %v619_v5 = vadd.f32 %v615_v56, %v583_v8  ;;  %v655_v56 = vmul.f32 %v3173_v20, %v2649_v24  ;;  %v650_v8 = vld [vmem:[%s4233_s7 + $0x10] sm:$0xff] }
 0x1c6   : > { %v580_v40 = vpop.xlane.xlu0 %579  ;;  %v574_v36 = vpop.xlane.xlu2 %573 }
 0x1c7   : > { %623 = vst.msk [vmem:[#allocation3 + $0x10] sm:$0xff] %vm591_vm14, %v619_v5  ;;  %v618_v21 = vadd.f32 %v614_v49, %v580_v40  ;;  %v607_v53 = vmax.f32 %v603_v4, %v574_v36  ;;  %1332 = vrot.lane.b32.xlu0 %v2703_v32, %s4241_s28  ;;  %v3192_v49 = vperm.slane %v3168_v11, 1  ;;  %v654_v5 = vmul.f32 %v3173_v20, %v2666_v27 }
 0x1c8   : > { %v659_v36 = vadd.f32 %v655_v56, %v650_v8  ;;  %v3212_v56 = vperm.slane %v3168_v11, 2 }
 0x1c9   : > { %v632_v58 = vld [vmem:[#allocation3] sm:$0xff]  ;;  %622 = vst.msk [vmem:[#allocation3 + $0x8] sm:$0xff] %vm591_vm14, %v618_v21  ;;  %v689_v23 = vmul.f32 %v2790_v42, %v3192_v49  ;;  %v658_v8 = vadd.f32 %v654_v5, %v649_v25 }
 0x1ca   : > { %v3179_v16 = vmul.f32 0.125, %v632_v58  ;;  %612 = vst.msk [vmem:[#allocation2 + $0x18] sm:$0xff] %vm591_vm14, %v607_v53  ;;  %1330 = vrot.lane.b32.xlu1 %v2691_v31, %s4241_s28  ;;  %v616_v58 = vld [vmem:[#allocation3 + $0x18] sm:$0xff]  ;;  %v735_v25 = vmul.f32 %v2840_v3, %v3212_v56 }
 0x1cb   : > { %1315 = vrot.lane.b32.xlu2 %v2686_v30, %s4241_s28 }
 0x1cc   : > { %v3195_v4 = vperm.slane %v3179_v16, 0  ;;  %v3202_v53 = vperm.slane %v3179_v16, 1 }
 0x1ce   : > { %v586_v40 = vpop.xlane.xlu2 %585  ;;  %v664_v21 = vmul.f32 %v3195_v4, %v2671_v28  ;;  %v713_v3 = vmul.f32 %v2822_v51, %v3202_v53 }
 0x1cf   : > { %v620_v2 = vadd.f32 %v616_v58, %v586_v40  ;;  %1351 = vrot.lane.b32.xlu0 %v2661_v26, %s4242_s26  ;;  %v714_v58 = vmul.f32 %v2802_v45, %v3202_v53  ;;  %v3220_v40 = vperm.slane %v3179_v16, 2  ;;  %v688_v45 = vmul.f32 %v2800_v44, %v3192_v49 }
 0x1d0   : > { %v668_v39 = vadd.f32 %v664_v21, %v659_v36  ;;  %v663_v36 = vmul.f32 %v3195_v4, %v2703_v32  ;;  %v3236_v21 = vperm.slane %v3179_v16, 3  ;;  %v3245_v44 = vperm.slane %v3168_v11, 4 }
 0x1d1   : > { %624 = vst.msk [vmem:[#allocation3 + $0x18] sm:$0xff] %vm591_vm14, %v620_v2  ;;  %v3229_v2 = vperm.slane %v3168_v11, 3  ;;  %v756_v5 = vmul.f32 %v2870_v14, %v3220_v40 }
 0x1d2   : > { %1336 = vrot.lane.b32.xlu1 %v2708_v33, %s4241_s28  ;;  %v693_v59 = vadd.f32 %v689_v23, %v668_v39  ;;  %v667_v23 = vadd.f32 %v663_v36, %v658_v8 }
 0x1d3   : > { %1334 = vrot.lane.b32.xlu2 %v2671_v28, %s4241_s28  ;;  %v777_v8 = vmul.f32 %v2874_v15, %v3229_v2  ;;  %v755_v15 = vmul.f32 %v2868_v13, %v3220_v40  ;;  %s2523_s28 = smov 106  }
 0x1d4   : > { %v718_v42 = vadd.f32 %v714_v58, %v693_v59  ;;  %v692_v59 = vadd.f32 %v688_v45, %v667_v23  ;;  %v798_v23 = vmul.f32 %v2910_v22, %v3236_v21  ;;  %v3254_v45 = vperm.slane %v3179_v16, 4 }
 0x1d6   : > { %v739_v39 = vadd.f32 %v735_v25, %v718_v42  ;;  %v3247_v36 = vpop.permute.xlu2 %1145  ;;  %v717_v14 = vadd.f32 %v713_v3, %v692_v59  ;;  %v734_v42 = vmul.f32 %v2820_v50, %v3212_v56  ;;  %v819_v50 = vmul.f32 %v2926_v34, %v3245_v44 }
 0x1d7   : > { %1357 = vrot.lane.b32.xlu0 %v2686_v30, %s4242_s26  ;;  %v840_v13 = vmul.f32 %v2928_v35, %v3254_v45  ;;  %v797_v34 = vmul.f32 %v2890_v18, %v3236_v21 }
 0x1d8   : > { %v760_v58 = vadd.f32 %v756_v5, %v739_v39  ;;  %v738_v51 = vadd.f32 %v734_v42, %v717_v14  ;;  %v3265_v5 = vperm.slane %v3168_v11, 5 }
 0x1d9   : > { %v3267_v22 = vpop.permute.xlu0 %1143 }
 0x1da   : > { %v781_v25 = vadd.f32 %v777_v8, %v760_v58  ;;  %1355 = vrot.lane.b32.xlu1 %v2649_v24, %s4242_s26  ;;  %v759_v59 = vadd.f32 %v755_v15, %v738_v51  ;;  %v776_v24 = vmul.f32 %v2884_v17, %v3229_v2  ;;  %v3274_v58 = vperm.slane %v3179_v16, 5 }
 0x1db   : > { %1353 = vrot.lane.b32.xlu2 %v2666_v27, %s4242_s26  ;;  %v861_v17 = vmul.f32 %v2964_v55, %v3265_v5  ;;  %v3292_v15 = vperm.slane %v3179_v16, 6  ;;  %v656_v55 = vmul.f32 %v3173_v20, %v2686_v30 }
 0x1dc   : > { %v802_v39 = vadd.f32 %v798_v23, %v781_v25  ;;  %v780_v8 = vadd.f32 %v776_v24, %v759_v59  ;;  %v3278_v14 = vpop.permute.xlu1 %1141  ;;  %v3285_v25 = vperm.slane %v3168_v11, 6  ;;  %v818_v23 = vmul.f32 %v2924_v29, %v3245_v44 }
 0x1dd   : > { %v882_v18 = vmul.f32 %v2974_v61, %v3274_v58  ;;  %v839_v29 = vmul.f32 %v2938_v38, %v3254_v45  ;;  %v665_v61 = vmul.f32 %v3195_v4, %v2708_v33  ;;  %v3319_v38 = vperm.slane %v3179_v16, 7 }
 0x1de   : > { %v823_v3 = vadd.f32 %v819_v50, %v802_v39  ;;  %v801_v35 = vadd.f32 %v797_v34, %v780_v8  ;;  %v633_v39 = vld [vmem:[#allocation3 + $0x8] sm:$0xff]  ;;  %v3303_v59 = vpop.permute.xlu2 %1164  ;;  %v903_v24 = vmul.f32 %v2976_v62, %v3285_v25 }
 0x1df   : > { %1376 = vrot.lane.b32.xlu0 %v2671_v28, %s4242_s26  ;;  %v651_v28 = vld [vmem:[%s4233_s7 + $0x18] sm:$0xff]  ;;  %v3316_v8 = vld [vmem:[#allocation2 + $0x8] sm:$0xff] }
 0x1e0   : > { %v844_v42 = vadd.f32 %v840_v13, %v823_v3  ;;  %v822_v50 = vadd.f32 %v818_v23, %v801_v35  ;;  %v3312_v3 = vperm.slane %v3168_v11, 7  ;;  %v653_v13 = vmul.f32 %v3173_v20, %v2661_v26 }
 0x1e1   : > { %v660_v62 = vadd.f32 %v656_v55, %v651_v28  ;;  %v3326_v35 = vmul.f32 0.125, %v633_v39  ;;  %v924_v20 = vmul.f32 %v2990_v6, %v3292_v15  ;;  %v662_v23 = vmul.f32 %v3195_v4, %v2691_v31  ;;  %v3332_v16 = vpop.permute.xlu0 %1162 }
 0x1e2   : > { %v865_v51 = vadd.f32 %v861_v17, %v844_v42  ;;  %1374 = vrot.lane.b32.xlu1 %v2703_v32, %s4242_s26  ;;  %v843_v34 = vadd.f32 %v839_v29, %v822_v50  ;;  %v860_v42 = vmul.f32 %v2944_v46, %v3265_v5  ;;  %v648_v17 = vld [vmem:[%s4233_s7] sm:$0xff]  ;;  %v881_v46 = vmul.f32 %v2972_v60, %v3274_v58 }
 0x1e3   : > { %1372 = vrot.lane.b32.xlu2 %v2691_v31, %s4242_s26  ;;  %v690_v50 = vmul.f32 %v2810_v47, %v3192_v49  ;;  %v945_v6 = vmul.f32 %v2999_v54, %v3312_v3  ;;  %v3343_v4 = vperm.slane %v3316_v8, 0  ;;  %v657_v55 = vadd.f32 %v653_v13, %v648_v17 }
 0x1e4   : > { %v886_v32 = vadd.f32 %v882_v18, %v865_v51  ;;  %v864_v51 = vadd.f32 %v860_v42, %v843_v34  ;;  %v669_v18 = vadd.f32 %v665_v61, %v660_v62  ;;  %v902_v60 = vmul.f32 %v2980_v0, %v3285_v25  ;;  %v3347_v29 = vpop.permute.xlu1 %1147 }
 0x1e5   : > { %v715_v47 = vmul.f32 %v2824_v52, %v3202_v53  ;;  %v3354_v54 = vperm.slane %v3326_v35, 0  ;;  %v923_v0 = vmul.f32 %v2982_v1, %v3292_v15  ;;  %v736_v42 = vmul.f32 %v2850_v7, %v3212_v56 }
 0x1e6   : > { %v907_v11 = vadd.f32 %v903_v24, %v886_v32  ;;  %v885_v39 = vadd.f32 %v881_v46, %v864_v51  ;;  %v694_v61 = vadd.f32 %v690_v50, %v669_v18  ;;  %v666_v24 = vadd.f32 %v662_v23, %v657_v55 }
 0x1e7   : > { %1395 = vrot.lane.b32.xlu0 %v2666_v27, %s4244_s19  ;;  %v966_v27 = vmul.f32 %v3001_v37, %v3319_v38  ;;  %v987_v37 = vmul.f32 %v3025_v41, %v3343_v4  ;;  %v3367_v17 = vperm.slane %v3316_v8, 1  ;;  %v944_v1 = vmul.f32 %v2996_v12, %v3312_v3 }
 0x1e8   : > { %v928_v28 = vadd.f32 %v924_v20, %v907_v11  ;;  %v906_v13 = vadd.f32 %v902_v60, %v885_v39  ;;  %v719_v34 = vadd.f32 %v715_v47, %v694_v61  ;;  %v757_v7 = vmul.f32 %v2852_v10, %v3220_v40  ;;  %v3375_v20 = vpop.permute.xlu2 %1183  ;;  %v4309_v39 = vld [vmem:[#allocation10_spill] sm:$0xff] }
 0x1e9   : > { %v1008_v41 = vmul.f32 %v3034_v9, %v3354_v54  ;;  %v3380_v23 = vperm.slane %v3326_v35, 1  ;;  %v778_v12 = vmul.f32 %v2894_v19, %v3229_v2  ;;  %v1029_v18 = vmul.f32 %v3038_v63, %v3367_v17  ;;  %v4310_v61 = vld [vmem:[#allocation38_spill] sm:$0xff] }
 0x1ea   : > { %v949_v32 = vadd.f32 %v945_v6, %v928_v28  ;;  %1393 = vrot.lane.b32.xlu1 %v2661_v26, %s4244_s19  ;;  %v687_v26 = vmul.f32 %v2798_v43, %v3192_v49  ;;  %v927_v62 = vadd.f32 %v923_v0, %v906_v13  ;;  %v740_v11 = vadd.f32 %v736_v42, %v719_v34  ;;  %v3395_v28 = vpop.permute.xlu0 %1168  ;;  %v4312_v13 = vld [vmem:[#allocation11_spill] sm:$0xff]  ;;  %v3415_v42 = vld [vmem:[%s4231_s5 + $0x10] sm:$0xff] }
 0x1eb   : > { %1378 = vrot.lane.b32.xlu2 %v2708_v33, %s4242_s26  ;;  %v965_v43 = vmul.f32 %v3008_v57, %v3319_v38  ;;  %v3391_v9 = vperm.slane %v3316_v8, 2  ;;  %v712_v50 = vmul.f32 %v2812_v48, %v3202_v53  ;;  %v4308_v57 = vld [vmem:[#allocation25_spill] sm:$0xff]  ;;  %v1050_v63 = vmul.f32 %v4310_v61, %v3380_v23  ;;  %v4311_v48 = vld [vmem:[#allocation31_spill] sm:$0xff]  ;;  %v4320_v61 = vld [vmem:[#allocation50_spill] sm:$0xff]  ;;  %s4252_s26 = smov 107  }
 0x1ec   : > { %v970_v52 = vadd.f32 %v966_v27, %v949_v32  ;;  %v691_v51 = vadd.f32 %v687_v26, %v666_v24  ;;  %v948_v46 = vadd.f32 %v944_v1, %v927_v62  ;;  %v761_v49 = vadd.f32 %v757_v7, %v740_v11  ;;  %v1167_v34 = vpop.permute.xlu1 %1166  ;;  %v4314_v62 = vld [vmem:[#allocation5_spill] sm:$0xff] }
 0x1ed   : > { %v986_v6 = vmul.f32 %v4308_v57, %v3343_v4  ;;  %v3404_v47 = vperm.slane %v3326_v35, 2  ;;  %v1007_v53 = vmul.f32 %v4311_v48, %v3354_v54  ;;  %v820_v0 = vmul.f32 %v4312_v13, %v3245_v44  ;;  %v4315_v11 = vld [vmem:[#allocation33_spill] sm:$0xff] }
 0x1ee   : > { %v991_v33 = vadd.f32 %v987_v37, %v970_v52  ;;  %v969_v55 = vadd.f32 %v965_v43, %v948_v46  ;;  %v782_v19 = vadd.f32 %v778_v12, %v761_v49  ;;  %v716_v32 = vadd.f32 %v712_v50, %v691_v51  ;;  %v4316_v51 = vld [vmem:[#allocation13_spill] sm:$0xff]  ;;  %v4317_v12 = vld [vmem:[#allocation43_spill] sm:$0xff] }
 0x1ef   : > { %1414 = vrot.lane.b32.xlu0 %v2691_v31, %s4244_s19  ;;  %v799_v31 = vmul.f32 %v4309_v39, %v3236_v21  ;;  %v3422_v26 = vperm.slane %v3316_v8, 3  ;;  %v733_v1 = vmul.f32 %v4314_v62, %v3212_v56  ;;  %v1028_v7 = vmul.f32 %v4315_v11, %v3367_v17  ;;  %v4318_v56 = vld [vmem:[#allocation34_spill] sm:$0xff] }
 0x1f0   : > { %v1012_v10 = vadd.f32 %v1008_v41, %v991_v33  ;;  %v990_v27 = vadd.f32 %v986_v6, %v969_v55  ;;  %v841_v46 = vmul.f32 %v4316_v51, %v3254_v45  ;;  %v3430_v43 = vpop.permute.xlu2 %1189  ;;  %v1049_v57 = vmul.f32 %v4318_v56, %v3380_v23  ;;  %v4324_v62 = vld [vmem:[#allocation54_spill] sm:$0xff] }
 0x1f1   : > { %v803_v24 = vadd.f32 %v799_v31, %v782_v19  ;;  %v737_v50 = vadd.f32 %v733_v1, %v716_v32  ;;  %v4319_v19 = vld [vmem:[#allocation16_spill] sm:$0xff]  ;;  %v3444_v31 = vld [vmem:[%s4232_s6 + $0x18] sm:$0xff]  ;;  %v3459_v11 = vperm.slane %v3316_v8, 4 }
 0x1f2   : > { %v1033_v60 = vadd.f32 %v1029_v18, %v1012_v10  ;;  %1399 = vrot.lane.b32.xlu1 %v2686_v30, %s4244_s19  ;;  %v4313_v30 = vld [vmem:[#allocation42_spill] sm:$0xff]  ;;  %v1011_v33 = vadd.f32 %v1007_v53, %v990_v27  ;;  %v1092_v10 = vmul.f32 %v4317_v12, %v3404_v47  ;;  %v3435_v18 = vperm.slane %v3326_v35, 3  ;;  %v1188_v53 = vpop.permute.xlu0 %1187  ;;  %v4322_v27 = vld [vmem:[#allocation41_spill] sm:$0xff] }
 0x1f3   : > { %1397 = vrot.lane.b32.xlu2 %v3415_v42, %s4244_s19  ;;  %v1071_v37 = vmul.f32 %v4313_v30, %v3391_v9  ;;  %v824_v41 = vadd.f32 %v820_v0, %v803_v24  ;;  %v862_v39 = vmul.f32 %v4319_v19, %v3265_v5  ;;  %v4321_v32 = vld [vmem:[#allocation6_spill] sm:$0xff]  ;;  %v1070_v24 = vmul.f32 %v4322_v27, %v3391_v9 }
 0x1f4   : > { %v1054_v52 = vadd.f32 %v1050_v63, %v1033_v60  ;;  %v1032_v6 = vadd.f32 %v1028_v7, %v1011_v33  ;;  %v1113_v63 = vmul.f32 %v4320_v61, %v3422_v26  ;;  %v754_v48 = vmul.f32 %v4321_v32, %v3220_v40  ;;  %v3464_v40 = vld [vmem:[%s4232_s6 + $0x10] sm:$0xff] }
 0x1f5   : > { %v845_v55 = vadd.f32 %v841_v46, %v824_v41  ;;  %v1134_v1 = vmul.f32 %v4324_v62, %v3435_v18  ;;  %v4325_v33 = vld [vmem:[#allocation45_spill] sm:$0xff]  ;;  %v3484_v19 = vperm.slane %v3326_v35, 4  ;;  %v4329_v32 = vld [vmem:[#allocation22_spill] sm:$0xff]  ;;  %v4331_v62 = vld [vmem:[#allocation23_spill] sm:$0xff] }
 0x1f6   : > { %v1075_v49 = vadd.f32 %v1071_v37, %v1054_v52  ;;  %v1053_v13 = vadd.f32 %v1049_v57, %v1032_v6  ;;  %v4323_v52 = vld [vmem:[#allocation17_spill] sm:$0xff]  ;;  %v758_v7 = vadd.f32 %v754_v48, %v737_v50  ;;  %v1091_v41 = vmul.f32 %v4325_v33, %v3404_v47  ;;  %v4327_v6 = vld [vmem:[#allocation7_spill] sm:$0xff]  ;;  %v4332_v33 = vld [vmem:[#allocation8_spill] sm:$0xff] }
 0x1f7   : > { %1420 = vrot.lane.b32.xlu0 %v3444_v31, %s4244_s19  ;;  %v866_v0 = vadd.f32 %v862_v39, %v845_v55  ;;  %v883_v30 = vmul.f32 %v4323_v52, %v3274_v58  ;;  %v3475_v50 = vld [vmem:[%s4232_s6 + $0x8] sm:$0xff]  ;;  %v1155_v57 = vmul.f32 %v3247_v36, %v3459_v11  ;;  %v775_v55 = vmul.f32 %v4327_v6, %v3229_v2  ;;  %v4328_v39 = vld [vmem:[#allocation46_spill] sm:$0xff] }
 0x1f8   : > { %v1096_v60 = vadd.f32 %v1092_v10, %v1075_v49  ;;  %v1074_v51 = vadd.f32 %v1070_v24, %v1053_v13  ;;  %v4326_v49 = vld [vmem:[#allocation19_spill] sm:$0xff]  ;;  %v1186_v10 = vpop.permute.xlu1 %1185  ;;  %v925_v48 = vmul.f32 %v4329_v32, %v3292_v15  ;;  %v1209_v27 = vpop.permute.xlu2 %1208  ;;  %v1176_v36 = vmul.f32 %v1167_v34, %v3484_v19  ;;  %v4330_v2 = vld [vmem:[#allocation53_spill] sm:$0xff] }
 0x1f9   : > { %v887_v46 = vadd.f32 %v883_v30, %v866_v0  ;;  %v904_v12 = vmul.f32 %v4326_v49, %v3285_v25  ;;  %v779_v13 = vadd.f32 %v775_v55, %v758_v7  ;;  %v3491_v0 = vperm.slane %v3316_v8, 5 }
 0x1fa   : > { %v1117_v37 = vadd.f32 %v1113_v63, %v1096_v60  ;;  %1418 = vrot.lane.b32.xlu1 %v3464_v40, %s4244_s19  ;;  %v1112_v60 = vmul.f32 %v4328_v39, %v3422_v26  ;;  %v1095_v61 = vadd.f32 %v1091_v41, %v1074_v51  ;;  %v1133_v52 = vmul.f32 %v4330_v2, %v3435_v18 }
 0x1fb   : > { %1416 = vrot.lane.b32.xlu2 %v3475_v50, %s4244_s19  ;;  %v908_v63 = vadd.f32 %v904_v12, %v887_v46  ;;  %v796_v7 = vmul.f32 %v4332_v33, %v3236_v21  ;;  %v1197_v51 = vmul.f32 %v1188_v53, %v3491_v0  ;;  %v3504_v34 = vperm.slane %v3326_v35, 5  ;;  %v1207_v46 = vpop.permute.xlu0 %1206  ;;  %v3514_v21 = vld [vmem:[%s4231_s5 + $0x8] sm:$0xff]  ;;  %v4337_v33 = vld [vmem:[#allocation35_spill] sm:$0xff]  ;;  %s4245_s19 = smov 108  }
 0x1fc   : > { %v1138_v56 = vadd.f32 %v1134_v1, %v1117_v37  ;;  %v1116_v30 = vadd.f32 %v1112_v60, %v1095_v61  ;;  %v946_v1 = vmul.f32 %v4331_v62, %v3312_v3  ;;  %v1154_v12 = vmul.f32 %v3267_v22, %v3459_v11 }
 0x1fd   : > { %v929_v37 = vadd.f32 %v925_v48, %v908_v63  ;;  %v800_v55 = vadd.f32 %v796_v7, %v779_v13  ;;  %v1218_v60 = vmul.f32 %v1209_v27, %v3504_v34  ;;  %v1175_v22 = vmul.f32 %v3303_v59, %v3484_v19  ;;  %v4334_v63 = vld [vmem:[#allocation29_spill] sm:$0xff]  ;;  %v3527_v27 = vld [vmem:[%s4231_s5] sm:$0xff] }
 0x1fe   : > { %v1159_v24 = vadd.f32 %v1155_v57, %v1138_v56  ;;  %v1137_v49 = vadd.f32 %v1133_v52, %v1116_v30  ;;  %v4333_v57 = vld [vmem:[#allocation26_spill] sm:$0xff]  ;;  %v988_v32 = vmul.f32 %v4334_v63, %v3343_v4  ;;  %v1030_v7 = vmul.f32 %v4337_v33, %v3367_v17  ;;  %v4343_v33 = vld [vmem:[#allocation51_spill] sm:$0xff] }
 0x1ff   : > { %1439 = vrot.lane.b32.xlu0 %v3415_v42, %s4246_s24  ;;  %v950_v56 = vadd.f32 %v946_v1, %v929_v37  ;;  %v967_v6 = vmul.f32 %v4333_v57, %v3319_v38  ;;  %v4336_v52 = vld [vmem:[#allocation30_spill] sm:$0xff]  ;;  %v1196_v37 = vmul.f32 %v1186_v10, %v3491_v0 }
 0x200   : > { %v1180_v41 = vadd.f32 %v1176_v36, %v1159_v24  ;;  %v1158_v53 = vadd.f32 %v1154_v12, %v1137_v49  ;;  %v3522_v48 = vpop.permute.xlu1 %1204  ;;  %v4335_v24 = vld [vmem:[#allocation9_spill] sm:$0xff]  ;;  %v1009_v30 = vmul.f32 %v4336_v52, %v3354_v54  ;;  %v1228_v62 = vpop.permute.xlu2 %1227  ;;  %v1217_v49 = vmul.f32 %v1207_v46, %v3504_v34  ;;  %v3554_v46 = vld [vmem:[%s4232_s6] sm:$0xff] }
 0x201   : > { %v971_v61 = vadd.f32 %v967_v6, %v950_v56  ;;  %v817_v13 = vmul.f32 %v4335_v24, %v3245_v44  ;;  %v3540_v12 = vperm.slane %v3316_v8, 6  ;;  %v4338_v44 = vld [vmem:[#allocation12_spill] sm:$0xff]  ;;  %v4339_v6 = vld [vmem:[#allocation39_spill] sm:$0xff] }
 0x202   : > { %v1201_v39 = vadd.f32 %v1197_v51, %v1180_v41  ;;  %1437 = vrot.lane.b32.xlu1 %v3514_v21, %s4246_s24  ;;  %v1179_v2 = vadd.f32 %v1175_v22, %v1158_v53  ;;  %v838_v56 = vmul.f32 %v4338_v44, %v3254_v45  ;;  %v4340_v45 = vld [vmem:[#allocation40_spill] sm:$0xff]  ;;  %v3563_v24 = vld [vmem:[%s4231_s5 + $0x18] sm:$0xff] }
 0x203   : > { %1435 = vrot.lane.b32.xlu2 %v3527_v27, %s4246_s24  ;;  %v992_v59 = vadd.f32 %v988_v32, %v971_v61  ;;  %v821_v1 = vadd.f32 %v817_v13, %v800_v55  ;;  %v3546_v57 = vpop.permute.xlu0 %1225  ;;  %v1051_v55 = vmul.f32 %v4339_v6, %v3380_v23  ;;  %v1072_v61 = vmul.f32 %v4340_v45, %v3391_v9  ;;  %v4341_v13 = vld [vmem:[#allocation14_spill] sm:$0xff]  ;;  %v4342_v52 = vld [vmem:[#allocation47_spill] sm:$0xff]  ;;  %v4345_v44 = vld [vmem:[#allocation52_spill] sm:$0xff] }
 0x204   : > { %v1222_v36 = vadd.f32 %v1218_v60, %v1201_v39  ;;  %v1200_v51 = vadd.f32 %v1196_v37, %v1179_v2  ;;  %v1238_v60 = vmul.f32 %v1228_v62, %v3540_v12  ;;  %v859_v2 = vmul.f32 %v4341_v13, %v3265_v5 }
 0x205   : > { %v1013_v41 = vadd.f32 %v1009_v30, %v992_v59  ;;  %v842_v53 = vadd.f32 %v838_v56, %v821_v1  ;;  %v1093_v30 = vmul.f32 %v4342_v52, %v3404_v47  ;;  %v1135_v56 = vmul.f32 %v4345_v44, %v3435_v18 }
 0x206   : > { %v1221_v39 = vadd.f32 %v1217_v49, %v1200_v51  ;;  %v1177_v45 = vmul.f32 %v3395_v28, %v3484_v19 }
 0x207   : > { %1458 = vrot.lane.b32.xlu0 %v3475_v50, %s4246_s24  ;;  %v1034_v10 = vadd.f32 %v1030_v7, %v1013_v41  ;;  %v863_v62 = vadd.f32 %v859_v2, %v842_v53  ;;  %v1114_v7 = vmul.f32 %v4343_v33, %v3422_v26  ;;  %v4344_v41 = vld [vmem:[#allocation15_spill] sm:$0xff] }
 0x208   : > { %v1242_v63 = vadd.f32 %v1238_v60, %v1221_v39  ;;  %v1211_v32 = vpop.permute.xlu1 %1210  ;;  %v3571_v37 = vpop.permute.xlu2 %1246  ;;  %v880_v51 = vmul.f32 %v4344_v41, %v3274_v58  ;;  %v4346_v60 = vld [vmem:[#allocation18_spill] sm:$0xff] }
 0x209   : > { %v1055_v22 = vadd.f32 %v1051_v55, %v1034_v10  ;;  %v1156_v55 = vmul.f32 %v3347_v29, %v3459_v11  ;;  %v901_v58 = vmul.f32 %v4346_v60, %v3285_v25  ;;  %v1198_v29 = vmul.f32 %v3430_v43, %v3491_v0  ;;  %v4347_v25 = vld [vmem:[#allocation20_spill] sm:$0xff] }
 0x20a   : > { %1456 = vrot.lane.b32.xlu1 %v3554_v46, %s4246_s24  ;;  %v884_v10 = vadd.f32 %v880_v51, %v863_v62  ;;  %v1219_v52 = vmul.f32 %v1211_v32, %v3504_v34  ;;  %v922_v62 = vmul.f32 %v4347_v25, %v3292_v15  ;;  %v4348_v15 = vld [vmem:[#allocation21_spill] sm:$0xff]  ;;  %v4351_v25 = vld [vmem:[#allocation28_spill] sm:$0xff] }
 0x20b   : > { %1441 = vrot.lane.b32.xlu2 %v3563_v24, %s4246_s24  ;;  %v1076_v59 = vadd.f32 %v1072_v61, %v1055_v22  ;;  %v1232_v49 = vpop.permute.xlu0 %1231 }
 0x20c   : > { %v905_v13 = vadd.f32 %v901_v58, %v884_v10  ;;  %v1240_v33 = vmul.f32 %v1232_v49, %v3540_v12  ;;  %v3613_v49 = vperm.slane %v3316_v8, 7  ;;  %v4349_v58 = vld [vmem:[#allocation24_spill] sm:$0xff] }
 0x20d   : > { %v1097_v1 = vadd.f32 %v1093_v30, %v1076_v59  ;;  %v3596_v30 = vperm.slane %v3326_v35, 6 }
 0x20f   : > { %1477 = vrot.lane.b32.xlu0 %v3527_v27, %s4245_s19  ;;  %v1118_v5 = vadd.f32 %v1114_v7, %v1097_v1  ;;  %v926_v7 = vadd.f32 %v922_v62, %v905_v13  ;;  %v1006_v62 = vmul.f32 %v4351_v25, %v3354_v54 }
 0x210   : > { %v1230_v39 = vpop.permute.xlu1 %1229  ;;  %v1253_v61 = vpop.permute.xlu2 %1252 }
 0x211   : > { %v1139_v6 = vadd.f32 %v1135_v56, %v1118_v5  ;;  %v1239_v53 = vmul.f32 %v1230_v39, %v3540_v12  ;;  %v1261_v32 = vmul.f32 %v1253_v61, %v3596_v30  ;;  %v943_v5 = vmul.f32 %v4348_v15, %v3312_v3 }
 0x212   : > { %1462 = vrot.lane.b32.xlu1 %v3444_v31, %s4246_s24 }
 0x213   : > { %1460 = vrot.lane.b32.xlu2 %v3464_v40, %s4246_s24  ;;  %v1160_v22 = vadd.f32 %v1156_v55, %v1139_v6  ;;  %v1243_v2 = vadd.f32 %v1239_v53, %v1222_v36  ;;  %v1251_v1 = vpop.permute.xlu0 %1250  ;;  %v947_v6 = vadd.f32 %v943_v5, %v926_v7  ;;  %v964_v53 = vmul.f32 %v4349_v58, %v3319_v38  ;;  %v3652_v5 = vld [vmem:[#allocation2 + $0x10] sm:$0xff]  ;;  %s2526_s24 = smov 103  }
 0x214   : > { %v1260_v36 = vmul.f32 %v1251_v1, %v3596_v30 }
 0x215   : > { %v1181_v59 = vadd.f32 %v1177_v45, %v1160_v22  ;;  %v968_v61 = vadd.f32 %v964_v53, %v947_v6 }
 0x216   : > { %v1264_v41 = vadd.f32 %v1260_v36, %v1243_v2 }
 0x217   : > { %1483 = vrot.lane.b32.xlu0 %v3563_v24, %s4245_s19  ;;  %v1202_v28 = vadd.f32 %v1198_v29, %v1181_v59  ;;  %v3630_v59 = vperm.slane %v3326_v35, 7 }
 0x218   : > { %v1249_v51 = vpop.permute.xlu1 %1248  ;;  %v1272_v10 = vpop.permute.xlu2 %1271 }
 0x219   : > { %v1223_v43 = vadd.f32 %v1219_v52, %v1202_v28  ;;  %v1259_v44 = vmul.f32 %v1249_v51, %v3596_v30  ;;  %v1281_v39 = vmul.f32 %v1272_v10, %v3613_v49  ;;  %v4354_v10 = vld [vmem:[#allocation37_spill] sm:$0xff] }
 0x21a   : > { %1481 = vrot.lane.b32.xlu1 %v3415_v42, %s4245_s19  ;;  %v1069_v6 = vmul.f32 %v4354_v10, %v3391_v9  ;;  %v1174_v10 = vmul.f32 %v3332_v16, %v3484_v19  ;;  %v1216_v16 = vmul.f32 %v3522_v48, %v3504_v34 }
 0x21b   : > { %1479 = vrot.lane.b32.xlu2 %v3514_v21, %s4245_s19  ;;  %v1244_v56 = vadd.f32 %v1240_v33, %v1223_v43  ;;  %v1263_v55 = vadd.f32 %v1259_v44, %v1242_v63  ;;  %v1285_v22 = vadd.f32 %v1281_v39, %v1264_v41  ;;  %v1270_v3 = vpop.permute.xlu0 %1269  ;;  %v4350_v63 = vld [vmem:[#allocation27_spill] sm:$0xff]  ;;  %v4353_v41 = vld [vmem:[#allocation36_spill] sm:$0xff] }
 0x21c   : > { %v1280_v45 = vmul.f32 %v1270_v3, %v3613_v49  ;;  %v985_v2 = vmul.f32 %v4350_v63, %v3343_v4  ;;  %v4352_v4 = vld [vmem:[#allocation32_spill] sm:$0xff]  ;;  %v1048_v51 = vmul.f32 %v4353_v41, %v3380_v23  ;;  %v634_v39 = vld [vmem:[#allocation3 + $0x10] sm:$0xff] }
 0x21d   : > { %v1265_v60 = vadd.f32 %v1261_v32, %v1244_v56  ;;  %v1027_v36 = vmul.f32 %v4352_v4, %v3367_v17 }
 0x21e   : > { %v1284_v8 = vadd.f32 %v1280_v45, %v1263_v55  ;;  %v989_v29 = vadd.f32 %v985_v2, %v968_v61  ;;  %v3662_v55 = vperm.slane %v3652_v5, 0  ;;  %v3668_v45 = vmul.f32 0.125, %v634_v39  ;;  %v4355_v61 = vld [vmem:[#allocation44_spill] sm:$0xff] }
 0x21f   : > { %1502 = vrot.lane.b32.xlu0 %v3464_v40, %s4245_s19  ;;  %v1090_v9 = vmul.f32 %v4355_v61, %v3404_v47 }
 0x220   : > { %v3623_v13 = vpop.permute.xlu1 %1267  ;;  %v1291_v38 = vpop.permute.xlu2 %1290  ;;  %v1010_v33 = vadd.f32 %v1006_v62, %v989_v29  ;;  %v3681_v47 = vperm.slane %v3668_v45, 0  ;;  %v1371_v34 = vperm.slane %v3668_v45, 1 }
 0x221   : > { %v1301_v52 = vmul.f32 %v1291_v38, %v3630_v59 }
 0x222   : > { %1500 = vrot.lane.b32.xlu1 %v3475_v50, %s4245_s19  ;;  %v1031_v32 = vadd.f32 %v1027_v36, %v1010_v33 }
 0x223   : > { %1498 = vrot.lane.b32.xlu2 %v3554_v46, %s4245_s19  ;;  %v1305_v1 = vadd.f32 %v1301_v52, %v1284_v8  ;;  %v3637_v28 = vpop.permute.xlu0 %1288  ;;  %v4356_v52 = vld [vmem:[#allocation48_spill] sm:$0xff] }
 0x224   : > { %v1052_v44 = vadd.f32 %v1048_v51, %v1031_v32  ;;  %v1111_v25 = vmul.f32 %v4356_v52, %v3422_v26  ;;  %v1300_v52 = vmul.f32 %v3637_v28, %v3630_v59 }
 0x226   : > { %v1073_v58 = vadd.f32 %v1069_v6, %v1052_v44  ;;  %v1350_v44 = vperm.slane %v3652_v5, 1 }
 0x227   : > { %1521 = vrot.lane.b32.xlu0 %v3514_v21, %s4252_s26 }
 0x228   : > { %v1274_v35 = vpop.permute.xlu1 %1273  ;;  %v3646_v43 = vpop.permute.xlu2 %1309  ;;  %v1094_v38 = vadd.f32 %v1090_v9, %v1073_v58 }
 0x229   : > { %v1282_v7 = vmul.f32 %v1274_v35, %v3613_v49 }
 0x22a   : > { %1519 = vrot.lane.b32.xlu1 %v3527_v27, %s4252_s26  ;;  %v1115_v35 = vadd.f32 %v1111_v25, %v1094_v38 }
 0x22b   : > { %1504 = vrot.lane.b32.xlu2 %v3444_v31, %s4245_s19  ;;  %v1286_v54 = vadd.f32 %v1282_v7, %v1265_v60  ;;  %v1295_v15 = vpop.permute.xlu0 %1294  ;;  %v4357_v7 = vld [vmem:[#allocation49_spill] sm:$0xff]  ;;  %s2525_s19 = smov 105  }
 0x22c   : > { %v1303_v31 = vmul.f32 %v1295_v15, %v3630_v59  ;;  %v1132_v32 = vmul.f32 %v4357_v7, %v3435_v18 }
 0x22e   : > { %v1307_v17 = vadd.f32 %v1303_v31, %v1286_v54  ;;  %v1136_v51 = vadd.f32 %v1132_v32, %v1115_v35  ;;  %v1153_v31 = vmul.f32 %v3278_v14, %v3459_v11  ;;  %v1195_v14 = vmul.f32 %v3375_v20, %v3491_v0 }
 0x22f   : > { %1540 = vrot.lane.b32.xlu0 %v3554_v46, %s4252_s26 }
 0x230   : > { %v1293_v56 = vpop.permute.xlu1 %1292  ;;  %v1316_v60 = vpop.permute.xlu2 %1315 }
 0x231   : > { %v1302_v23 = vmul.f32 %v1293_v56, %v3630_v59  ;;  %v1324_v3 = vmul.f32 %v1316_v60, %v3662_v55  ;;  %v1392_v59 = vperm.slane %v3652_v5, 2 }
 0x232   : > { %1525 = vrot.lane.b32.xlu1 %v3563_v24, %s4252_s26 }
 0x233   : > { %1523 = vrot.lane.b32.xlu2 %v3415_v42, %s4252_s26  ;;  %v1306_v53 = vadd.f32 %v1302_v23, %v1285_v22  ;;  %v1328_v8 = vadd.f32 %v1324_v3, %v1307_v17  ;;  %v1314_v63 = vpop.permute.xlu0 %1313  ;;  %v1157_v17 = vadd.f32 %v1153_v31, %v1136_v51 }
 0x234   : > { %v1323_v2 = vmul.f32 %v1314_v63, %v3662_v55  ;;  %v1237_v63 = vmul.f32 %v3546_v57, %v3540_v12  ;;  %v1279_v12 = vmul.f32 %v3623_v13, %v3613_v49 }
 0x235   : > { %v1178_v39 = vadd.f32 %v1174_v10, %v1157_v17  ;;  %v1413_v17 = vperm.slane %v3668_v45, 2 }
 0x236   : > { %v1327_v22 = vadd.f32 %v1323_v2, %v1306_v53 }
 0x237   : > { %1582 = vrot.lane.b32.xlu0 %v3554_v46, %s2523_s28  ;;  %v1199_v53 = vadd.f32 %v1195_v14, %v1178_v39 }
 0x238   : > { %v1312_v29 = vpop.permute.xlu1 %1311  ;;  %v1335_v33 = vpop.permute.xlu2 %1334 }
 0x239   : > { %v1322_v62 = vmul.f32 %v1312_v29, %v3662_v55  ;;  %v1344_v36 = vmul.f32 %v1335_v33, %v3681_v47  ;;  %v1220_v9 = vadd.f32 %v1216_v16, %v1199_v53  ;;  %v1321_v33 = vmul.f32 %v3646_v43, %v3662_v55  ;;  %v3754_v16 = vld [vmem:[%s4234_s8] ss:$0 sm:$0xff] }
 0x23a   : > { %1561 = vrot.lane.b32.xlu1 %v3527_v27, %s2523_s28 }
 0x23b   : > { %1542 = vrot.lane.b32.xlu2 %v3475_v50, %s4252_s26  ;;  %v1326_v4 = vadd.f32 %v1322_v62, %v1305_v1  ;;  %v1348_v54 = vadd.f32 %v1344_v36, %v1327_v22  ;;  %v1333_v41 = vpop.permute.xlu0 %1332  ;;  %v1241_v38 = vadd.f32 %v1237_v63, %v1220_v9  ;;  %s2532_s26 = smov 97  }
 0x23c   : > { %v1343_v26 = vmul.f32 %v1333_v41, %v3681_v47 }
 0x23e   : > { %v1347_v15 = vadd.f32 %v1343_v26, %v1326_v4 }
 0x23f   : > { %1645 = vrot.lane.b32.xlu0 %v3527_v27, %s2524_s29 }
 0x240   : > { %v1331_v1 = vpop.permute.xlu1 %1330  ;;  %v1354_v18 = vpop.permute.xlu2 %1353 }
 0x241   : > { %v1364_v56 = vmul.f32 %v1354_v18, %v1350_v44  ;;  %v1342_v4 = vmul.f32 %v1331_v1, %v3681_v47 }
 0x242   : > { %1624 = vrot.lane.b32.xlu1 %v3554_v46, %s2525_s19 }
 0x243   : > { %1603 = vrot.lane.b32.xlu2 %v3527_v27, %s2525_s19  ;;  %v1368_v6 = vadd.f32 %v1364_v56, %v1347_v15  ;;  %v1352_v23 = vpop.permute.xlu0 %1351 }
 0x244   : > { %v1363_v32 = vmul.f32 %v1352_v23, %v1350_v44 }
 0x247   : > { %1708 = vrot.lane.b32.xlu0 %v3554_v46, %s2526_s24 }
 0x248   : > { %v1337_v60 = vpop.permute.xlu1 %1336  ;;  %v1373_v58 = vpop.permute.xlu2 %1372 }
 0x249   : > { %v1345_v11 = vmul.f32 %v1337_v60, %v3681_v47  ;;  %v1384_v55 = vmul.f32 %v1373_v58, %v1371_v34 }
 0x24a   : > { %1687 = vrot.lane.b32.xlu1 %v3527_v27, %s2526_s24 }
 0x24b   : > { %1666 = vrot.lane.b32.xlu2 %v3554_v46, %s2524_s29  ;;  %v1349_v3 = vadd.f32 %v1345_v11, %v1328_v8  ;;  %v1358_v19 = vpop.permute.xlu0 %1357  ;;  %v1258_v8 = vmul.f32 %v3571_v37, %v3596_v30 }
 0x24c   : > { %v1366_v61 = vmul.f32 %v1358_v19, %v1350_v44 }
 0x24d   : > { %v1262_v29 = vadd.f32 %v1258_v8, %v1241_v38 }
 0x24e   : > { %v1370_v20 = vadd.f32 %v1366_v61, %v1349_v3 }
 0x24f   : > { %1771 = vrot.lane.b32.xlu0 %v3527_v27, %s2527_s23  ;;  %v1283_v62 = vadd.f32 %v1279_v12, %v1262_v29 }
 0x250   : > { %v1356_v0 = vpop.permute.xlu1 %1355  ;;  %v1379_v2 = vpop.permute.xlu2 %1378 }
 0x251   : > { %v1365_v48 = vmul.f32 %v1356_v0, %v1350_v44  ;;  %v1387_v22 = vmul.f32 %v1379_v2, %v1371_v34  ;;  %v1304_v35 = vadd.f32 %v1300_v52, %v1283_v62 }
 0x252   : > { %1750 = vrot.lane.b32.xlu1 %v3554_v46, %s2528_s22 }
 0x253   : > { %1729 = vrot.lane.b32.xlu2 %v3527_v27, %s2528_s22  ;;  %v1369_v57 = vadd.f32 %v1365_v48, %v1348_v54  ;;  %v1391_v25 = vadd.f32 %v1387_v22, %v1370_v20  ;;  %v1377_v37 = vpop.permute.xlu0 %1376  ;;  %v1325_v7 = vadd.f32 %v1321_v33, %v1304_v35  ;;  %v1455_v22 = vperm.slane %v3668_v45, 3 }
 0x254   : > { %v1386_v30 = vmul.f32 %v1377_v37, %v1371_v34 }
 0x255   : > { %v1346_v43 = vadd.f32 %v1342_v4, %v1325_v7 }
 0x256   : > { %v1390_v49 = vadd.f32 %v1386_v30, %v1369_v57 }
 0x257   : > { %1834 = vrot.lane.b32.xlu0 %v3554_v46, %s2529_s21  ;;  %v1367_v31 = vadd.f32 %v1363_v32, %v1346_v43 }
 0x258   : > { %v1375_v13 = vpop.permute.xlu1 %1374  ;;  %v1398_v28 = vpop.permute.xlu2 %1397 }
 0x259   : > { %v1385_v36 = vmul.f32 %v1375_v13, %v1371_v34  ;;  %v1407_v41 = vmul.f32 %v1398_v28, %v1392_v59  ;;  %v1388_v44 = vadd.f32 %v1384_v55, %v1367_v31  ;;  %v1476_v13 = vperm.slane %v3652_v5, 4 }
 0x25a   : > { %1813 = vrot.lane.b32.xlu1 %v3527_v27, %s2529_s21 }
 0x25b   : > { %1792 = vrot.lane.b32.xlu2 %v3554_v46, %s2527_s23  ;;  %v1389_v54 = vadd.f32 %v1385_v36, %v1368_v6  ;;  %v1411_v26 = vadd.f32 %v1407_v41, %v1390_v49  ;;  %v1396_v51 = vpop.permute.xlu0 %1395 }
 0x25c   : > { %v1406_v15 = vmul.f32 %v1396_v51, %v1392_v59  ;;  %v1497_v51 = vperm.slane %v3668_v45, 4 }
 0x25e   : > { %v1410_v47 = vadd.f32 %v1406_v15, %v1389_v54 }
 0x25f   : > { %1897 = vrot.lane.b32.xlu0 %v3527_v27, %s2530_s30 }
 0x260   : > { %v1394_v1 = vpop.permute.xlu1 %1393  ;;  %v1417_v56 = vpop.permute.xlu2 %1416 }
 0x261   : > { %v1405_v18 = vmul.f32 %v1394_v1, %v1392_v59  ;;  %v1427_v6 = vmul.f32 %v1417_v56, %v1413_v17 }
 0x262   : > { %1876 = vrot.lane.b32.xlu1 %v3554_v46, %s4255_s20 }
 0x263   : > { %1855 = vrot.lane.b32.xlu2 %v3527_v27, %s4255_s20  ;;  %v1409_v10 = vadd.f32 %v1405_v18, %v1388_v44  ;;  %v1431_v23 = vadd.f32 %v1427_v6, %v1410_v47  ;;  %v1415_v39 = vpop.permute.xlu0 %1414  ;;  %s4365_s20 = smov 115  }
 0x264   : > { %v1426_v60 = vmul.f32 %v1415_v39, %v1413_v17 }
 0x266   : > { %v3745_v14 = vadd.f32 %v1426_v60, %v1409_v10 }
 0x267   : > { %1960 = vrot.lane.b32.xlu0 %v3554_v46, %s2532_s26 }
 0x268   : > { %v1400_v11 = vpop.permute.xlu1 %1399  ;;  %v3749_v53 = vpop.permute.xlu2 %1435 }
 0x269   : > { %v1408_v58 = vmul.f32 %v1400_v11, %v1392_v59 }
 0x26a   : > { %1939 = vrot.lane.b32.xlu1 %v3527_v27, %s2532_s26 }
 0x26b   : > { %1918 = vrot.lane.b32.xlu2 %v3554_v46, %s2530_s30  ;;  %v1412_v3 = vadd.f32 %v1408_v58, %v1391_v25  ;;  %v1421_v19 = vpop.permute.xlu0 %1420  ;;  %v3763_v46 = vperm.slane %v3652_v5, 3 }
 0x26c   : > { %v1429_v27 = vmul.f32 %v1421_v19, %v1413_v17 }
 0x26e   : > { %v1433_v61 = vadd.f32 %v1429_v27, %v1412_v3 }
 0x26f   : > { %1563 = vrot.lane.b32.xlu0 %v3514_v21, %s2523_s28 }
 0x270   : > { %v1419_v9 = vpop.permute.xlu1 %1418  ;;  %v1442_v20 = vpop.permute.xlu2 %1441 }
 0x271   : > { %v1428_v63 = vmul.f32 %v1419_v9, %v1413_v17  ;;  %v1450_v8 = vmul.f32 %v1442_v20, %v3763_v46  ;;  %v3811_v9 = vperm.slane %v3668_v45, 5  ;;  %v1447_v20 = vmul.f32 %v3749_v53, %v3763_v46 }
 0x272   : > { %2008 = vrot.lane.b32.xlu1 %v3754_v16, %s2502_s25  ;;  %s4359_s25 = smov 121  }
 0x273   : > { %1998 = vrot.lane.b32.xlu2 %v3754_v16, %s2501_s27  ;;  %v1432_v0 = vadd.f32 %v1428_v63, %v1411_v26  ;;  %v1454_v34 = vadd.f32 %v1450_v8, %v1433_v61  ;;  %v1440_v48 = vpop.permute.xlu0 %1439  ;;  %s4358_s27 = smov 99  }
 0x274   : > { %v1449_v2 = vmul.f32 %v1440_v48, %v3763_v46 }
 0x276   : > { %v1453_v38 = vadd.f32 %v1449_v2, %v1432_v0  ;;  %v1451_v2 = vadd.f32 %v1447_v20, %v3745_v14 }
 0x277   : > { %2018 = vrot.lane.b32.xlu0 %v3754_v16, %s2503_s11  ;;  %s4360_s11 = smov 107  }
 0x278   : > { %v1438_v12 = vpop.permute.xlu1 %1437  ;;  %v1461_v29 = vpop.permute.xlu2 %1460 }
 0x279   : > { %v1448_v57 = vmul.f32 %v1438_v12, %v3763_v46  ;;  %v1470_v25 = vmul.f32 %v1461_v29, %v1455_v22 }
 0x27a   : > { %1605 = vrot.lane.b32.xlu1 %v3514_v21, %s2525_s19 }
 0x27b   : > { %1584 = vrot.lane.b32.xlu2 %v3475_v50, %s2523_s28  ;;  %v1452_v52 = vadd.f32 %v1448_v57, %v1431_v23  ;;  %v1474_v37 = vadd.f32 %v1470_v25, %v1453_v38  ;;  %v1459_v30 = vpop.permute.xlu0 %1458  ;;  %v1518_v23 = vperm.slane %v3652_v5, 5 }
 0x27c   : > { %v1469_v62 = vmul.f32 %v1459_v30, %v1455_v22 }
 0x27e   : > { %v1473_v33 = vadd.f32 %v1469_v62, %v1452_v52 }
 0x27f   : > { %1668 = vrot.lane.b32.xlu0 %v3475_v50, %s2524_s29 }
 0x280   : > { %v1457_v49 = vpop.permute.xlu1 %1456  ;;  %v1480_v35 = vpop.permute.xlu2 %1479 }
 0x281   : > { %v1490_v4 = vmul.f32 %v1480_v35, %v1476_v13  ;;  %v1468_v8 = vmul.f32 %v1457_v49, %v1455_v22  ;;  %v3838_v35 = vperm.slane %v3668_v45, 6 }
 0x282   : > { %1647 = vrot.lane.b32.xlu1 %v3514_v21, %s2524_s29 }
 0x283   : > { %1626 = vrot.lane.b32.xlu2 %v3475_v50, %s2525_s19  ;;  %v1494_v36 = vadd.f32 %v1490_v4, %v1473_v33  ;;  %v1478_v59 = vpop.permute.xlu0 %1477  ;;  %v1472_v53 = vadd.f32 %v1468_v8, %v1451_v2  ;;  %v3831_v33 = vperm.slane %v3652_v5, 6 }
 0x284   : > { %v1489_v38 = vmul.f32 %v1478_v59, %v1476_v13 }
 0x286   : > { %v1493_v52 = vadd.f32 %v1489_v38, %v1472_v53 }
 0x287   : > { %1710 = vrot.lane.b32.xlu0 %v3475_v50, %s2526_s24 }
 0x288   : > { %v1463_v28 = vpop.permute.xlu1 %1462  ;;  %v1499_v32 = vpop.permute.xlu2 %1498 }
 0x289   : > { %v1471_v7 = vmul.f32 %v1463_v28, %v1455_v22  ;;  %v1510_v46 = vmul.f32 %v1499_v32, %v1497_v51  ;;  %v3845_v28 = vperm.slane %v3652_v5, 7 }
 0x28a   : > { %2028 = vrot.lane.b32.xlu1 %v3754_v16, %s2504_s12  ;;  %s4361_s12 = smov 118  }
 0x28b   : > { %1689 = vrot.lane.b32.xlu2 %v3514_v21, %s2526_s24  ;;  %v1475_v54 = vadd.f32 %v1471_v7, %v1454_v34  ;;  %v1484_v41 = vpop.permute.xlu0 %1483  ;;  %v1514_v14 = vadd.f32 %v1510_v46, %v1493_v52 }
 0x28c   : > { %v1492_v43 = vmul.f32 %v1484_v41, %v1476_v13 }
 0x28e   : > { %v1496_v55 = vadd.f32 %v1492_v43, %v1475_v54  ;;  %v635_v54 = vld [vmem:[#allocation3 + $0x18] sm:$0xff]  ;;  %v3851_v43 = vperm.slane %v3668_v45, 7 }
 0x28f   : > { %1773 = vrot.lane.b32.xlu0 %v3514_v21, %s2527_s23 }
 0x290   : > { %v1482_v26 = vpop.permute.xlu1 %1481  ;;  %v1505_v31 = vpop.permute.xlu2 %1504 }
 0x291   : > { %v1491_v15 = vmul.f32 %v1482_v26, %v1476_v13  ;;  %v1513_v1 = vmul.f32 %v1505_v31, %v1497_v51  ;;  %v3857_v26 = vmul.f32 0.125, %v635_v54 }
 0x292   : > { %1752 = vrot.lane.b32.xlu1 %v3475_v50, %s2528_s22 }
 0x293   : > { %1731 = vrot.lane.b32.xlu2 %v3514_v21, %s2528_s22  ;;  %v1495_v47 = vadd.f32 %v1491_v15, %v1474_v37  ;;  %v1517_v44 = vadd.f32 %v1513_v1, %v1496_v55  ;;  %v1503_v18 = vpop.permute.xlu0 %1502  ;;  %v3867_v1 = vperm.slane %v3857_v26, 0  ;;  %v3889_v20 = vperm.slane %v3857_v26, 2 }
 0x294   : > { %v1512_v17 = vmul.f32 %v1503_v18, %v1497_v51  ;;  %v3903_v46 = vperm.slane %v3857_v26, 3 }
 0x296   : > { %v1516_v56 = vadd.f32 %v1512_v17, %v1495_v47 }
 0x297   : > { %1815 = vrot.lane.b32.xlu0 %v3514_v21, %s2529_s21 }
 0x298   : > { %v1501_v10 = vpop.permute.xlu1 %1500  ;;  %v1524_v39 = vpop.permute.xlu2 %1523 }
 0x299   : > { %v1511_v6 = vmul.f32 %v1501_v10, %v1497_v51  ;;  %v1533_v11 = vmul.f32 %v1524_v39, %v1518_v23 }
 0x29a   : > { %1794 = vrot.lane.b32.xlu1 %v3475_v50, %s2527_s23 }
 0x29b   : > { %2038 = vrot.lane.b32.xlu2 %v3754_v16, %s2505_s13  ;;  %v1515_v60 = vadd.f32 %v1511_v6, %v1494_v36  ;;  %v3804_v58 = vadd.f32 %v1533_v11, %v1516_v56  ;;  %v1522_v3 = vpop.permute.xlu0 %1521  ;;  %s4362_s13 = smov 119   ;;  %v3878_v6 = vperm.slane %v3857_v26, 1 }
 0x29c   : > { %v1532_v19 = vmul.f32 %v1522_v3, %v1518_v23 }
 0x29e   : > { %v1536_v27 = vadd.f32 %v1532_v19, %v1515_v60 }
 0x29f   : > { %2048 = vrot.lane.b32.xlu0 %v3754_v16, %s2506_s14  ;;  %s4363_s14 = smov 117  }
 0x2a0   : > { %v1520_v61 = vpop.permute.xlu1 %1519  ;;  %v1543_v63 = vpop.permute.xlu2 %1542 }
 0x2a1   : > { %v1553_v0 = vmul.f32 %v1543_v63, %v3811_v9  ;;  %v1531_v25 = vmul.f32 %v1520_v61, %v1518_v23 }
 0x2a2   : > { %1857 = vrot.lane.b32.xlu1 %v3514_v21, %s4358_s27 }
 0x2a3   : > { %1836 = vrot.lane.b32.xlu2 %v3475_v50, %s2529_s21  ;;  %v3818_v34 = vadd.f32 %v1553_v0, %v1536_v27  ;;  %v1541_v48 = vpop.permute.xlu0 %1540  ;;  %v1535_v62 = vadd.f32 %v1531_v25, %v1514_v14 }
 0x2a4   : > { %v1552_v37 = vmul.f32 %v1541_v48, %v3811_v9 }
 0x2a6   : > { %v1556_v13 = vadd.f32 %v1552_v37, %v1535_v62  ;;  %v3914_v37 = vperm.slane %v3857_v26, 4 }
 0x2a7   : > { %1920 = vrot.lane.b32.xlu0 %v3475_v50, %s2530_s30 }
 0x2a8   : > { %v1526_v12 = vpop.permute.xlu1 %1525  ;;  %v1604_v29 = vpop.permute.xlu2 %1603 }
 0x2a9   : > { %v1534_v57 = vmul.f32 %v1526_v12, %v1518_v23  ;;  %v1615_v41 = vmul.f32 %v1604_v29, %v3845_v28 }
 0x2aa   : > { %1899 = vrot.lane.b32.xlu1 %v3514_v21, %s2530_s30 }
 0x2ab   : > { %1878 = vrot.lane.b32.xlu2 %v3475_v50, %s4358_s27  ;;  %v3825_v22 = vadd.f32 %v1534_v57, %v1517_v44  ;;  %v1583_v30 = vpop.permute.xlu0 %1582 }
 0x2ac   : > { %v1594_v36 = vmul.f32 %v1583_v30, %v3838_v35 }
 0x2af   : > { %1962 = vrot.lane.b32.xlu0 %v3475_v50, %s2532_s26 }
 0x2b0   : > { %v1562_v49 = vpop.permute.xlu1 %1561  ;;  %v1667_v4 = vpop.permute.xlu2 %1666 }
 0x2b1   : > { %v1573_v50 = vmul.f32 %v1562_v49, %v3831_v33  ;;  %v1678_v17 = vmul.f32 %v1667_v4, %v3867_v1 }
 0x2b2   : > { %2058 = vrot.lane.b32.xlu1 %v3754_v16, %s4359_s25  ;;  %s4368_s25 = smov 110  }
 0x2b3   : > { %1941 = vrot.lane.b32.xlu2 %v3514_v21, %s2532_s26  ;;  %v1577_v59 = vadd.f32 %v1573_v50, %v1556_v13  ;;  %v1646_v32 = vpop.permute.xlu0 %1645  ;;  %v3847_v21 = vld [vmem:[#allocation2 + $0x18] sm:$0xff] }
 0x2b4   : > { %v3860_v5 = vperm.slane %v3847_v21, 0  ;;  %v3871_v56 = vperm.slane %v3847_v21, 1  ;;  %v3885_v19 = vperm.slane %v3847_v21, 2  ;;  %v3896_v8 = vperm.slane %v3847_v21, 3 }
 0x2b5   : > { %v1598_v7 = vadd.f32 %v1594_v36, %v1577_v59  ;;  %v3907_v25 = vperm.slane %v3847_v21, 4  ;;  %v3921_v4 = vperm.slane %v3847_v21, 5 }
 0x2b6   : > { %v1657_v47 = vmul.f32 %v1646_v32, %v3860_v5  ;;  %v3925_v32 = vperm.slane %v3857_v26, 5 }
 0x2b7   : > { %1544 = vrot.lane.b32.xlu0 %v3464_v40, %s4360_s11  ;;  %v1619_v51 = vadd.f32 %v1615_v41, %v1598_v7  ;;  %v3932_v41 = vperm.slane %v3847_v21, 6 }
 0x2b8   : > { %v1625_v55 = vpop.permute.xlu1 %1624  ;;  %v1730_v31 = vpop.permute.xlu2 %1729 }
 0x2b9   : > { %v1636_v15 = vmul.f32 %v1625_v55, %v3851_v43  ;;  %v1741_v63 = vmul.f32 %v1730_v31, %v3885_v19 }
 0x2ba   : > { %2083 = vrot.lane.b32.xlu1 %v3754_v16, %s4361_s12  ;;  %s4369_s12 = smov 111  }
 0x2bb   : > { %2073 = vrot.lane.b32.xlu2 %v3754_v16, %s4362_s13  ;;  %v1640_v45 = vadd.f32 %v1636_v15, %v1619_v51  ;;  %v1709_v18 = vpop.permute.xlu0 %1708 }
 0x2bc   : > { %v1720_v11 = vmul.f32 %v1709_v18, %v3878_v6 }
 0x2bd   : > { %v1661_v44 = vadd.f32 %v1657_v47, %v1640_v45  ;;  %v3939_v45 = vperm.slane %v3857_v26, 6 }
 0x2bf   : > { %1607 = vrot.lane.b32.xlu0 %v3415_v42, %s2525_s19  ;;  %v1682_v23 = vadd.f32 %v1678_v17, %v1661_v44  ;;  %v3943_v17 = vperm.slane %v3847_v21, 7 }
 0x2c0   : > { %v1688_v10 = vpop.permute.xlu1 %1687  ;;  %v1793_v60 = vpop.permute.xlu2 %1792 }
 0x2c1   : > { %v1699_v39 = vmul.f32 %v1688_v10, %v3871_v56  ;;  %v1804_v52 = vmul.f32 %v1793_v60, %v3903_v46 }
 0x2c2   : > { %1586 = vrot.lane.b32.xlu1 %v3464_v40, %s2523_s28 }
 0x2c3   : > { %1565 = vrot.lane.b32.xlu2 %v3415_v42, %s2523_s28  ;;  %v1703_v3 = vadd.f32 %v1699_v39, %v1682_v23  ;;  %v1772_v61 = vpop.permute.xlu0 %1771  ;;  %v2471_v23 = vld [vmem:[%s4231_s5 + $0x10] sm:$0xff]  ;;  %v3952_v39 = vperm.slane %v3857_v26, 7 }
 0x2c4   : > { %v1783_v12 = vmul.f32 %v1772_v61, %v3896_v8 }
 0x2c5   : > { %v1724_v27 = vadd.f32 %v1720_v11, %v1703_v3 }
 0x2c7   : > { %1649 = vrot.lane.b32.xlu0 %v3415_v42, %s2524_s29  ;;  %v1745_v48 = vadd.f32 %v1741_v63, %v1724_v27 }
 0x2c8   : > { %v1751_v0 = vpop.permute.xlu1 %1750  ;;  %v1856_v38 = vpop.permute.xlu2 %1855 }
 0x2c9   : > { %v1762_v2 = vmul.f32 %v1751_v0, %v3889_v20  ;;  %v1867_v7 = vmul.f32 %v1856_v38, %v3921_v4 }
 0x2ca   : > { %1628 = vrot.lane.b32.xlu1 %v3464_v40, %s2525_s19 }
 0x2cb   : > { %2093 = vrot.lane.b32.xlu2 %v3754_v16, %s4363_s14  ;;  %v1766_v53 = vadd.f32 %v1762_v2, %v1745_v48  ;;  %v1835_v29 = vpop.permute.xlu0 %1834 }
 0x2cc   : > { %v1846_v13 = vmul.f32 %v1835_v29, %v3914_v37 }
 0x2cd   : > { %v1787_v57 = vadd.f32 %v1783_v12, %v1766_v53 }
 0x2cf   : > { %2103 = vrot.lane.b32.xlu0 %v3754_v16, %s4364_s18  ;;  %v1808_v30 = vadd.f32 %v1804_v52, %v1787_v57  ;;  %s4366_s18 = smov 114  }
 0x2d0   : > { %v1814_v14 = vpop.permute.xlu1 %1813  ;;  %v1919_v49 = vpop.permute.xlu2 %1918 }
 0x2d1   : > { %v1825_v62 = vmul.f32 %v1814_v14, %v3907_v25  ;;  %v1930_v18 = vmul.f32 %v1919_v49, %v3939_v45 }
 0x2d2   : > { %1691 = vrot.lane.b32.xlu1 %v3415_v42, %s2526_s24 }
 0x2d3   : > { %1670 = vrot.lane.b32.xlu2 %v3464_v40, %s2524_s29  ;;  %v1829_v50 = vadd.f32 %v1825_v62, %v1808_v30  ;;  %v1898_v59 = vpop.permute.xlu0 %1897 }
 0x2d4   : > { %v1909_v31 = vmul.f32 %v1898_v59, %v3932_v41 }
 0x2d5   : > { %v1850_v36 = vadd.f32 %v1846_v13, %v1829_v50 }
 0x2d7   : > { %1754 = vrot.lane.b32.xlu0 %v3464_v40, %s2528_s22  ;;  %v1871_v55 = vadd.f32 %v1867_v7, %v1850_v36 }
 0x2d8   : > { %v1877_v54 = vpop.permute.xlu1 %1876  ;;  %v1999_v15 = vpop.permute.xlu2 %1998 }
 0x2d9   : > { %v1888_v51 = vmul.f32 %v1877_v54, %v3925_v32 }
 0x2da   : > { %1733 = vrot.lane.b32.xlu1 %v3415_v42, %s2528_s22 }
 0x2db   : > { %1712 = vrot.lane.b32.xlu2 %v3464_v40, %s2526_s24  ;;  %v1892_v47 = vadd.f32 %v1888_v51, %v1871_v55  ;;  %v1961_v44 = vpop.permute.xlu0 %1960 }
 0x2dc   : > { %v1972_v21 = vmul.f32 %v1961_v44, %v3952_v39 }
 0x2dd   : > { %v1913_v42 = vadd.f32 %v1909_v31, %v1892_v47 }
 0x2df   : > { %1796 = vrot.lane.b32.xlu0 %v3464_v40, %s2527_s23  ;;  %v1934_v60 = vadd.f32 %v1930_v18, %v1913_v42 }
 0x2e0   : > { %v1940_v10 = vpop.permute.xlu1 %1939  ;;  %v1585_v3 = vpop.permute.xlu2 %1584 }
 0x2e1   : > { %v1951_v11 = vmul.f32 %v1940_v10, %v3943_v17  ;;  %v1595_v52 = vmul.f32 %v1585_v3, %v3838_v35 }
 0x2e2   : > { %2113 = vrot.lane.b32.xlu1 %v3754_v16, %s4365_s20  ;;  %s4367_s20 = smov 113  }
 0x2e3   : > { %1775 = vrot.lane.b32.xlu2 %v2471_v23, %s2527_s23  ;;  %v1955_v27 = vadd.f32 %v1951_v11, %v1934_v60  ;;  %v1564_v63 = vpop.permute.xlu0 %1563 }
 0x2e4   : > { %v1574_v12 = vmul.f32 %v1564_v63, %v3831_v33 }
 0x2e5   : > { %v1976_v61 = vadd.f32 %v1972_v21, %v1955_v27  ;;  %v4000_v27 = vld [vmem:[%s4232_s6 + $0x18] sm:$0xff] }
 0x2e6   : > { %v1578_v57 = vadd.f32 %v1574_v12, %v3818_v34 }
 0x2e7   : > { %1859 = vrot.lane.b32.xlu0 %v2471_v23, %s4358_s27  ;;  %vm1980_vm15 = vcmp.ge.f32.partialorder %v1976_v61, 0.0  ;;  %v1984_v0 = vmul.f32 0.2, %v1976_v61 }
 0x2e8   : > { %v2009_v48 = vpop.permute.xlu1 %2008  ;;  %v1627_v38 = vpop.permute.xlu2 %1626  ;;  %v1599_v34 = vadd.f32 %v1595_v52, %v1578_v57 }
 0x2e9   : > { %v3960_v26 = vsel %vm1980_vm15, %v1976_v61, %v1984_v0  ;;  %v1637_v36 = vmul.f32 %v1627_v38, %v3851_v43 }
 0x2ea   : > { %1838 = vrot.lane.b32.xlu1 %v3464_v40, %s2529_s21  ;;  %v2001_v2 = vmul.f32 %v1999_v15, %v3960_v26  ;;  %v2472_v40 = vld [vmem:[%s4232_s6 + $0x10] sm:$0xff]  ;;  %v2011_v30 = vmul.f32 %v2009_v48, %v3960_v26 }
 0x2eb   : > { %1817 = vrot.lane.b32.xlu2 %v2471_v23, %s2529_s21  ;;  %v2019_v53 = vpop.permute.xlu0 %2018 }
 0x2ec   : > { %2003 = vst [vmem:[#allocation1] sm:$0xff] %v2001_v2  ;;  %v2021_v55 = vmul.f32 %v2019_v53, %v3960_v26 }
 0x2ef   : > { %1901 = vrot.lane.b32.xlu0 %v2471_v23, %s2530_s30 }
 0x2f0   : > { %v1606_v29 = vpop.permute.xlu1 %1605  ;;  %v1690_v62 = vpop.permute.xlu2 %1689 }
 0x2f1   : > { %v1616_v14 = vmul.f32 %v1606_v29, %v3845_v28  ;;  %v1700_v10 = vmul.f32 %v1690_v62, %v3871_v56 }
 0x2f2   : > { %1880 = vrot.lane.b32.xlu1 %v2472_v40, %s4358_s27 }
 0x2f3   : > { %2123 = vrot.lane.b32.xlu2 %v3754_v16, %s4366_s18  ;;  %v3975_v49 = vld [vmem:[#allocation1 + $0x1] ss:$9 sm:$0xff]  ;;  %v1620_v13 = vadd.f32 %v1616_v14, %v1599_v34  ;;  %v1669_v50 = vpop.permute.xlu0 %1668  ;;  %s4370_s18 = smov 109  }
 0x2f4   : > { %2013 = vst [vmem:[#allocation1] sm:$0xff] %v2011_v30  ;;  %v1679_v47 = vmul.f32 %v1669_v50, %v3867_v1 }
 0x2f5   : > { %v1641_v7 = vadd.f32 %v1637_v36, %v1620_v13 }
 0x2f7   : > { %2133 = vrot.lane.b32.xlu0 %v3754_v16, %s4367_s20 }
 0x2f8   : > { %v1648_v59 = vpop.permute.xlu1 %1647  ;;  %v1732_v51 = vpop.permute.xlu2 %1731 }
 0x2f9   : > { %v1658_v54 = vmul.f32 %v1648_v59, %v3860_v5  ;;  %v1742_v48 = vmul.f32 %v1732_v51, %v3885_v19  ;;  %v4032_v51 = vld [vmem:[%s4231_s5 + $0x18] sm:$0xff] }
 0x2fa   : > { %1943 = vrot.lane.b32.xlu1 %v2471_v23, %s2532_s26 }
 0x2fb   : > { %1922 = vrot.lane.b32.xlu2 %v2472_v40, %s2530_s30  ;;  %v3984_v15 = vld [vmem:[#allocation1 + $0x2] ss:$9 sm:$0xff]  ;;  %v1662_v31 = vadd.f32 %v1658_v54, %v1641_v7  ;;  %v1711_v42 = vpop.permute.xlu0 %1710 }
 0x2fc   : > { %2023 = vst [vmem:[#allocation1] sm:$0xff] %v2021_v55  ;;  %v1721_v21 = vmul.f32 %v1711_v42, %v3878_v6 }
 0x2fd   : > { %v1683_v44 = vadd.f32 %v1679_v47, %v1662_v31 }
 0x2ff   : > { %2158 = vrot.lane.b32.xlu0 %v3754_v16, %s4368_s25  ;;  %v1704_v3 = vadd.f32 %v1700_v10, %v1683_v44 }
 0x300   : > { %v2029_v18 = vpop.permute.xlu1 %2028  ;;  %v2039_v60 = vpop.permute.xlu2 %2038 }
 0x301   : > { %v2031_v23 = vmul.f32 %v2029_v18, %v3960_v26  ;;  %v1725_v63 = vadd.f32 %v1721_v21, %v1704_v3  ;;  %v2041_v38 = vmul.f32 %v2039_v60, %v3960_v26 }
 0x302   : > { %2148 = vrot.lane.b32.xlu1 %v3754_v16, %s4369_s12  ;;  %s4371_s12 = smov 108  }
 0x303   : > { %1964 = vrot.lane.b32.xlu2 %v2472_v40, %s2532_s26  ;;  %v3994_v11 = vld [vmem:[#allocation1 + $0x3] ss:$9 sm:$0xff]  ;;  %v1774_v61 = vpop.permute.xlu0 %1773  ;;  %v1746_v57 = vadd.f32 %v1742_v48, %v1725_v63 }
 0x304   : > { %2033 = vst [vmem:[#allocation1] sm:$0xff] %v2031_v23  ;;  %v1784_v52 = vmul.f32 %v1774_v61, %v3896_v8 }
 0x307   : > { %1588 = vrot.lane.b32.xlu0 %v4000_v27, %s2523_s28 }
 0x308   : > { %v1753_v0 = vpop.permute.xlu1 %1752  ;;  %v1837_v12 = vpop.permute.xlu2 %1836 }
 0x309   : > { %v1763_v2 = vmul.f32 %v1753_v0, %v3889_v20 }
 0x30a   : > { %1567 = vrot.lane.b32.xlu1 %v3563_v24, %s2523_s28 }
 0x30b   : > { %1546 = vrot.lane.b32.xlu2 %v4000_v27, %s4360_s11  ;;  %v4011_v53 = vld [vmem:[#allocation1 + $0x4] ss:$9 sm:$0xff]  ;;  %v1767_v40 = vadd.f32 %v1763_v2, %v1746_v57  ;;  %v1816_v29 = vpop.permute.xlu0 %1815 }
 0x30c   : > { %2043 = vst [vmem:[#allocation1] sm:$0xff] %v2041_v38  ;;  %v1826_v50 = vmul.f32 %v1816_v29, %v3907_v25 }
 0x30d   : > { %v1788_v30 = vadd.f32 %v1784_v52, %v1767_v40 }
 0x30f   : > { %1630 = vrot.lane.b32.xlu0 %v4000_v27, %s2525_s19 }
 0x310   : > { %v1795_v14 = vpop.permute.xlu1 %1794  ;;  %v1879_v34 = vpop.permute.xlu2 %1878 }
 0x311   : > { %v1805_v62 = vmul.f32 %v1795_v14, %v3903_v46  ;;  %v1889_v10 = vmul.f32 %v1879_v34, %v3925_v32 }
 0x312   : > { %2168 = vrot.lane.b32.xlu1 %v3754_v16, %s4370_s18 }
 0x313   : > { %1609 = vrot.lane.b32.xlu2 %v3563_v24, %s2525_s19  ;;  %v1809_v13 = vadd.f32 %v1805_v62, %v1788_v30  ;;  %v2049_v36 = vpop.permute.xlu0 %2048  ;;  %v4025_v7 = vld [vmem:[#allocation1 + $0x5] ss:$9 sm:$0xff] }
 0x314   : > { %v2051_v59 = vmul.f32 %v2049_v36, %v3960_v26 }
 0x315   : > { %v1830_v54 = vadd.f32 %v1826_v50, %v1809_v13 }
 0x316   : > { %2053 = vst [vmem:[#allocation1] sm:$0xff] %v2051_v59 }
 0x317   : > { %1693 = vrot.lane.b32.xlu0 %v3563_v24, %s2526_s24  ;;  %v1847_v24 = vmul.f32 %v1837_v12, %v3914_v37 }
 0x318   : > { %v1858_v55 = vpop.permute.xlu1 %1857  ;;  %v1942_v47 = vpop.permute.xlu2 %1941 }
 0x319   : > { %v1868_v31 = vmul.f32 %v1858_v55, %v3921_v4  ;;  %v1851_v42 = vadd.f32 %v1847_v24, %v1830_v54  ;;  %v1952_v0 = vmul.f32 %v1942_v47, %v3943_v17 }
 0x31a   : > { %1672 = vrot.lane.b32.xlu1 %v4000_v27, %s2524_s29 }
 0x31b   : > { %1651 = vrot.lane.b32.xlu2 %v4032_v51, %s2524_s29  ;;  %v1872_v44 = vadd.f32 %v1868_v31, %v1851_v42  ;;  %v1921_v18 = vpop.permute.xlu0 %1920 }
 0x31c   : > { %v1931_v61 = vmul.f32 %v1921_v18, %v3939_v45 }
 0x31d   : > { %v1893_v60 = vadd.f32 %v1889_v10, %v1872_v44  ;;  %v4056_v52 = vld [vmem:[#allocation1 + $0x6] ss:$9 sm:$0xff] }
 0x31f   : > { %1735 = vrot.lane.b32.xlu0 %v4032_v51, %s2528_s22 }
 0x320   : > { %v1900_v23 = vpop.permute.xlu1 %1899  ;;  %v2074_v21 = vpop.permute.xlu2 %2073 }
 0x321   : > { %v1910_v3 = vmul.f32 %v1900_v23, %v3932_v41 }
 0x322   : > { %1714 = vrot.lane.b32.xlu1 %v4000_v27, %s2526_s24 }
 0x323   : > { %2178 = vrot.lane.b32.xlu2 %v3754_v16, %s4371_s12  ;;  %v1914_v63 = vadd.f32 %v1910_v3, %v1893_v60  ;;  %v1963_v2 = vpop.permute.xlu0 %1962 }
 0x324   : > { %v1973_v38 = vmul.f32 %v1963_v2, %v3952_v39 }
 0x325   : > { %v1935_v48 = vadd.f32 %v1931_v61, %v1914_v63 }
 0x327   : > { %2188 = vrot.lane.b32.xlu0 %v3754_v16, %s4360_s11  ;;  %v1956_v12 = vadd.f32 %v1952_v0, %v1935_v48 }
 0x328   : > { %v2059_v57 = vpop.permute.xlu1 %2058  ;;  %v1566_v14 = vpop.permute.xlu2 %1565 }
 0x329   : > { %v1977_v40 = vadd.f32 %v1973_v38, %v1956_v12  ;;  %v2061_v29 = vmul.f32 %v2059_v57, %v3960_v26  ;;  %v1575_v47 = vmul.f32 %v1566_v14, %v3831_v33 }
 0x32a   : > { %1777 = vrot.lane.b32.xlu1 %v4032_v51, %s2527_s23 }
 0x32b   : > { %1756 = vrot.lane.b32.xlu2 %v4000_v27, %s2528_s22  ;;  %vm1981_vm0 = vcmp.ge.f32.partialorder %v1977_v40, 0.0  ;;  %v1985_v30 = vmul.f32 0.2, %v1977_v40  ;;  %2063 = vst [vmem:[#allocation1] sm:$0xff] %v2061_v29  ;;  %v1545_v62 = vpop.permute.xlu0 %1544 }
 0x32c   : > { %v1554_v54 = vmul.f32 %v1545_v62, %v3811_v9 }
 0x32d   : > { %v4060_v34 = vsel %vm1981_vm0, %v1977_v40, %v1985_v30 }
 0x32e   : > { %v2076_v50 = vmul.f32 %v2074_v21, %v4060_v34  ;;  %v1558_v24 = vadd.f32 %v1554_v54, %v3804_v58 }
 0x32f   : > { %1840 = vrot.lane.b32.xlu0 %v4000_v27, %s2529_s21 }
 0x330   : > { %v2084_v13 = vpop.permute.xlu1 %2083  ;;  %v2094_v59 = vpop.permute.xlu2 %2093  ;;  %v1579_v23 = vadd.f32 %v1575_v47, %v1558_v24 }
 0x331   : > { %v2086_v42 = vmul.f32 %v2084_v13, %v4060_v34  ;;  %v2096_v61 = vmul.f32 %v2094_v59, %v4060_v34 }
 0x332   : > { %1819 = vrot.lane.b32.xlu1 %v4032_v51, %s2529_s21  ;;  %v4067_v36 = vld [vmem:[#allocation1 + $0x7] ss:$9 sm:$0xff] }
 0x333   : > { %1798 = vrot.lane.b32.xlu2 %v4000_v27, %s2527_s23  ;;  %2078 = vst [vmem:[#allocation1] sm:$0xff] %v2076_v50  ;;  %v1608_v55 = vpop.permute.xlu0 %1607 }
 0x334   : > { %v1617_v3 = vmul.f32 %v1608_v55, %v3845_v28 }
 0x337   : > { %1882 = vrot.lane.b32.xlu0 %v4000_v27, %s4358_s27 }
 0x338   : > { %v1587_v31 = vpop.permute.xlu1 %1586  ;;  %v1671_v10 = vpop.permute.xlu2 %1670 }
 0x339   : > { %v1596_v44 = vmul.f32 %v1587_v31, %v3838_v35  ;;  %v1680_v29 = vmul.f32 %v1671_v10, %v3867_v1 }
 0x33a   : > { %2198 = vrot.lane.b32.xlu1 %v3754_v16, %s2523_s28  ;;  %v4080_v18 = vld [vmem:[#allocation1 + $0x1] ss:$9 sm:$0xff] }
 0x33b   : > { %1861 = vrot.lane.b32.xlu2 %v4032_v51, %s4358_s27  ;;  %2088 = vst [vmem:[#allocation1] sm:$0xff] %v2086_v42  ;;  %v1600_v58 = vadd.f32 %v1596_v44, %v1579_v23  ;;  %v1650_v60 = vpop.permute.xlu0 %1649 }
 0x33c   : > { %v1659_v12 = vmul.f32 %v1650_v60, %v3860_v5 }
 0x33d   : > { %v1621_v63 = vadd.f32 %v1617_v3, %v1600_v58 }
 0x33f   : > { %1945 = vrot.lane.b32.xlu0 %v4032_v51, %s2532_s26 }
 0x340   : > { %v1629_v21 = vpop.permute.xlu1 %1628  ;;  %v1713_v2 = vpop.permute.xlu2 %1712 }
 0x341   : > { %v1638_v0 = vmul.f32 %v1629_v21, %v3851_v43  ;;  %v1722_v54 = vmul.f32 %v1713_v2, %v3878_v6 }
 0x342   : > { %1924 = vrot.lane.b32.xlu1 %v4000_v27, %s2530_s30  ;;  %v4091_v48 = vld [vmem:[#allocation1 + $0x2] ss:$9 sm:$0xff] }
 0x343   : > { %1903 = vrot.lane.b32.xlu2 %v4032_v51, %s2530_s30  ;;  %2098 = vst [vmem:[#allocation1] sm:$0xff] %v2096_v61  ;;  %v1642_v38 = vadd.f32 %v1638_v0, %v1621_v63  ;;  %v2104_v57 = vpop.permute.xlu0 %2103 }
 0x344   : > { %v2106_v14 = vmul.f32 %v2104_v57, %v4060_v34 }
 0x345   : > { %v1663_v40 = vadd.f32 %v1659_v12, %v1642_v38 }
 0x347   : > { %2223 = vrot.lane.b32.xlu0 %v3754_v16, %s2526_s24  ;;  %v1684_v50 = vadd.f32 %v1680_v29, %v1663_v40  ;;  %s4372_s24 = smov 120  }
 0x348   : > { %v1692_v51 = vpop.permute.xlu1 %1691  ;;  %v1776_v13 = vpop.permute.xlu2 %1775 }
 0x349   : > { %v1701_v30 = vmul.f32 %v1692_v51, %v3871_v56  ;;  %v1785_v60 = vmul.f32 %v1776_v13, %v3896_v8 }
 0x34a   : > { %1966 = vrot.lane.b32.xlu1 %v4000_v27, %s2532_s26  ;;  %v4103_v62 = vld [vmem:[#allocation1 + $0x3] ss:$9 sm:$0xff] }
 0x34b   : > { %2208 = vrot.lane.b32.xlu2 %v3754_v16, %s2525_s19  ;;  %2108 = vst [vmem:[#allocation1] sm:$0xff] %v2106_v14  ;;  %v1705_v59 = vadd.f32 %v1701_v30, %v1684_v50  ;;  %v1755_v27 = vpop.permute.xlu0 %1754 }
 0x34c   : > { %v1764_v44 = vmul.f32 %v1755_v27, %v3889_v20 }
 0x34d   : > { %v1726_v24 = vadd.f32 %v1722_v54, %v1705_v59 }
 0x34f   : > { %2243 = vrot.lane.b32.xlu0 %v3754_v16, %s2527_s23  ;;  %s4373_s23 = smov 112  }
 0x350   : > { %v1734_v55 = vpop.permute.xlu1 %1733  ;;  %v1818_v47 = vpop.permute.xlu2 %1817 }
 0x351   : > { %v1743_v31 = vmul.f32 %v1734_v55, %v3885_v19  ;;  %v1827_v57 = vmul.f32 %v1818_v47, %v3907_v25 }
 0x352   : > { %2068 = vrot.lane.b32.xlu1 %v3754_v16, %s4372_s24  ;;  %v4122_v21 = vld [vmem:[#allocation1 + $0x4] ss:$9 sm:$0xff] }
 0x353   : > { %2233 = vrot.lane.b32.xlu2 %v3754_v16, %s2528_s22  ;;  %v1747_v42 = vadd.f32 %v1743_v31, %v1726_v24  ;;  %v1797_v10 = vpop.permute.xlu0 %1796 }
 0x354   : > { %v1806_v0 = vmul.f32 %v1797_v10, %v3903_v46 }
 0x355   : > { %v1768_v23 = vadd.f32 %v1764_v44, %v1747_v42 }
 0x357   : > { %2263 = vrot.lane.b32.xlu0 %v3754_v16, %s4358_s27  ;;  %v1789_v63 = vadd.f32 %v1785_v60, %v1768_v23 }
 0x358   : > { %v2114_v58 = vpop.permute.xlu1 %2113  ;;  %v2124_v61 = vpop.permute.xlu2 %2123 }
 0x359   : > { %v2116_v3 = vmul.f32 %v2114_v58, %v4060_v34  ;;  %v1810_v38 = vadd.f32 %v1806_v0, %v1789_v63  ;;  %v2126_v47 = vmul.f32 %v2124_v61, %v4060_v34 }
 0x35a   : > { %2143 = vrot.lane.b32.xlu1 %v3754_v16, %s4373_s23 }
 0x35b   : > { %2253 = vrot.lane.b32.xlu2 %v3754_v16, %s2529_s21  ;;  %2118 = vst [vmem:[#allocation1] sm:$0xff] %v2116_v3  ;;  %v1860_v2 = vpop.permute.xlu0 %1859  ;;  %v1831_v29 = vadd.f32 %v1827_v57, %v1810_v38 }
 0x35c   : > { %v1869_v13 = vmul.f32 %v1860_v2, %v3921_v4 }
 0x35f   : > { %2283 = vrot.lane.b32.xlu0 %v3754_v16, %s2532_s26  ;;  %s377_s26 = scalar_lea.vmem %s4236_s10, %s4379_s15 }
 0x360   : > { %v1839_v12 = vpop.permute.xlu1 %1838  ;;  %v1923_v51 = vpop.permute.xlu2 %1922 }
 0x361   : > { %v1848_v40 = vmul.f32 %v1839_v12, %v3914_v37  ;;  %v1932_v42 = vmul.f32 %v1923_v51, %v3939_v45 }
 0x362   : > { %2218 = vrot.lane.b32.xlu1 %v3754_v16, %s2524_s29  ;;  %v4138_v10 = vld [vmem:[#allocation1 + $0x5] ss:$9 sm:$0xff] }
 0x363   : > { %2273 = vrot.lane.b32.xlu2 %v3754_v16, %s2530_s30  ;;  %v1852_v14 = vadd.f32 %v1848_v40, %v1831_v29  ;;  %v1902_v30 = vpop.permute.xlu0 %1901  ;;  %2128 = vst [vmem:[#allocation1] sm:$0xff] %v2126_v47 }
 0x364   : > { %v1911_v55 = vmul.f32 %v1902_v30, %v3932_v41 }
 0x365   : > { %v1873_v59 = vadd.f32 %v1869_v13, %v1852_v14 }
 0x368   : > { %v1881_v50 = vpop.permute.xlu1 %1880  ;;  %v1965_v54 = vpop.permute.xlu2 %1964 }
 0x369   : > { %v1890_v27 = vmul.f32 %v1881_v50, %v3925_v32  ;;  %v1974_v63 = vmul.f32 %v1965_v54, %v3952_v39 }
 0x36a   : > { %v4143_v57 = vld [vmem:[#allocation1 + $0x6] ss:$9 sm:$0xff] }
 0x36b   : > { %v1894_v24 = vadd.f32 %v1890_v27, %v1873_v59  ;;  %v2134_v16 = vpop.permute.xlu0 %2133 }
 0x36c   : > { %v2136_v0 = vmul.f32 %v2134_v16, %v4060_v34 }
 0x36d   : > { %v1915_v31 = vadd.f32 %v1911_v55, %v1894_v24 }
 0x36e   : > { %2138 = vst [vmem:[#allocation1] sm:$0xff] %v2136_v0 }
 0x36f   : > { %v1936_v23 = vadd.f32 %v1932_v42, %v1915_v31 }
 0x370   : > { %v1944_v44 = vpop.permute.xlu1 %1943  ;;  %v1547_v60 = vpop.permute.xlu2 %1546 }
 0x371   : > { %v1953_v58 = vmul.f32 %v1944_v44, %v3943_v17  ;;  %v1555_v51 = vmul.f32 %v1547_v60, %v3811_v9 }
 0x373   : > { %v1957_v3 = vadd.f32 %v1953_v58, %v1936_v23  ;;  %v2159_v2 = vpop.permute.xlu0 %2158  ;;  %v1559_v13 = vadd.f32 %v1555_v51, %v3825_v22 }
 0x375   : > { %v1978_v38 = vadd.f32 %v1974_v63, %v1957_v3  ;;  %v4152_v31 = vld [vmem:[#allocation1 + $0x7] ss:$9 sm:$0xff] }
 0x377   : > { %v1986_v40 = vmul.f32 0.2, %v1978_v38  ;;  %vm1982_vm1 = vcmp.ge.f32.partialorder %v1978_v38, 0.0 }
 0x378   : > { %v2149_v12 = vpop.permute.xlu1 %2148  ;;  %v1610_v61 = vpop.permute.xlu2 %1609 }
 0x379   : > { %v4146_v14 = vsel %vm1982_vm1, %v1978_v38, %v1986_v40  ;;  %v1618_v47 = vmul.f32 %v1610_v61, %v3845_v28 }
 0x37a   : > { %v2151_v59 = vmul.f32 %v2149_v12, %v4146_v14  ;;  %v2161_v58 = vmul.f32 %v2159_v2, %v4146_v14 }
 0x37b   : > { %v1589_v29 = vpop.permute.xlu0 %1588 }
 0x37c   : > { %v1597_v55 = vmul.f32 %v1589_v29, %v3838_v35  ;;  %2153 = vst [vmem:[#allocation1] sm:$0xff] %v2151_v59 }
 0x380   : > { %v1568_v30 = vpop.permute.xlu1 %1567  ;;  %v1652_v54 = vpop.permute.xlu2 %1651 }
 0x381   : > { %v1576_v50 = vmul.f32 %v1568_v30, %v3831_v33  ;;  %v1660_v3 = vmul.f32 %v1652_v54, %v3860_v5 }
 0x383   : > { %v1580_v27 = vadd.f32 %v1576_v50, %v1559_v13  ;;  %v1631_v24 = vpop.permute.xlu0 %1630  ;;  %v4159_v63 = vld [vmem:[#allocation1 + $0x1] ss:$9 sm:$0xff] }
 0x384   : > { %v1639_v44 = vmul.f32 %v1631_v24, %v3851_v43  ;;  %2163 = vst [vmem:[#allocation1] sm:$0xff] %v2161_v58 }
 0x385   : > { %v1601_v16 = vadd.f32 %v1597_v55, %v1580_v27 }
 0x387   : > { %v1622_v42 = vadd.f32 %v1618_v47, %v1601_v16 }
 0x388   : > { %v2169_v9 = vpop.permute.xlu1 %2168  ;;  %v2179_v23 = vpop.permute.xlu2 %2178 }
 0x389   : > { %v1643_v33 = vadd.f32 %v1639_v44, %v1622_v42  ;;  %v2171_v28 = vmul.f32 %v2169_v9, %v4146_v14  ;;  %v2181_v50 = vmul.f32 %v2179_v23, %v4146_v14 }
 0x38b   : > { %v1694_v22 = vpop.permute.xlu0 %1693  ;;  %v1664_v0 = vadd.f32 %v1660_v3, %v1643_v33  ;;  %v4164_v29 = vld [vmem:[#allocation1 + $0x2] ss:$9 sm:$0xff] }
 0x38c   : > { %v1702_v43 = vmul.f32 %v1694_v22, %v3871_v56  ;;  %2173 = vst [vmem:[#allocation1] sm:$0xff] %v2171_v28 }
 0x390   : > { %v1673_v60 = vpop.permute.xlu1 %1672  ;;  %v1757_v61 = vpop.permute.xlu2 %1756 }
 0x391   : > { %v1681_v35 = vmul.f32 %v1673_v60, %v3867_v1  ;;  %v1765_v27 = vmul.f32 %v1757_v61, %v3889_v20  ;;  %v1993_v61 = vld [vmem:[#allocation4] sm:$0x1] }
 0x393   : > { %v1685_v38 = vadd.f32 %v1681_v35, %v1664_v0  ;;  %v1736_v12 = vpop.permute.xlu0 %1735  ;;  %v4170_v54 = vld [vmem:[#allocation1 + $0x3] ss:$9 sm:$0xff] }
 0x394   : > { %v1744_v1 = vmul.f32 %v1736_v12, %v3885_v19  ;;  %2183 = vst [vmem:[#allocation1] sm:$0xff] %v2181_v50 }
 0x395   : > { %v1706_v51 = vadd.f32 %v1702_v43, %v1685_v38 }
 0x398   : > { %v1715_v40 = vpop.permute.xlu1 %1714  ;;  %v1799_v55 = vpop.permute.xlu2 %1798 }
 0x399   : > { %v1723_v2 = vmul.f32 %v1715_v40, %v3878_v6  ;;  %v1807_v19 = vmul.f32 %v1799_v55, %v3903_v46 }
 0x39b   : > { %v1727_v5 = vadd.f32 %v1723_v2, %v1706_v51  ;;  %v2189_v30 = vpop.permute.xlu0 %2188  ;;  %v4175_v22 = vld [vmem:[#allocation1 + $0x4] ss:$9 sm:$0xff] }
 0x39c   : > { %v2191_v16 = vmul.f32 %v2189_v30, %v4146_v14 }
 0x39d   : > { %v1748_v13 = vadd.f32 %v1744_v1, %v1727_v5 }
 0x39e   : > { %2193 = vst [vmem:[#allocation1] sm:$0xff] %v2191_v16 }
 0x39f   : > { %v1769_v6 = vadd.f32 %v1765_v27, %v1748_v13 }
 0x3a0   : > { %v1778_v59 = vpop.permute.xlu1 %1777 }
 0x3a1   : > { %v1786_v56 = vmul.f32 %v1778_v59, %v3896_v8  ;;  %v1862_v8 = vpop.permute.xlu2 %1861 }
 0x3a2   : > { %v1870_v3 = vmul.f32 %v1862_v8, %v3921_v4 }
 0x3a3   : > { %v1790_v24 = vadd.f32 %v1786_v56, %v1769_v6  ;;  %v1841_v9 = vpop.permute.xlu0 %1840 }
 0x3a4   : > { %v1849_v23 = vmul.f32 %v1841_v9, %v3914_v37 }
 0x3a5   : > { %v1811_v42 = vadd.f32 %v1807_v19, %v1790_v24  ;;  %v4184_v38 = vld [vmem:[#allocation1 + $0x5] ss:$9 sm:$0xff] }
 0x3a8   : > { %v1820_v47 = vpop.permute.xlu1 %1819 }
 0x3a9   : > { %v1828_v44 = vmul.f32 %v1820_v47, %v3907_v25  ;;  %v1992_v25 = vld [vmem:[%s4234_s8] sm:$0x1]  ;;  %v1904_v12 = vpop.permute.xlu2 %1903 }
 0x3aa   : > { %v1994_v37 = vmul.f32 %v1992_v25, %v3960_v26  ;;  %v1912_v4 = vmul.f32 %v1904_v12, %v3932_v41 }
 0x3ab   : > { %v1832_v20 = vadd.f32 %v1828_v44, %v1811_v42  ;;  %v1883_v58 = vpop.permute.xlu0 %1882 }
 0x3ac   : > { %v1891_v46 = vmul.f32 %v1883_v58, %v3925_v32  ;;  %v1995_v2 = vadd.f32 %v1994_v37, %v1993_v61 }
 0x3ad   : > { %v1853_v33 = vadd.f32 %v1849_v23, %v1832_v20 }
 0x3ae   : > { %v2007_v1 = vadd.f32 %v3975_v49, %v1995_v2 }
 0x3af   : > { %v1874_v0 = vadd.f32 %v1870_v3, %v1853_v33 }
 0x3b0   : > { %v2199_v60 = vpop.permute.xlu1 %2198  ;;  %v2017_v13 = vadd.f32 %v3984_v15, %v2007_v1 }
 0x3b1   : > { %v2201_v35 = vmul.f32 %v2199_v60, %v4146_v14  ;;  %v1895_v28 = vadd.f32 %v1891_v46, %v1874_v0  ;;  %v2209_v59 = vpop.permute.xlu2 %2208 }
 0x3b2   : > { %v2027_v56 = vadd.f32 %v3994_v11, %v2017_v13  ;;  %v2211_v55 = vmul.f32 %v2209_v59, %v4146_v14 }
 0x3b3   : > { %2203 = vst [vmem:[#allocation1] sm:$0xff] %v2201_v35  ;;  %v1916_v51 = vadd.f32 %v1912_v4, %v1895_v28  ;;  %v1946_v32 = vpop.permute.xlu0 %1945 }
 0x3b4   : > { %v1954_v30 = vmul.f32 %v1946_v32, %v3943_v17 }
 0x3b8   : > { %v1925_v43 = vpop.permute.xlu1 %1924 }
 0x3b9   : > { %v1933_v40 = vmul.f32 %v1925_v43, %v3939_v45  ;;  %v2037_v45 = vadd.f32 %v4011_v53, %v2027_v56  ;;  %v2234_v20 = vpop.permute.xlu2 %2233 }
 0x3ba   : > { %v2205_v24 = vld [vmem:[#allocation1 + $0x6] ss:$9 sm:$0xff] }
 0x3bb   : > { %v1937_v5 = vadd.f32 %v1933_v40, %v1916_v51  ;;  %v2047_v49 = vadd.f32 %v4025_v7, %v2037_v45  ;;  %2213 = vst [vmem:[#allocation1] sm:$0xff] %v2211_v55  ;;  %v2224_v9 = vpop.permute.xlu0 %2223 }
 0x3bd   : > { %v1958_v27 = vadd.f32 %v1954_v30, %v1937_v5  ;;  %v2057_v15 = vadd.f32 %v4056_v52, %v2047_v49 }
 0x3c0   : > { %v1967_v50 = vpop.permute.xlu1 %1966 }
 0x3c1   : > { %v1975_v26 = vmul.f32 %v1967_v50, %v3952_v39  ;;  %v2067_v39 = vadd.f32 %v4067_v36, %v2057_v15  ;;  %v2254_v0 = vpop.permute.xlu2 %2253 }
 0x3c2   : > { %v2215_v42 = vld [vmem:[#allocation1 + $0x7] ss:$9 sm:$0xff] }
 0x3c3   : > { %v1979_v41 = vadd.f32 %v1975_v26, %v1958_v27  ;;  %v2244_v60 = vpop.permute.xlu0 %2243 }
 0x3c5   : > { %vm1983_vm2 = vcmp.ge.f32.partialorder %v1979_v41, 0.0  ;;  %v1987_v6 = vmul.f32 0.2, %v1979_v41 }
 0x3c7   : > { %v1991_v17 = vsel %vm1983_vm2, %v1979_v41, %v1987_v6 }
 0x3c8   : > { %v2069_v16 = vpop.permute.xlu1 %2068  ;;  %v2226_v19 = vmul.f32 %v2224_v9, %v1991_v17  ;;  %v2236_v52 = vmul.f32 %v2234_v20, %v1991_v17  ;;  %v2256_v25 = vmul.f32 %v2254_v0, %v1991_v17 }
 0x3c9   : > { %v2071_v11 = vmul.f32 %v2069_v16, %v4060_v34 }
 0x3ca   : > { %2228 = vst [vmem:[#allocation1] sm:$0xff] %v2226_v19 }
 0x3cb   : > { %v2072_v47 = vadd.f32 %v2071_v11, %v2067_v39  ;;  %v2264_v28 = vpop.permute.xlu0 %2263 }
 0x3cc   : > { %v2266_v61 = vmul.f32 %v2264_v28, %v1991_v17 }
 0x3cd   : > { %v2082_v53 = vadd.f32 %v4080_v18, %v2072_v47 }
 0x3cf   : > { %v2092_v44 = vadd.f32 %v4091_v48, %v2082_v53  ;;  %v2246_v48 = vmul.f32 %v2244_v60, %v1991_v17 }
 0x3d0   : > { %v2144_v36 = vpop.permute.xlu1 %2143 }
 0x3d1   : > { %v2102_v7 = vadd.f32 %v4103_v62, %v2092_v44  ;;  %v2230_v33 = vld [vmem:[#allocation1 + $0x1] ss:$9 sm:$0xff]  ;;  %v2146_v18 = vmul.f32 %v2144_v36, %v4146_v14 }
 0x3d2   : > { %2238 = vst [vmem:[#allocation1] sm:$0xff] %v2236_v52 }
 0x3d3   : > { %v2112_v8 = vadd.f32 %v4122_v21, %v2102_v7 }
 0x3d5   : > { %v2122_v23 = vadd.f32 %v4138_v10, %v2112_v8 }
 0x3d7   : > { %v2132_v34 = vadd.f32 %v4143_v57, %v2122_v23 }
 0x3d8   : > { %v2219_v12 = vpop.permute.xlu1 %2218 }
 0x3d9   : > { %v2142_v58 = vadd.f32 %v4152_v31, %v2132_v34  ;;  %v2240_v35 = vld [vmem:[#allocation1 + $0x2] ss:$9 sm:$0xff]  ;;  %v2221_v43 = vmul.f32 %v2219_v12, %v1991_v17 }
 0x3da   : > { %2248 = vst [vmem:[#allocation1] sm:$0xff] %v2246_v48 }
 0x3db   : > { %v2147_v3 = vadd.f32 %v2146_v18, %v2142_v58 }
 0x3dd   : > { %v2157_v62 = vadd.f32 %v4159_v63, %v2147_v3 }
 0x3df   : > { %v2167_v21 = vadd.f32 %v4164_v29, %v2157_v62  ;;  %v2274_v29 = vpop.permute.xlu2 %2273 }
 0x3e1   : > { %v2177_v10 = vadd.f32 %v4170_v54, %v2167_v21  ;;  %v2250_v31 = vld [vmem:[#allocation1 + $0x3] ss:$9 sm:$0xff]  ;;  %v2276_v54 = vmul.f32 %v2274_v29, %v1991_v17 }
 0x3e2   : > { %2258 = vst [vmem:[#allocation1] sm:$0xff] %v2256_v25 }
 0x3e3   : > { %v2187_v46 = vadd.f32 %v4175_v22, %v2177_v10  ;;  %v2284_v22 = vpop.permute.xlu0 %2283 }
 0x3e5   : > { %v2197_v57 = vadd.f32 %v4184_v38, %v2187_v46  ;;  %v2286_v38 = vmul.f32 %v2284_v22, %v1991_v17 }
 0x3e7   : > { %v2207_v14 = vadd.f32 %v2205_v24, %v2197_v57 }
 0x3e9   : > { %v2217_v37 = vadd.f32 %v2215_v42, %v2207_v14  ;;  %v2260_v4 = vld [vmem:[#allocation1 + $0x4] ss:$9 sm:$0xff] }
 0x3ea   : > { %2268 = vst [vmem:[#allocation1] sm:$0xff] %v2266_v61 }
 0x3eb   : > { %v2222_v63 = vadd.f32 %v2221_v43, %v2217_v37 }
 0x3ed   : > { %v2232_v40 = vadd.f32 %v2230_v33, %v2222_v63 }
 0x3ef   : > { %v2242_v2 = vadd.f32 %v2240_v35, %v2232_v40 }
 0x3f1   : > { %v2270_v51 = vld [vmem:[#allocation1 + $0x5] ss:$9 sm:$0xff]  ;;  %v2252_v32 = vadd.f32 %v2250_v31, %v2242_v2 }
 0x3f2   : > { %2278 = vst [vmem:[#allocation1] sm:$0xff] %v2276_v54 }
 0x3f3   : > { %v2262_v1 = vadd.f32 %v2260_v4, %v2252_v32 }
 0x3f5   : > { %v2272_v30 = vadd.f32 %v2270_v51, %v2262_v1 }
 0x3f9   : > { %v2280_v5 = vld [vmem:[#allocation1 + $0x6] ss:$9 sm:$0xff] }
 0x3fa   : > { %2288 = vst [vmem:[#allocation1] sm:$0xff] %v2286_v38  ;;  %v2282_v13 = vadd.f32 %v2280_v5, %v2272_v30 }
 0x401   : > { %v2290_v50 = vld [vmem:[#allocation1 + $0x7] ss:$9 sm:$0xff] }
 0x402   : > { %v2292_v59 = vadd.f32 %v2290_v50, %v2282_v13 }
 0x404   : > { %v2389_v27 = vmul.f32 -1.442695, %v2292_v59 }
 0x406   : > { %2459 = vpow2.f32 %v2389_v27 }
 0x40c   : > { %v2460_v26 = vpop.eup %2459 }
 0x40d   : > { %v2296_v56 = vadd.f32 1.0, %v2460_v26 }
 0x40f   : > { %2461 = vrcp.f32 %v2296_v56  ;;  %v2308_v6 = vand.u32 2147483648, %v2296_v56  ;;  %v2306_v24 = vand.u32 2147483647, %v2296_v56  ;;  %vm2302_vm4 = vweird.f32 %v2296_v56 }
 0x411   : > { %v2309_v15 = vor.u32 1.1754944e-38, %v2308_v6  ;;  %vm2307_vm7 = vcmp.eq.f32.partialorder %v2306_v24, 8.507059e+37 }
 0x415   : > { %v2462_v41 = vpop.eup %2461 }
 0x416   : > { %v2298_v45 = vmul.f32 %v2462_v41, %v2296_v56  ;;  %vm2303_vm3 = vweird.f32 %v2462_v41 }
 0x417   : > { %vm2304_vm6 = vmor %vm2302_vm4, %vm2303_vm3 }
 0x418   : > { %v2299_v55 = vsub.f32 1.0, %v2298_v45 }
 0x41a   : > { %v2300_v49 = vmul.f32 %v2462_v41, %v2299_v55 }
 0x41c   : > { %v2301_v17 = vadd.f32 %v2462_v41, %v2300_v49 }
 0x41e   : > { %v2305_v16 = vsel %vm2304_vm6, %v2462_v41, %v2301_v17 }
 0x41f   : > { %v2310_v9 = vsel %vm2307_vm7, %v2309_v15, %v2305_v16 }
 0x420   : > { %2313 = vst.msk [vmem:[%s377_s26] sm:$0x1] %vm2312_vm5, %v2310_v9 }
 0x421 PF: > { %s22_s17 = sadd.s32 1, %s2497_s17   ;;  %s4374_s15 = smov %s2493_s16 }
 0x422   : > { %p19_p5 = scmp.ge.s32.totalorder %s22_s17, 4   ;;  %s4375_s16 = smov %s4377_s9 }
 0x424   :  { %21 = sbr.rel (!%p19_p5) target bundleno = 3 (0x3), region = 126 }

</bundles_post_ra>
